<compile_context>
chip_gen: v7x
topology: tpu7x:2x2x1
jax: 0.10.0
libtpu: 0.0.40
codegen_flags: <defaults>
</compile_context>

<pallas_src>
import jax
import jax.numpy as jnp
from jax.experimental import pallas as pl
from jax.experimental.pallas import tpu as pltpu


def _round_up(v, m):
    return (v + m - 1) // m * m


def _upsample_conv_kernel(xg_ref, w_ref, b_ref, o_ref):
    """Fused nearest-2x-upsample + 3x3 conv, sub-pixel (phase) decomposition.

    xg_ref: (TH+2, Wb+2, Ci_p)   zero-padded original-resolution row tile (+halo)
    w_ref : (4, 2, 2*Ci_p, Co_p) phase weights; K folds (dx, ci)
    b_ref : (1, Co_p)            f32 bias
    o_ref : (4, TH, Wb, Co_p)    phase-separated output:
                                 o[2*py+px, i, j, :] = y[2*i+py, 2*j+px, :]
    """
    _, TH, Wb, Co_p = o_ref.shape
    Ci_p = xg_ref.shape[-1]
    bias = b_ref[...].astype(jnp.float32)                       # (1, Co_p)

    for py in range(2):
        for px in range(2):
            p = 2 * py + px
            acc = None
            for dy in range(2):
                r = py + dy
                # Fold the two dx taps into the contraction: K = 2*Ci_p.
                lhs = jnp.concatenate(
                    [xg_ref[r:r + TH, px:px + Wb, :],
                     xg_ref[r:r + TH, px + 1:px + 1 + Wb, :]],
                    axis=-1).reshape(TH * Wb, 2 * Ci_p)
                term = jnp.dot(lhs, w_ref[p, dy],
                               preferred_element_type=jnp.float32)
                acc = term if acc is None else acc + term
            o_ref[p] = (acc + bias).astype(o_ref.dtype).reshape(TH, Wb, Co_p)


def upsample_forward(x_nchw, weight_oihw, bias, use_conv=True,
                     row_tile=None, compute_dtype=None):
    """Semantics of Upsample.forward for dims=2 (NCHW in / NCHW out)."""
    N, Ci, H, W = x_nchw.shape

    if not use_conv:
        return jnp.repeat(jnp.repeat(x_nchw, 2, axis=2), 2, axis=3)

    Co = weight_oihw.shape[0]
    out_dtype = x_nchw.dtype
    # Optionally run the matmuls in bf16 (f32 accumulation kept) on v6e/v7x.
    cdt = compute_dtype if compute_dtype is not None else out_dtype

    # ---- tile / padding choices -------------------------------------------------
    LANE = 128
    Wb = _round_up(W, 8)                            # sublane-friendly width
    if row_tile is None:
        row_tile = max(8, 512 // Wb)                # ~512 output positions / phase
    TH = int(min(H, row_tile))
    Hb = _round_up(H, TH)
    T = Hb // TH
    Ci_p = _round_up(Ci, LANE)
    Co_p = _round_up(Co, LANE)                      # lane-dense output stores

    # ---- glue: NCHW -> NHWC, zero-pad (conv halo + alignment), row-halo gather ---
    x = jnp.transpose(x_nchw, (0, 2, 3, 1)).astype(cdt)          # (N, H, W, Ci)
    xp = jnp.zeros((N, Hb + 2, Wb + 2, Ci_p), cdt)
    xp = xp.at[:, 1:H + 1, 1:W + 1, :Ci].set(x)
    row_idx = jnp.arange(T)[:, None] * TH + jnp.arange(TH + 2)[None, :]
    xg = xp[:, row_idx]                             # (N, T, TH+2, Wb+2, Ci_p)

    # ---- phase-folded weights: Weff[py,px,dy,dx,ci,co] = sum of grouped taps -----
    # ky group map: py=0 -> {ky0 | ky1+ky2}, py=1 -> {ky0+ky1 | ky2}; same for kx.
    gy = jnp.array([[[1., 0., 0.], [0., 1., 1.]],
                    [[1., 1., 0.], [0., 0., 1.]]], dtype=jnp.float32)
    w = weight_oihw.astype(jnp.float32)             # (Co, Ci, 3, 3)
    weff = jnp.einsum('ady,bex,oiyx->abdeio', gy, gy, w)   # (2,2,2,2,Ci,Co)
    weff = weff.reshape(4, 2, 2, Ci, Co)
    wpad = jnp.zeros((4, 2, 2, Ci_p, Co_p), cdt)
    wpad = wpad.at[:, :, :, :Ci, :Co].set(weff.astype(cdt))
    wk = wpad.reshape(4, 2, 2 * Ci_p, Co_p)         # K index = dx*Ci_p + ci
    bk = jnp.zeros((1, Co_p), jnp.float32).at[:, :Co].set(
        bias.astype(jnp.float32)[None, :])

    # ---- VMEM budget / cost hint --------------------------------------------------
    isz = jnp.dtype(cdt).itemsize
    osz = jnp.dtype(out_dtype).itemsize
    in_blk = (TH + 2) * (Wb + 2) * Ci_p * isz
    out_blk = 4 * TH * Wb * Co_p * osz
    w_blk = wk.size * isz + bk.size * 4
    tmp = TH * Wb * (2 * (2 * Ci_p) * isz + 2 * Co_p * 4)
    vmem_limit = 2 * (in_blk + out_blk) + w_blk + tmp
    vmem_limit = int(min(max(2 * vmem_limit, 32 * 1024 * 1024), 64 * 1024 * 1024))

    flops = 32 * N * Hb * Wb * Ci_p * Co_p          # 4 phases * 2 dy * 2*Ci_p MACs * 2
    bytes_accessed = int(xg.size * isz + wk.size * isz + bk.size * 4
                         + N * 4 * Hb * Wb * Co_p * osz)

    out_ph = pl.pallas_call(
        _upsample_conv_kernel,
        out_shape=jax.ShapeDtypeStruct((N, 4, Hb, Wb, Co_p), out_dtype),
        grid=(N, T),
        in_specs=[
            pl.BlockSpec((None, None, TH + 2, Wb + 2, Ci_p),
                         lambda n, t: (n, t, 0, 0, 0)),
            pl.BlockSpec((4, 2, 2 * Ci_p, Co_p), lambda n, t: (0, 0, 0, 0)),
            pl.BlockSpec((1, Co_p), lambda n, t: (0, 0)),
        ],
        out_specs=pl.BlockSpec((None, 4, TH, Wb, Co_p),
                               lambda n, t: (n, 0, t, 0, 0)),
        compiler_params=pltpu.CompilerParams(
            dimension_semantics=("parallel", "parallel"),
            vmem_limit_bytes=vmem_limit),
        cost_estimate=pl.CostEstimate(flops=flops, transcendentals=0,
                                      bytes_accessed=bytes_accessed),
    )(xg, wk, bk)

    # ---- glue: drop padding, interleave phases, back to NCHW (single transpose) --
    out = out_ph[:, :, :H, :W, :Co]                 # (N, 4, H, W, Co)
    out = out.reshape(N, 2, 2, H, W, Co)            # (N, py, px, H, W, Co)
    out = jnp.transpose(out, (0, 5, 3, 1, 4, 2))    # (N, Co, H, py, W, px)
    return out.reshape(N, Co, 2 * H, 2 * W)


if __name__ == "__main__":
    key = jax.random.PRNGKey(0)
    kx, kw, kb = jax.random.split(key, 3)

    N, C, H, W = 2, 4, 16, 16
    Cout = C  # out_channels = channels (module default)

    x = jax.random.normal(kx, (N, C, H, W), dtype=jnp.float32)
    # deterministic synthetic parameters (conv weight is OIHW like nn.Conv2d)
    weight = 0.1 * jax.random.normal(kw, (Cout, C, 3, 3), dtype=jnp.float32)
    bias = 0.05 * jax.random.normal(kb, (Cout,), dtype=jnp.float32)

    out = upsample_forward(x, weight, bias, use_conv=True)
    out = jax.block_until_ready(out)
    assert out.shape == (N, Cout, 2 * H, 2 * W), out.shape

    # reference: nearest 2x upsample + conv (plain XLA), matches PyTorch semantics
    x_up = jnp.repeat(jnp.repeat(x, 2, axis=2), 2, axis=3)
    ref = jax.lax.conv_general_dilated(
        x_up, weight, window_strides=(1, 1), padding=((1, 1), (1, 1)),
        dimension_numbers=("NCHW", "OIHW", "NCHW"),
        precision=jax.lax.Precision.HIGHEST,
    ) + bias[None, :, None, None]

    assert jnp.allclose(out, ref, atol=5e-2, rtol=5e-2), (
        float(jnp.max(jnp.abs(out - ref))))

    print("KERNEL_OK")
</pallas_src>

<mosaic_0001>
module attributes {stable_mosaic.version = 11 : i64} {
  func.func @_upsample_conv_kernel(%arg0: i32, %arg1: i32, %arg2: memref<1x1x18x18x128xf32, #tpu.memory_space<vmem>>, %arg3: memref<4x2x256x128xf32, #tpu.memory_space<vmem>>, %arg4: memref<1x128xf32, #tpu.memory_space<vmem>>, %arg5: memref<1x4x16x16x128xf32, #tpu.memory_space<vmem>>) attributes {dimension_semantics = [#tpu.dimension_semantics<parallel>, #tpu.dimension_semantics<parallel>], iteration_bounds = array<i64: 2, 1>, scalar_prefetch = 0 : i64, scratch_operands = 0 : i64, tpu.core_type = #tpu.core_type<tc>, window_params = [{transform_indices = @transform_0, window_bounds = array<i64: 1, 1, 18, 18, 128>}, {pipeline_mode = #tpu.pipeline_mode<synchronous>, transform_indices = @transform_1, window_bounds = array<i64: 4, 2, 256, 128>}, {pipeline_mode = #tpu.pipeline_mode<synchronous>, transform_indices = @transform_2, window_bounds = array<i64: 1, 128>}, {transform_indices = @transform_3, window_bounds = array<i64: 1, 4, 16, 16, 128>}]} {
    %c0 = arith.constant 0 : index
    %c0_0 = arith.constant 0 : index
    %0 = vector.load %arg4[%c0, %c0_0] : memref<1x128xf32, #tpu.memory_space<vmem>>, vector<1x128xf32>
    %c0_1 = arith.constant 0 : index
    %c0_2 = arith.constant 0 : index
    %c0_3 = arith.constant 0 : index
    %c0_4 = arith.constant 0 : index
    %c0_5 = arith.constant 0 : index
    %1 = vector.load %arg2[%c0_1, %c0_2, %c0_3, %c0_4, %c0_5] : memref<1x1x18x18x128xf32, #tpu.memory_space<vmem>>, vector<1x1x16x16x128xf32>
    %2 = vector.shape_cast %1 : vector<1x1x16x16x128xf32> to vector<16x16x128xf32>
    %c0_6 = arith.constant 0 : index
    %c0_7 = arith.constant 0 : index
    %c0_8 = arith.constant 0 : index
    %c1 = arith.constant 1 : index
    %c0_9 = arith.constant 0 : index
    %3 = vector.load %arg2[%c0_6, %c0_7, %c0_8, %c1, %c0_9] : memref<1x1x18x18x128xf32, #tpu.memory_space<vmem>>, vector<1x1x16x16x128xf32>
    %4 = vector.shape_cast %3 : vector<1x1x16x16x128xf32> to vector<16x16x128xf32>
    %5 = tpu.concatenate %2, %4 in 2 : vector<16x16x128xf32>, vector<16x16x128xf32> -> vector<16x16x256xf32>
    %6 = vector.shape_cast %5 : vector<16x16x256xf32> to vector<256x256xf32>
    %c0_10 = arith.constant 0 : index
    %c0_11 = arith.constant 0 : index
    %c0_12 = arith.constant 0 : index
    %c0_13 = arith.constant 0 : index
    %7 = vector.load %arg3[%c0_10, %c0_11, %c0_12, %c0_13] : memref<4x2x256x128xf32, #tpu.memory_space<vmem>>, vector<1x1x256x128xf32>
    %8 = vector.shape_cast %7 : vector<1x1x256x128xf32> to vector<256x128xf32>
    %cst = arith.constant dense<0.000000e+00> : vector<256x128xf32>
    %9 = tpu.matmul %6, %8, %cst {dimension_numbers = #tpu.dot_dimension_numbers<[1], [0], [0], [1], [0, 0, 1, 1], [], []>} : vector<256x256xf32>, vector<256x128xf32>, vector<256x128xf32> -> vector<256x128xf32>
    %c0_14 = arith.constant 0 : index
    %c0_15 = arith.constant 0 : index
    %c1_16 = arith.constant 1 : index
    %c0_17 = arith.constant 0 : index
    %c0_18 = arith.constant 0 : index
    %10 = vector.load %arg2[%c0_14, %c0_15, %c1_16, %c0_17, %c0_18] : memref<1x1x18x18x128xf32, #tpu.memory_space<vmem>>, vector<1x1x16x16x128xf32>
    %11 = vector.shape_cast %10 : vector<1x1x16x16x128xf32> to vector<16x16x128xf32>
    %c0_19 = arith.constant 0 : index
    %c0_20 = arith.constant 0 : index
    %c1_21 = arith.constant 1 : index
    %c1_22 = arith.constant 1 : index
    %c0_23 = arith.constant 0 : index
    %12 = vector.load %arg2[%c0_19, %c0_20, %c1_21, %c1_22, %c0_23] : memref<1x1x18x18x128xf32, #tpu.memory_space<vmem>>, vector<1x1x16x16x128xf32>
    %13 = vector.shape_cast %12 : vector<1x1x16x16x128xf32> to vector<16x16x128xf32>
    %14 = tpu.concatenate %11, %13 in 2 : vector<16x16x128xf32>, vector<16x16x128xf32> -> vector<16x16x256xf32>
    %15 = vector.shape_cast %14 : vector<16x16x256xf32> to vector<256x256xf32>
    %c0_24 = arith.constant 0 : index
    %c1_25 = arith.constant 1 : index
    %c0_26 = arith.constant 0 : index
    %c0_27 = arith.constant 0 : index
    %16 = vector.load %arg3[%c0_24, %c1_25, %c0_26, %c0_27] : memref<4x2x256x128xf32, #tpu.memory_space<vmem>>, vector<1x1x256x128xf32>
    %17 = vector.shape_cast %16 : vector<1x1x256x128xf32> to vector<256x128xf32>
    %cst_28 = arith.constant dense<0.000000e+00> : vector<256x128xf32>
    %18 = tpu.matmul %15, %17, %cst_28 {dimension_numbers = #tpu.dot_dimension_numbers<[1], [0], [0], [1], [0, 0, 1, 1], [], []>} : vector<256x256xf32>, vector<256x128xf32>, vector<256x128xf32> -> vector<256x128xf32>
    %19 = arith.addf %9, %18 : vector<256x128xf32>
    %20 = vector.broadcast %0 : vector<1x128xf32> to vector<256x128xf32>
    %21 = arith.addf %19, %20 : vector<256x128xf32>
    %22 = vector.shape_cast %21 : vector<256x128xf32> to vector<16x16x128xf32>
    %c0_29 = arith.constant 0 : index
    %c0_30 = arith.constant 0 : index
    %c0_31 = arith.constant 0 : index
    %c0_32 = arith.constant 0 : index
    %c0_33 = arith.constant 0 : index
    %23 = vector.load %arg5[%c0_29, %c0_30, %c0_31, %c0_32, %c0_33] : memref<1x4x16x16x128xf32, #tpu.memory_space<vmem>>, vector<1x1x16x16x128xf32>
    %24 = vector.shape_cast %23 : vector<1x1x16x16x128xf32> to vector<16x16x128xf32>
    %25 = vector.shape_cast %22 : vector<16x16x128xf32> to vector<1x1x16x16x128xf32>
    tpu.vector_store %arg5[%c0_29, %c0_30, %c0_31, %c0_32, %c0_33], %25 {strides = array<i32>} : memref<1x4x16x16x128xf32, #tpu.memory_space<vmem>>, vector<1x1x16x16x128xf32>,
    %c0_34 = arith.constant 0 : index
    %c0_35 = arith.constant 0 : index
    %c0_36 = arith.constant 0 : index
    %c1_37 = arith.constant 1 : index
    %c0_38 = arith.constant 0 : index
    %26 = vector.load %arg2[%c0_34, %c0_35, %c0_36, %c1_37, %c0_38] : memref<1x1x18x18x128xf32, #tpu.memory_space<vmem>>, vector<1x1x16x16x128xf32>
    %27 = vector.shape_cast %26 : vector<1x1x16x16x128xf32> to vector<16x16x128xf32>
    %c0_39 = arith.constant 0 : index
    %c0_40 = arith.constant 0 : index
    %c0_41 = arith.constant 0 : index
    %c2 = arith.constant 2 : index
    %c0_42 = arith.constant 0 : index
    %28 = vector.load %arg2[%c0_39, %c0_40, %c0_41, %c2, %c0_42] : memref<1x1x18x18x128xf32, #tpu.memory_space<vmem>>, vector<1x1x16x16x128xf32>
    %29 = vector.shape_cast %28 : vector<1x1x16x16x128xf32> to vector<16x16x128xf32>
    %30 = tpu.concatenate %27, %29 in 2 : vector<16x16x128xf32>, vector<16x16x128xf32> -> vector<16x16x256xf32>
    %31 = vector.shape_cast %30 : vector<16x16x256xf32> to vector<256x256xf32>
    %c1_43 = arith.constant 1 : index
    %c0_44 = arith.constant 0 : index
    %c0_45 = arith.constant 0 : index
    %c0_46 = arith.constant 0 : index
    %32 = vector.load %arg3[%c1_43, %c0_44, %c0_45, %c0_46] : memref<4x2x256x128xf32, #tpu.memory_space<vmem>>, vector<1x1x256x128xf32>
    %33 = vector.shape_cast %32 : vector<1x1x256x128xf32> to vector<256x128xf32>
    %cst_47 = arith.constant dense<0.000000e+00> : vector<256x128xf32>
    %34 = tpu.matmul %31, %33, %cst_47 {dimension_numbers = #tpu.dot_dimension_numbers<[1], [0], [0], [1], [0, 0, 1, 1], [], []>} : vector<256x256xf32>, vector<256x128xf32>, vector<256x128xf32> -> vector<256x128xf32>
    %c0_48 = arith.constant 0 : index
    %c0_49 = arith.constant 0 : index
    %c1_50 = arith.constant 1 : index
    %c1_51 = arith.constant 1 : index
    %c0_52 = arith.constant 0 : index
    %35 = vector.load %arg2[%c0_48, %c0_49, %c1_50, %c1_51, %c0_52] : memref<1x1x18x18x128xf32, #tpu.memory_space<vmem>>, vector<1x1x16x16x128xf32>
    %36 = vector.shape_cast %35 : vector<1x1x16x16x128xf32> to vector<16x16x128xf32>
    %c0_53 = arith.constant 0 : index
    %c0_54 = arith.constant 0 : index
    %c1_55 = arith.constant 1 : index
    %c2_56 = arith.constant 2 : index
    %c0_57 = arith.constant 0 : index
    %37 = vector.load %arg2[%c0_53, %c0_54, %c1_55, %c2_56, %c0_57] : memref<1x1x18x18x128xf32, #tpu.memory_space<vmem>>, vector<1x1x16x16x128xf32>
    %38 = vector.shape_cast %37 : vector<1x1x16x16x128xf32> to vector<16x16x128xf32>
    %39 = tpu.concatenate %36, %38 in 2 : vector<16x16x128xf32>, vector<16x16x128xf32> -> vector<16x16x256xf32>
    %40 = vector.shape_cast %39 : vector<16x16x256xf32> to vector<256x256xf32>
    %c1_58 = arith.constant 1 : index
    %c1_59 = arith.constant 1 : index
    %c0_60 = arith.constant 0 : index
    %c0_61 = arith.constant 0 : index
    %41 = vector.load %arg3[%c1_58, %c1_59, %c0_60, %c0_61] : memref<4x2x256x128xf32, #tpu.memory_space<vmem>>, vector<1x1x256x128xf32>
    %42 = vector.shape_cast %41 : vector<1x1x256x128xf32> to vector<256x128xf32>
    %cst_62 = arith.constant dense<0.000000e+00> : vector<256x128xf32>
    %43 = tpu.matmul %40, %42, %cst_62 {dimension_numbers = #tpu.dot_dimension_numbers<[1], [0], [0], [1], [0, 0, 1, 1], [], []>} : vector<256x256xf32>, vector<256x128xf32>, vector<256x128xf32> -> vector<256x128xf32>
    %44 = arith.addf %34, %43 : vector<256x128xf32>
    %45 = vector.broadcast %0 : vector<1x128xf32> to vector<256x128xf32>
    %46 = arith.addf %44, %45 : vector<256x128xf32>
    %47 = vector.shape_cast %46 : vector<256x128xf32> to vector<16x16x128xf32>
    %c0_63 = arith.constant 0 : index
    %c1_64 = arith.constant 1 : index
    %c0_65 = arith.constant 0 : index
    %c0_66 = arith.constant 0 : index
    %c0_67 = arith.constant 0 : index
    %48 = vector.load %arg5[%c0_63, %c1_64, %c0_65, %c0_66, %c0_67] : memref<1x4x16x16x128xf32, #tpu.memory_space<vmem>>, vector<1x1x16x16x128xf32>
    %49 = vector.shape_cast %48 : vector<1x1x16x16x128xf32> to vector<16x16x128xf32>
    %50 = vector.shape_cast %47 : vector<16x16x128xf32> to vector<1x1x16x16x128xf32>
    tpu.vector_store %arg5[%c0_63, %c1_64, %c0_65, %c0_66, %c0_67], %50 {strides = array<i32>} : memref<1x4x16x16x128xf32, #tpu.memory_space<vmem>>, vector<1x1x16x16x128xf32>,
    %c0_68 = arith.constant 0 : index
    %c0_69 = arith.constant 0 : index
    %c1_70 = arith.constant 1 : index
    %c0_71 = arith.constant 0 : index
    %c0_72 = arith.constant 0 : index
    %51 = vector.load %arg2[%c0_68, %c0_69, %c1_70, %c0_71, %c0_72] : memref<1x1x18x18x128xf32, #tpu.memory_space<vmem>>, vector<1x1x16x16x128xf32>
    %52 = vector.shape_cast %51 : vector<1x1x16x16x128xf32> to vector<16x16x128xf32>
    %c0_73 = arith.constant 0 : index
    %c0_74 = arith.constant 0 : index
    %c1_75 = arith.constant 1 : index
    %c1_76 = arith.constant 1 : index
    %c0_77 = arith.constant 0 : index
    %53 = vector.load %arg2[%c0_73, %c0_74, %c1_75, %c1_76, %c0_77] : memref<1x1x18x18x128xf32, #tpu.memory_space<vmem>>, vector<1x1x16x16x128xf32>
    %54 = vector.shape_cast %53 : vector<1x1x16x16x128xf32> to vector<16x16x128xf32>
    %55 = tpu.concatenate %52, %54 in 2 : vector<16x16x128xf32>, vector<16x16x128xf32> -> vector<16x16x256xf32>
    %56 = vector.shape_cast %55 : vector<16x16x256xf32> to vector<256x256xf32>
    %c2_78 = arith.constant 2 : index
    %c0_79 = arith.constant 0 : index
    %c0_80 = arith.constant 0 : index
    %c0_81 = arith.constant 0 : index
    %57 = vector.load %arg3[%c2_78, %c0_79, %c0_80, %c0_81] : memref<4x2x256x128xf32, #tpu.memory_space<vmem>>, vector<1x1x256x128xf32>
    %58 = vector.shape_cast %57 : vector<1x1x256x128xf32> to vector<256x128xf32>
    %cst_82 = arith.constant dense<0.000000e+00> : vector<256x128xf32>
    %59 = tpu.matmul %56, %58, %cst_82 {dimension_numbers = #tpu.dot_dimension_numbers<[1], [0], [0], [1], [0, 0, 1, 1], [], []>} : vector<256x256xf32>, vector<256x128xf32>, vector<256x128xf32> -> vector<256x128xf32>
    %c0_83 = arith.constant 0 : index
    %c0_84 = arith.constant 0 : index
    %c2_85 = arith.constant 2 : index
    %c0_86 = arith.constant 0 : index
    %c0_87 = arith.constant 0 : index
    %60 = vector.load %arg2[%c0_83, %c0_84, %c2_85, %c0_86, %c0_87] : memref<1x1x18x18x128xf32, #tpu.memory_space<vmem>>, vector<1x1x16x16x128xf32>
    %61 = vector.shape_cast %60 : vector<1x1x16x16x128xf32> to vector<16x16x128xf32>
    %c0_88 = arith.constant 0 : index
    %c0_89 = arith.constant 0 : index
    %c2_90 = arith.constant 2 : index
    %c1_91 = arith.constant 1 : index
    %c0_92 = arith.constant 0 : index
    %62 = vector.load %arg2[%c0_88, %c0_89, %c2_90, %c1_91, %c0_92] : memref<1x1x18x18x128xf32, #tpu.memory_space<vmem>>, vector<1x1x16x16x128xf32>
    %63 = vector.shape_cast %62 : vector<1x1x16x16x128xf32> to vector<16x16x128xf32>
    %64 = tpu.concatenate %61, %63 in 2 : vector<16x16x128xf32>, vector<16x16x128xf32> -> vector<16x16x256xf32>
    %65 = vector.shape_cast %64 : vector<16x16x256xf32> to vector<256x256xf32>
    %c2_93 = arith.constant 2 : index
    %c1_94 = arith.constant 1 : index
    %c0_95 = arith.constant 0 : index
    %c0_96 = arith.constant 0 : index
    %66 = vector.load %arg3[%c2_93, %c1_94, %c0_95, %c0_96] : memref<4x2x256x128xf32, #tpu.memory_space<vmem>>, vector<1x1x256x128xf32>
    %67 = vector.shape_cast %66 : vector<1x1x256x128xf32> to vector<256x128xf32>
    %cst_97 = arith.constant dense<0.000000e+00> : vector<256x128xf32>
    %68 = tpu.matmul %65, %67, %cst_97 {dimension_numbers = #tpu.dot_dimension_numbers<[1], [0], [0], [1], [0, 0, 1, 1], [], []>} : vector<256x256xf32>, vector<256x128xf32>, vector<256x128xf32> -> vector<256x128xf32>
    %69 = arith.addf %59, %68 : vector<256x128xf32>
    %70 = vector.broadcast %0 : vector<1x128xf32> to vector<256x128xf32>
    %71 = arith.addf %69, %70 : vector<256x128xf32>
    %72 = vector.shape_cast %71 : vector<256x128xf32> to vector<16x16x128xf32>
    %c0_98 = arith.constant 0 : index
    %c2_99 = arith.constant 2 : index
    %c0_100 = arith.constant 0 : index
    %c0_101 = arith.constant 0 : index
    %c0_102 = arith.constant 0 : index
    %73 = vector.load %arg5[%c0_98, %c2_99, %c0_100, %c0_101, %c0_102] : memref<1x4x16x16x128xf32, #tpu.memory_space<vmem>>, vector<1x1x16x16x128xf32>
    %74 = vector.shape_cast %73 : vector<1x1x16x16x128xf32> to vector<16x16x128xf32>
    %75 = vector.shape_cast %72 : vector<16x16x128xf32> to vector<1x1x16x16x128xf32>
    tpu.vector_store %arg5[%c0_98, %c2_99, %c0_100, %c0_101, %c0_102], %75 {strides = array<i32>} : memref<1x4x16x16x128xf32, #tpu.memory_space<vmem>>, vector<1x1x16x16x128xf32>,
    %c0_103 = arith.constant 0 : index
    %c0_104 = arith.constant 0 : index
    %c1_105 = arith.constant 1 : index
    %c1_106 = arith.constant 1 : index
    %c0_107 = arith.constant 0 : index
    %76 = vector.load %arg2[%c0_103, %c0_104, %c1_105, %c1_106, %c0_107] : memref<1x1x18x18x128xf32, #tpu.memory_space<vmem>>, vector<1x1x16x16x128xf32>
    %77 = vector.shape_cast %76 : vector<1x1x16x16x128xf32> to vector<16x16x128xf32>
    %c0_108 = arith.constant 0 : index
    %c0_109 = arith.constant 0 : index
    %c1_110 = arith.constant 1 : index
    %c2_111 = arith.constant 2 : index
    %c0_112 = arith.constant 0 : index
    %78 = vector.load %arg2[%c0_108, %c0_109, %c1_110, %c2_111, %c0_112] : memref<1x1x18x18x128xf32, #tpu.memory_space<vmem>>, vector<1x1x16x16x128xf32>
    %79 = vector.shape_cast %78 : vector<1x1x16x16x128xf32> to vector<16x16x128xf32>
    %80 = tpu.concatenate %77, %79 in 2 : vector<16x16x128xf32>, vector<16x16x128xf32> -> vector<16x16x256xf32>
    %81 = vector.shape_cast %80 : vector<16x16x256xf32> to vector<256x256xf32>
    %c3 = arith.constant 3 : index
    %c0_113 = arith.constant 0 : index
    %c0_114 = arith.constant 0 : index
    %c0_115 = arith.constant 0 : index
    %82 = vector.load %arg3[%c3, %c0_113, %c0_114, %c0_115] : memref<4x2x256x128xf32, #tpu.memory_space<vmem>>, vector<1x1x256x128xf32>
    %83 = vector.shape_cast %82 : vector<1x1x256x128xf32> to vector<256x128xf32>
    %cst_116 = arith.constant dense<0.000000e+00> : vector<256x128xf32>
    %84 = tpu.matmul %81, %83, %cst_116 {dimension_numbers = #tpu.dot_dimension_numbers<[1], [0], [0], [1], [0, 0, 1, 1], [], []>} : vector<256x256xf32>, vector<256x128xf32>, vector<256x128xf32> -> vector<256x128xf32>
    %c0_117 = arith.constant 0 : index
    %c0_118 = arith.constant 0 : index
    %c2_119 = arith.constant 2 : index
    %c1_120 = arith.constant 1 : index
    %c0_121 = arith.constant 0 : index
    %85 = vector.load %arg2[%c0_117, %c0_118, %c2_119, %c1_120, %c0_121] : memref<1x1x18x18x128xf32, #tpu.memory_space<vmem>>, vector<1x1x16x16x128xf32>
    %86 = vector.shape_cast %85 : vector<1x1x16x16x128xf32> to vector<16x16x128xf32>
    %c0_122 = arith.constant 0 : index
    %c0_123 = arith.constant 0 : index
    %c2_124 = arith.constant 2 : index
    %c2_125 = arith.constant 2 : index
    %c0_126 = arith.constant 0 : index
    %87 = vector.load %arg2[%c0_122, %c0_123, %c2_124, %c2_125, %c0_126] : memref<1x1x18x18x128xf32, #tpu.memory_space<vmem>>, vector<1x1x16x16x128xf32>
    %88 = vector.shape_cast %87 : vector<1x1x16x16x128xf32> to vector<16x16x128xf32>
    %89 = tpu.concatenate %86, %88 in 2 : vector<16x16x128xf32>, vector<16x16x128xf32> -> vector<16x16x256xf32>
    %90 = vector.shape_cast %89 : vector<16x16x256xf32> to vector<256x256xf32>
    %c3_127 = arith.constant 3 : index
    %c1_128 = arith.constant 1 : index
    %c0_129 = arith.constant 0 : index
    %c0_130 = arith.constant 0 : index
    %91 = vector.load %arg3[%c3_127, %c1_128, %c0_129, %c0_130] : memref<4x2x256x128xf32, #tpu.memory_space<vmem>>, vector<1x1x256x128xf32>
    %92 = vector.shape_cast %91 : vector<1x1x256x128xf32> to vector<256x128xf32>
    %cst_131 = arith.constant dense<0.000000e+00> : vector<256x128xf32>
    %93 = tpu.matmul %90, %92, %cst_131 {dimension_numbers = #tpu.dot_dimension_numbers<[1], [0], [0], [1], [0, 0, 1, 1], [], []>} : vector<256x256xf32>, vector<256x128xf32>, vector<256x128xf32> -> vector<256x128xf32>
    %94 = arith.addf %84, %93 : vector<256x128xf32>
    %95 = vector.broadcast %0 : vector<1x128xf32> to vector<256x128xf32>
    %96 = arith.addf %94, %95 : vector<256x128xf32>
    %97 = vector.shape_cast %96 : vector<256x128xf32> to vector<16x16x128xf32>
    %c0_132 = arith.constant 0 : index
    %c3_133 = arith.constant 3 : index
    %c0_134 = arith.constant 0 : index
    %c0_135 = arith.constant 0 : index
    %c0_136 = arith.constant 0 : index
    %98 = vector.load %arg5[%c0_132, %c3_133, %c0_134, %c0_135, %c0_136] : memref<1x4x16x16x128xf32, #tpu.memory_space<vmem>>, vector<1x1x16x16x128xf32>
    %99 = vector.shape_cast %98 : vector<1x1x16x16x128xf32> to vector<16x16x128xf32>
    %100 = vector.shape_cast %97 : vector<16x16x128xf32> to vector<1x1x16x16x128xf32>
    tpu.vector_store %arg5[%c0_132, %c3_133, %c0_134, %c0_135, %c0_136], %100 {strides = array<i32>} : memref<1x4x16x16x128xf32, #tpu.memory_space<vmem>>, vector<1x1x16x16x128xf32>,
    return
  }
  func.func @transform_0(%arg0: i32, %arg1: i32) -> (i32, i32, i32, i32, i32) {
    %c0_i32 = arith.constant 0 : i32
    %c0_i32_0 = arith.constant 0 : i32
    %c0_i32_1 = arith.constant 0 : i32
    %c0_i32_2 = arith.constant 0 : i32
    return %arg0, %arg1, %c0_i32, %c0_i32_0, %c0_i32_1 : i32, i32, i32, i32, i32
  }
  func.func @transform_1(%arg0: i32, %arg1: i32) -> (i32, i32, i32, i32) {
    %c0_i32 = arith.constant 0 : i32
    %c0_i32_0 = arith.constant 0 : i32
    %c0_i32_1 = arith.constant 0 : i32
    %c0_i32_2 = arith.constant 0 : i32
    %c0_i32_3 = arith.constant 0 : i32
    return %c0_i32, %c0_i32_0, %c0_i32_1, %c0_i32_2 : i32, i32, i32, i32
  }
  func.func @transform_2(%arg0: i32, %arg1: i32) -> (i32, i32) {
    %c0_i32 = arith.constant 0 : i32
    %c0_i32_0 = arith.constant 0 : i32
    %c0_i32_1 = arith.constant 0 : i32
    return %c0_i32, %c0_i32_0 : i32, i32
  }
  func.func @transform_3(%arg0: i32, %arg1: i32) -> (i32, i32, i32, i32, i32) {
    %c0_i32 = arith.constant 0 : i32
    %c0_i32_0 = arith.constant 0 : i32
    %c0_i32_1 = arith.constant 0 : i32
    %c0_i32_2 = arith.constant 0 : i32
    return %arg0, %c0_i32, %arg1, %c0_i32_0, %c0_i32_1 : i32, i32, i32, i32, i32
  }
}

</mosaic_0001>

<bundles_post_ra>
// kernel: tpu_custom_call.1
= control target key start
LH: loop header
LB: loop body
LE: loop exit
PB: predicated region body
PF: predicated region fallthrough
CT: control target
= control target key end

     0   :  { %8 = vsyncpa [#allocation3], 0  ;;  %s5380_s0 = inlined_call_operand.vmem [shape: f32[2,1,18,18,128], index: 0, kind: input, shape index: {}]   ;;  %s5381_s1 = inlined_call_operand.hbm [shape: f32[4,2,256,128], index: 1, kind: input, shape index: {}]   ;;  %s5382_s2 = inlined_call_operand.vmem [shape: f32[1,128], index: 2, kind: input, shape index: {}]   ;;  %s5383_s3 = inlined_call_operand.hbm [shape: f32[2,4,16,16,128], index: 3, kind: output, shape index: {}]  }
   0x1   :  { %9 = vsyncpa [#allocation4], 0 }
   0x2   :  { %11 = vsyncpa [#allocation4 + $0x1], 0  ;;  %s4260_s12 = smov 0   ;;  %s4262_s13 = smov 0  }
   0x3   :  { %s4264_s14 = smov 0   ;;  %s4266_s15 = smov 0  }
   0x4   :  { %s4268_s16 = smov 0   ;;  %s4270_s17 = smov 0  }
   0x5 LB: > { %s3167_s18 = sadd.s32 4294967295, %s4231_s17   ;;  %s3168_s19 = sadd.s32 4294967294, %s4231_s17   ;;  %s4231_s17 = sphi %s4270_s17, %s17_s17   ;;  %s4227_s16 = sphi %s4268_s16, %s5401_s16   ;;  %s4223_s15 = sphi %s4266_s15, %s5400_s15   ;;  %s4219_s14 = sphi %s4264_s14, %s5399_s14   ;;  %s4215_s13 = sphi %s4262_s13, %s5398_s13   ;;  %s4211_s12 = sphi %s4260_s12, %s5397_s12  }
   0x6   : > { %s29_s20 = sadd.s32 1, %s4227_s16  ;;  %s108_s21 = sadd.s32 1, %s4219_s14 }
   0x7   : > { %p31_p0 = scmp.ge.s32.totalorder %s29_s20, 2  ;;  %p118_p1 = scmp.ne.s32.totalorder %s4219_s14, %s4215_s13 }
   0x8   : > { %p119_p2 = scmp.eq.s32.totalorder %s3167_s18, 1  ;;  %p124_p3 = scmp.ne.s32.totalorder %s4215_s13, %s4211_s12 }
   0x9   : > { %s5403_s20 = smov (%p31_p0, %s29_s20), 0  ;;  %p125_p5 = scmp.eq.s32.totalorder %s3168_s19, 1 }
   0xa   : > { %p4300_p4 = por %p119_p2, %p118_p1  ;;  %s103_s23 = ssub.s32 %s4227_s16, %s5403_s20 }
   0xb   : > { %p3169_p6 = scmp.ge.s32.totalorder %s4231_s17, 1  ;;  %p106_p7 = scmp.eq.s32.totalorder %s103_s23, 0 }
   0xc   : > { %s5388_s22 = scalar_select %p4300_p4, 1, 0 }
   0xd   : > { %p4307_p8 = por %p125_p5, %p124_p3  ;;  %p132_p9 = scmp.lt.s32.totalorder %s4231_s17, 3 }
   0xe   : > { %s4313_s25 = scalar_select %p106_p7, %s4219_s14, %s108_s21  }
   0xf   : > { %s5389_s24 = scalar_select %p4307_p8, 1, 0 }
  0x10   : > { %p4315_p10 = pnand %p3169_p6, %p132_p9  ;;  %p4319_p11 = scmp.eq.s32.totalorder %s3167_s18, 0 }
  0x11   : > { %s4233_s28 = smov [#allocation2]   ;;  %s4121_s6 = scalar_lea.hbm %s5381_s1, 32768 }
  0x12   : > { %s5390_s26 = scalar_select %p4315_p10, 1, 0 }
  0x13   : > { %s5391_s27 = scalar_select %p4319_p11, 1, 0 }
  0x14   : > { %p4054_p12 = pneg %p4315_p10  ;;  %s144_s29 = sshll.u32 %s4233_s28, 4  ;;  %s145_s29 = int_to_ptr.vmem [resolvable:$true] %s144_s29 }
  0x15   : > { %p4122_p0 = scmp.ne.s32.totalorder %s5381_s1, %s4121_s6  ;;  %p4128_p5 = scmp.lt.u32.totalorder %s4121_s6, %s5381_s1 }
  0x16   : > { %p4327_p13 = pnand %p4319_p11, %p4054_p12 }
  0x18   : > { %p4123_p1 = pneg %p4327_p13 }
  0x1a   : > { %p4124_p2 = pnand %p4123_p1, %p4122_p0 }
  0x1c   : > { %p4125_p3 = pneg %p4124_p2 }
  0x1e   : > { %p4130_p6 = pnand %p4128_p5, %p4125_p3 }
  0x20   : > { %4133 = shalt.err (!%p4130_p6)
}
  0x21   : > { %s4134_s11 = scalar_lea.vmem %s145_s29, 32768  ;;  %p4142_p8 = scmp.lt.s32.totalorder %s145_s29, %s145_s29 }
  0x22   : > { %p4135_p7 = scmp.ne.s32.totalorder %s145_s29, %s4134_s11  ;;  %p4143_p4 = scmp.lt.s32.totalorder %s4134_s11, %s4134_s11 }
  0x24   : > { %p4137_p9 = pnand %p4135_p7, %p4123_p1  ;;  %p4144_p11 = por %p4143_p4, %p4142_p8 }
  0x26   : > { %p4138_p12 = pneg %p4137_p9 }
  0x28   : > { %p4145_p10 = pnand %p4144_p11, %p4138_p12 }
  0x2a   : > { %4148 = shalt.err (!%p4145_p10)
}
  0x2b   : > { %s4234_s18 = smov 128   ;;  %s4235_s19 = smov 8  }
  0x2c   : > { %4057 = dma.hbm_to_vmem [thread:$0]  (!%p4327_p13), %s5381_s1, 32768, %s145_s29, [#allocation3], %s4234_s18, %s4234_s18, %s4235_s19  }
  0x2d   : > { %p5393_p0 = scmp.ne.s32.totalorder %s5390_s26, 0 }
  0x2e   : > { %p5394_p2 = scmp.ne.s32.totalorder (!%p5393_p0), %s5391_s27, 0 }
  0x2f   : > { %175 = sbr.rel (%p5393_p0) target bundleno = 861 (0x35d), region = 32 }
  0x36   : > { %4202 = dma.done.wait (%p5394_p2), [#allocation3], 32768  }
  0x37   : > { %4204 = vsyncadd (%p5394_p2), [#allocation3], 4294934528  ;;  %v4236_v0 = vmov 0.0|0.0   ;;  %v376_v1 = vld [vmem:[#allocation2 + $0x100] sm:$0xff]  ;;  %v377_v2 = vld [vmem:[#allocation2 + $0x108] sm:$0xff]  ;;  %p203_p4 = scmp.lt.s32.totalorder %s4223_s15, 1 }
  0x38   : > { %3663 = vmatprep.subr.bf16.mxu0 %v4236_v0  ;;  %3711 = vmatprep.subr.bf16.mxu1 %v4236_v0  ;;  %v278_v3 = vld [vmem:[#allocation2] sm:$0xff]  ;;  %v3664_v4 = vpack.c.bf16 %v377_v2, %v376_v1  ;;  %v279_v5 = vld [vmem:[#allocation2 + $0x8] sm:$0xff]  ;;  %v378_v6 = vld [vmem:[#allocation2 + $0x110] sm:$0xff]  ;;  %s200_s4 = sand.u32 1, %s4215_s13   ;;  %s3662_s19 = sshll.u32 %s4223_s15, 14 }
  0x39   : > { %v379_v7 = vld [vmem:[#allocation2 + $0x118] sm:$0xff]  ;;  %v3712_v8 = vpack.c.bf16 %v279_v5, %v278_v3  ;;  %v280_v9 = vld [vmem:[#allocation2 + $0x10] sm:$0xff]  ;;  %v380_v13 = vld [vmem:[#allocation2 + $0x120] sm:$0xff]  ;;  %s204_s26 = scalar_select %p203_p4, %s4223_s15, 1 }
  0x3a   : > { %v281_v10 = vld [vmem:[#allocation2 + $0x18] sm:$0xff]  ;;  %3665 = vmatpush1.bf16.msra.mxu0 %v3664_v4  ;;  %v3667_v11 = vpack.c.bf16 %v379_v7, %v378_v6  ;;  %v381_v14 = vld [vmem:[#allocation2 + $0x128] sm:$0xff]  ;;  %v282_v15 = vld [vmem:[#allocation2 + $0x20] sm:$0xff]  ;;  %s3174_s5 = sshll.u32 %s200_s4, 10  ;;  %s5334_s15 = scalar_lea.sflag [#allocation4], %s200_s4 }
  0x3b   : > { %3713 = vmatpush1.bf16.msra.mxu1 %v3712_v8  ;;  %3666 = vmatprep.subr.bf16.mxu0 %v4236_v0  ;;  %v3715_v12 = vpack.c.bf16 %v281_v10, %v280_v9  ;;  %v283_v16 = vld [vmem:[#allocation2 + $0x28] sm:$0xff]  ;;  %v3670_v17 = vpack.c.bf16 %v381_v14, %v380_v13  ;;  %v382_v19 = vld [vmem:[#allocation2 + $0x130] sm:$0xff]  ;;  %v383_v20 = vld [vmem:[#allocation2 + $0x138] sm:$0xff]  ;;  %s4047_s27 = smul.u32 432, %s204_s26  ;;  %s4738_s8 = scalar_lea.vmem [#allocation5], %s3174_s5 }
  0x3c   : > { %3714 = vmatprep.subr.bf16.mxu1 %v4236_v0  ;;  %v3718_v18 = vpack.c.bf16 %v283_v16, %v282_v15  ;;  %v284_v21 = vld [vmem:[#allocation2 + $0x30] sm:$0xff]  ;;  %v285_v22 = vld [vmem:[#allocation2 + $0x38] sm:$0xff]  ;;  %v3673_v23 = vpack.c.bf16 %v383_v20, %v382_v19  ;;  %v384_v25 = vld [vmem:[#allocation2 + $0x140] sm:$0xff]  ;;  %s3073_s21 = sshll.u32 %s4738_s8, 4  ;;  %p5395_p10 = scmp.ne.s32.totalorder %s5388_s22, 0  ;;  %s5328_s21 = int_to_ptr.vmem [resolvable:$true] %s3073_s21 }
  0x3d   : > { %v3721_v24 = vpack.c.bf16 %v285_v22, %v284_v21  ;;  %v385_v26 = vld [vmem:[#allocation2 + $0x148] sm:$0xff]  ;;  %v286_v27 = vld [vmem:[#allocation2 + $0x40] sm:$0xff]  ;;  %v386_v31 = vld [vmem:[#allocation2 + $0x150] sm:$0xff]  ;;  %s4368_s30 = scalar_lea.vmem %s5380_s0, %s4047_s27  ;;  %s5326_s27 = scalar_lea.hbm %s5383_s3, %s3662_s19 }
  0x3e   : > { %3668 = vmatpush1.bf16.msra.mxu0 %v3667_v11  ;;  %v287_v28 = vld [vmem:[#allocation2 + $0x48] sm:$0xff]  ;;  %v3676_v29 = vpack.c.bf16 %v385_v26, %v384_v25  ;;  %v387_v32 = vld [vmem:[#allocation2 + $0x158] sm:$0xff]  ;;  %v288_v33 = vld [vmem:[#allocation2 + $0x50] sm:$0xff]  ;;  %s4149_s28 = scalar_lea.vmem %s5328_s21, 16384  ;;  %s4237_s29 = smov [#allocation5]  }
  0x3f   : > { %3716 = vmatpush1.bf16.msra.mxu1 %v3715_v12  ;;  %3669 = vmatprep.subr.bf16.mxu0 %v4236_v0  ;;  %v3724_v30 = vpack.c.bf16 %v287_v28, %v286_v27  ;;  %v289_v34 = vld [vmem:[#allocation2 + $0x58] sm:$0xff]  ;;  %v3679_v35 = vpack.c.bf16 %v387_v32, %v386_v31  ;;  %v388_v37 = vld [vmem:[#allocation2 + $0x160] sm:$0xff]  ;;  %v389_v38 = vld [vmem:[#allocation2 + $0x168] sm:$0xff]  ;;  %p4150_p8 = scmp.ne.s32.totalorder %s5328_s21, %s4149_s28 }
  0x40   : > { %3717 = vmatprep.subr.bf16.mxu1 %v4236_v0  ;;  %v3727_v36 = vpack.c.bf16 %v289_v34, %v288_v33  ;;  %v290_v39 = vld [vmem:[#allocation2 + $0x60] sm:$0xff]  ;;  %v291_v40 = vld [vmem:[#allocation2 + $0x68] sm:$0xff]  ;;  %v3682_v43 = vpack.c.bf16 %v389_v38, %v388_v37  ;;  %v390_v45 = vld [vmem:[#allocation2 + $0x170] sm:$0xff] }
  0x41   : > { %v4373_v41 = vld [vmem:[%s4368_s30 + $0x19] sm:$0xff]  ;;  %v4376_v42 = vld [vmem:[%s4368_s30 + $0x1] sm:$0xff]  ;;  %v3730_v44 = vpack.c.bf16 %v291_v40, %v290_v39  ;;  %v292_v47 = vld [vmem:[#allocation2 + $0x70] sm:$0xff]  ;;  %p4151_p11 = pnand %p4150_p8, %p5395_p10 }
  0x42   : > { %3671 = vmatpush1.bf16.msra.mxu0 %v3670_v17  ;;  %472 = vmatprep.mubr.f32.mxu0 %v4373_v41  ;;  %v391_v46 = vld [vmem:[#allocation2 + $0x178] sm:$0xff]  ;;  %v392_v51 = vld [vmem:[#allocation2 + $0x180] sm:$0xff]  ;;  %v393_v52 = vld [vmem:[#allocation2 + $0x188] sm:$0xff] }
  0x43   : > { %3719 = vmatpush1.bf16.msra.mxu1 %v3718_v18  ;;  %3672 = vmatprep.subr.bf16.mxu0 %v4236_v0  ;;  %v293_v48 = vld [vmem:[#allocation2 + $0x78] sm:$0xff]  ;;  %v3685_v49 = vpack.c.bf16 %v391_v46, %v390_v45  ;;  %v294_v53 = vld [vmem:[#allocation2 + $0x80] sm:$0xff]  ;;  %v295_v54 = vld [vmem:[#allocation2 + $0x88] sm:$0xff]  ;;  %v3688_v55 = vpack.c.bf16 %v393_v52, %v392_v51  ;;  %p4152_p13 = pneg %p4151_p11 }
  0x44   : > { %3720 = vmatprep.subr.bf16.mxu1 %v4236_v0  ;;  %697 = vmatprep.mubr.f32.mxu1 %v4376_v42  ;;  %v3733_v50 = vpack.c.bf16 %v293_v48, %v292_v47  ;;  %v3736_v56 = vpack.c.bf16 %v295_v54, %v294_v53  ;;  %v394_v57 = vld [vmem:[#allocation2 + $0x190] sm:$0xff]  ;;  %v395_v58 = vld [vmem:[#allocation2 + $0x198] sm:$0xff]  ;;  %v396_v63 = vld [vmem:[#allocation2 + $0x1a0] sm:$0xff] }
  0x45   : > { %v296_v59 = vld [vmem:[#allocation2 + $0x90] sm:$0xff]  ;;  %v297_v60 = vld [vmem:[#allocation2 + $0x98] sm:$0xff]  ;;  %v3691_v61 = vpack.c.bf16 %v395_v58, %v394_v57  ;;  %v397_v1 = vld [vmem:[#allocation2 + $0x1a8] sm:$0xff] }
  0x46   : > { %3674 = vmatpush1.bf16.msra.mxu0 %v3673_v23  ;;  %v3739_v62 = vpack.c.bf16 %v297_v60, %v296_v59  ;;  %v298_v2 = vld [vmem:[#allocation2 + $0xa0] sm:$0xff]  ;;  %v299_v3 = vld [vmem:[#allocation2 + $0xa8] sm:$0xff]  ;;  %v3694_v4 = vpack.c.bf16 %v397_v1, %v396_v63  ;;  %v398_v6 = vld [vmem:[#allocation2 + $0x1b0] sm:$0xff] }
  0x47   : > { %3722 = vmatpush1.bf16.msra.mxu1 %v3721_v24  ;;  %3675 = vmatprep.subr.bf16.mxu0 %v4236_v0  ;;  %v3742_v5 = vpack.c.bf16 %v299_v3, %v298_v2  ;;  %v399_v7 = vld [vmem:[#allocation2 + $0x1b8] sm:$0xff]  ;;  %v300_v8 = vld [vmem:[#allocation2 + $0xb0] sm:$0xff]  ;;  %v400_v12 = vld [vmem:[#allocation2 + $0x1c0] sm:$0xff] }
  0x48   : > { %3723 = vmatprep.subr.bf16.mxu1 %v4236_v0  ;;  %v301_v9 = vld [vmem:[#allocation2 + $0xb8] sm:$0xff]  ;;  %v3697_v10 = vpack.c.bf16 %v399_v7, %v398_v6  ;;  %v401_v13 = vld [vmem:[#allocation2 + $0x1c8] sm:$0xff]  ;;  %v302_v14 = vld [vmem:[#allocation2 + $0xc0] sm:$0xff] }
  0x49   : > { %v3745_v11 = vpack.c.bf16 %v301_v9, %v300_v8  ;;  %v303_v15 = vld [vmem:[#allocation2 + $0xc8] sm:$0xff]  ;;  %v3700_v16 = vpack.c.bf16 %v401_v13, %v400_v12  ;;  %v402_v18 = vld [vmem:[#allocation2 + $0x1d0] sm:$0xff]  ;;  %v403_v19 = vld [vmem:[#allocation2 + $0x1d8] sm:$0xff] }
  0x4a   : > { %3677 = vmatpush1.bf16.msra.mxu0 %v3676_v29  ;;  %v3748_v17 = vpack.c.bf16 %v303_v15, %v302_v14  ;;  %v304_v20 = vld [vmem:[#allocation2 + $0xd0] sm:$0xff]  ;;  %v305_v21 = vld [vmem:[#allocation2 + $0xd8] sm:$0xff]  ;;  %v3703_v22 = vpack.c.bf16 %v403_v19, %v402_v18  ;;  %v404_v24 = vld [vmem:[#allocation2 + $0x1e0] sm:$0xff] }
  0x4b   : > { %3725 = vmatpush1.bf16.msra.mxu1 %v3724_v30  ;;  %3678 = vmatprep.subr.bf16.mxu0 %v4236_v0  ;;  %v3751_v23 = vpack.c.bf16 %v305_v21, %v304_v20  ;;  %v405_v25 = vld [vmem:[#allocation2 + $0x1e8] sm:$0xff]  ;;  %v306_v26 = vld [vmem:[#allocation2 + $0xe0] sm:$0xff]  ;;  %v406_v30 = vld [vmem:[#allocation2 + $0x1f0] sm:$0xff] }
  0x4c   : > { %3726 = vmatprep.subr.bf16.mxu1 %v4236_v0  ;;  %v307_v27 = vld [vmem:[#allocation2 + $0xe8] sm:$0xff]  ;;  %v3706_v28 = vpack.c.bf16 %v405_v25, %v404_v24  ;;  %v407_v31 = vld [vmem:[#allocation2 + $0x1f8] sm:$0xff]  ;;  %v308_v32 = vld [vmem:[#allocation2 + $0xf0] sm:$0xff] }
  0x4d   : > { %v3754_v29 = vpack.c.bf16 %v307_v27, %v306_v26  ;;  %v309_v33 = vld [vmem:[#allocation2 + $0xf8] sm:$0xff]  ;;  %v3709_v34 = vpack.c.bf16 %v407_v31, %v406_v30  ;;  %v1091_v37 = vld [vmem:[#allocation2 + $0x308] sm:$0xff]  ;;  %v993_v38 = vld [vmem:[#allocation2 + $0x200] sm:$0xff] }
  0x4e   : > { %3680 = vmatpush1.bf16.msra.mxu0 %v3679_v35  ;;  %v3757_v35 = vpack.c.bf16 %v309_v33, %v308_v32  ;;  %v994_v39 = vld [vmem:[#allocation2 + $0x208] sm:$0xff]  ;;  %v3176_v40 = vld [vmem:[%s4368_s30 + $0x18] sm:$0xff]  ;;  %v1092_v47 = vld [vmem:[#allocation2 + $0x310] sm:$0xff] }
  0x4f   : > { %3728 = vmatpush1.bf16.msra.mxu1 %v3727_v36  ;;  %3681 = vmatprep.subr.bf16.mxu0 %v4236_v0  ;;  %v1090_v36 = vld [vmem:[#allocation2 + $0x300] sm:$0xff]  ;;  %v3808_v45 = vpack.c.bf16 %v994_v39, %v993_v38  ;;  %v1093_v48 = vld [vmem:[#allocation2 + $0x318] sm:$0xff]  ;;  %v215_v53 = vld [vmem:[%s4368_s30 + $0x8] sm:$0xff] }
  0x50   : > { %3729 = vmatprep.subr.bf16.mxu1 %v4236_v0  ;;  %v4405_v46 = vld [vmem:[%s4368_s30 + $0x21] sm:$0xff]  ;;  %v996_v51 = vld [vmem:[#allocation2 + $0x218] sm:$0xff]  ;;  %v1096_v2 = vld [vmem:[#allocation2 + $0x330] sm:$0xff] }
  0x51   : > { %v3177_v52 = vld [vmem:[%s4368_s30 + $0x20] sm:$0xff]  ;;  %v4414_v54 = vld [vmem:[%s4368_s30 + $0x31] sm:$0xff]  ;;  %v1095_v58 = vld [vmem:[#allocation2 + $0x328] sm:$0xff] }
  0x52   : > { %3683 = vmatpush1.bf16.msra.mxu0 %v3682_v43  ;;  %v3760_v43 = vpack.c.bf16 %v1091_v37, %v1090_v36  ;;  %v1094_v57 = vld [vmem:[#allocation2 + $0x320] sm:$0xff]  ;;  %v998_v60 = vld [vmem:[#allocation2 + $0x228] sm:$0xff]  ;;  %v1097_v3 = vld [vmem:[#allocation2 + $0x338] sm:$0xff] }
  0x53   : > { %3731 = vmatpush1.bf16.msra.mxu1 %v3730_v44  ;;  %3684 = vmatprep.subr.bf16.mxu0 %v4236_v0  ;;  %v214_v44 = vld [vmem:[%s4368_s30] sm:$0xff]  ;;  %v3766_v63 = vpack.c.bf16 %v1095_v58, %v1094_v57  ;;  %v3179_v6 = vld [vmem:[%s4368_s30 + $0x38] sm:$0xff]  ;;  %v4431_v7 = vld [vmem:[%s4368_s30 + $0x49] sm:$0xff]  ;;  %v3769_v8 = vpack.c.bf16 %v1097_v3, %v1096_v2 }
  0x54   : > { %3732 = vmatprep.subr.bf16.mxu1 %v4236_v0  ;;  %v997_v59 = vld [vmem:[#allocation2 + $0x220] sm:$0xff]  ;;  %v1002_v13 = vld [vmem:[#allocation2 + $0x248] sm:$0xff]  ;;  %v4439_v15 = vld [vmem:[%s4368_s30 + $0x51] sm:$0xff] }
  0x55   : > { %v3814_v1 = vpack.c.bf16 %v998_v60, %v997_v59  ;;  %v1001_v12 = vld [vmem:[#allocation2 + $0x240] sm:$0xff]  ;;  %v3180_v14 = vld [vmem:[%s4368_s30 + $0x48] sm:$0xff]  ;;  %v1100_v18 = vld [vmem:[#allocation2 + $0x350] sm:$0xff] }
  0x56   : > { %3686 = vmatpush1.bf16.msra.mxu0 %v3685_v49  ;;  %v4408_v49 = vld [vmem:[%s4368_s30 + $0x9] sm:$0xff]  ;;  %v1101_v19 = vld [vmem:[#allocation2 + $0x358] sm:$0xff]  ;;  %v1102_v26 = vld [vmem:[#allocation2 + $0x360] sm:$0xff] }
  0x57   : > { %3734 = vmatpush1.bf16.msra.mxu1 %v3733_v50  ;;  %3687 = vmatprep.subr.bf16.mxu0 %v4236_v0  ;;  %v995_v50 = vld [vmem:[#allocation2 + $0x210] sm:$0xff]  ;;  %v1004_v21 = vld [vmem:[#allocation2 + $0x258] sm:$0xff]  ;;  %v3775_v24 = vpack.c.bf16 %v1101_v19, %v1100_v18  ;;  %v1103_v27 = vld [vmem:[#allocation2 + $0x368] sm:$0xff] }
  0x58   : > { %3735 = vmatprep.subr.bf16.mxu1 %v4236_v0  ;;  %v1003_v20 = vld [vmem:[#allocation2 + $0x250] sm:$0xff]  ;;  %v3182_v30 = vld [vmem:[%s4368_s30 + $0x60] sm:$0xff]  ;;  %v3778_v32 = vpack.c.bf16 %v1103_v27, %v1102_v26  ;;  %v1008_v37 = vld [vmem:[#allocation2 + $0x278] sm:$0xff] }
  0x59   : > { %v3823_v25 = vpack.c.bf16 %v1004_v21, %v1003_v20  ;;  %v4455_v31 = vld [vmem:[%s4368_s30 + $0x69] sm:$0xff]  ;;  %v4463_v39 = vld [vmem:[%s4368_s30 + $0x79] sm:$0xff]  ;;  %v4479_v60 = vld [vmem:[%s4368_s30 + $0x91] sm:$0xff] }
  0x5a   : > { %3689 = vmatpush1.bf16.msra.mxu0 %v3688_v55  ;;  %v3763_v55 = vpack.c.bf16 %v1093_v48, %v1092_v47  ;;  %v1007_v36 = vld [vmem:[#allocation2 + $0x270] sm:$0xff]  ;;  %v3183_v38 = vld [vmem:[%s4368_s30 + $0x68] sm:$0xff]  ;;  %v1009_v47 = vld [vmem:[#allocation2 + $0x280] sm:$0xff] }
  0x5b   : > { %3737 = vmatpush1.bf16.msra.mxu1 %v3736_v56  ;;  %3690 = vmatprep.subr.bf16.mxu0 %v4236_v0  ;;  %v3811_v56 = vpack.c.bf16 %v996_v51, %v995_v50  ;;  %v1010_v48 = vld [vmem:[#allocation2 + $0x288] sm:$0xff]  ;;  %v3184_v50 = vld [vmem:[%s4368_s30 + $0x78] sm:$0xff]  ;;  %v1011_v57 = vld [vmem:[#allocation2 + $0x290] sm:$0xff] }
  0x5c   : > { %3738 = vmatprep.subr.bf16.mxu1 %v4236_v0  ;;  %v4471_v51 = vld [vmem:[%s4368_s30 + $0x81] sm:$0xff]  ;;  %v1012_v58 = vld [vmem:[#allocation2 + $0x298] sm:$0xff] }
  0x5d   : > { %v3185_v59 = vld [vmem:[%s4368_s30 + $0x80] sm:$0xff]  ;;  %v1111_v2 = vld [vmem:[#allocation2 + $0x3a8] sm:$0xff] }
  0x5e   : > { %3692 = vmatpush1.bf16.msra.mxu0 %v3691_v61  ;;  %v3178_v61 = vld [vmem:[%s4368_s30 + $0x30] sm:$0xff]  ;;  %v1013_v3 = vld [vmem:[#allocation2 + $0x2a0] sm:$0xff]  ;;  %v1115_v20 = vld [vmem:[#allocation2 + $0x3c8] sm:$0xff] }
  0x5f   : > { %3740 = vmatpush1.bf16.msra.mxu1 %v3739_v62  ;;  %3693 = vmatprep.subr.bf16.mxu0 %v4236_v0  ;;  %v4423_v62 = vld [vmem:[%s4368_s30 + $0x39] sm:$0xff] }
  0x60   : > { %3741 = vmatprep.subr.bf16.mxu1 %v4236_v0  ;;  %v1114_v19 = vld [vmem:[#allocation2 + $0x3c0] sm:$0xff] }
  0x61   : > { %v1017_v21 = vld [vmem:[#allocation2 + $0x2c0] sm:$0xff]  ;;  %v3796_v26 = vpack.c.bf16 %v1115_v20, %v1114_v19  ;;  %v3200_v19 = vld [vmem:[%s4368_s30 + $0x138] sm:$0xff] }
  0x62   : > { %3695 = vmatpush1.bf16.msra.mxu0 %v3694_v4  ;;  %v999_v4 = vld [vmem:[#allocation2 + $0x230] sm:$0xff]  ;;  %v4585_v20 = vld [vmem:[%s4368_s30 + $0x141] sm:$0xff] }
  0x63   : > { %3743 = vmatpush1.bf16.msra.mxu1 %v3742_v5  ;;  %3696 = vmatprep.subr.bf16.mxu0 %v4236_v0  ;;  %v1000_v5 = vld [vmem:[#allocation2 + $0x238] sm:$0xff] }
  0x64   : > { %3744 = vmatprep.subr.bf16.mxu1 %v4236_v0  ;;  %v3817_v9 = vpack.c.bf16 %v1000_v5, %v999_v4  ;;  %v1014_v4 = vld [vmem:[#allocation2 + $0x2a8] sm:$0xff]  ;;  %v3186_v5 = vld [vmem:[%s4368_s30 + $0x90] sm:$0xff] }
  0x66   : > { %3698 = vmatpush1.bf16.msra.mxu0 %v3697_v10  ;;  %v1098_v10 = vld [vmem:[#allocation2 + $0x340] sm:$0xff] }
  0x67   : > { %3746 = vmatpush1.bf16.msra.mxu1 %v3745_v11  ;;  %3699 = vmatprep.subr.bf16.mxu0 %v4236_v0  ;;  %v1099_v11 = vld [vmem:[#allocation2 + $0x348] sm:$0xff] }
  0x68   : > { %3747 = vmatprep.subr.bf16.mxu1 %v4236_v0 }
  0x6a   : > { %3701 = vmatpush1.bf16.msra.mxu0 %v3700_v16  ;;  %v3772_v16 = vpack.c.bf16 %v1099_v11, %v1098_v10  ;;  %v1112_v10 = vld [vmem:[#allocation2 + $0x3b0] sm:$0xff]  ;;  %v1113_v11 = vld [vmem:[#allocation2 + $0x3b8] sm:$0xff] }
  0x6b   : > { %3749 = vmatpush1.bf16.msra.mxu1 %v3748_v17  ;;  %3702 = vmatprep.subr.bf16.mxu0 %v4236_v0  ;;  %v3820_v17 = vpack.c.bf16 %v1002_v13, %v1001_v12  ;;  %v1015_v12 = vld [vmem:[#allocation2 + $0x2b0] sm:$0xff]  ;;  %v1016_v13 = vld [vmem:[#allocation2 + $0x2b8] sm:$0xff] }
  0x6c   : > { %3750 = vmatprep.subr.bf16.mxu1 %v4236_v0  ;;  %v3841_v18 = vpack.c.bf16 %v1016_v13, %v1015_v12  ;;  %v4567_v12 = vld [vmem:[%s4368_s30 + $0x121] sm:$0xff] }
  0x6d   : > { %v3198_v13 = vld [vmem:[%s4368_s30 + $0x120] sm:$0xff] }
  0x6e   : > { %3704 = vmatpush1.bf16.msra.mxu0 %v3703_v22  ;;  %v3181_v22 = vld [vmem:[%s4368_s30 + $0x50] sm:$0xff] }
  0x6f   : > { %3752 = vmatpush1.bf16.msra.mxu1 %v3751_v23  ;;  %3705 = vmatprep.subr.bf16.mxu0 %v4236_v0  ;;  %v4447_v23 = vld [vmem:[%s4368_s30 + $0x61] sm:$0xff] }
  0x70   : > { %3753 = vmatprep.subr.bf16.mxu1 %v4236_v0 }
  0x72   : > { %3707 = vmatpush1.bf16.msra.mxu0 %v3706_v28  ;;  %v1005_v28 = vld [vmem:[#allocation2 + $0x260] sm:$0xff] }
  0x73   : > { %3755 = vmatpush1.bf16.msra.mxu1 %v3754_v29  ;;  %3708 = vmatprep.subr.bf16.mxu0 %v4236_v0  ;;  %v1006_v29 = vld [vmem:[#allocation2 + $0x268] sm:$0xff] }
  0x74   : > { %3756 = vmatprep.subr.bf16.mxu1 %v4236_v0  ;;  %v3826_v33 = vpack.c.bf16 %v1006_v29, %v1005_v28  ;;  %v1116_v28 = vld [vmem:[#allocation2 + $0x3d0] sm:$0xff]  ;;  %v1117_v29 = vld [vmem:[#allocation2 + $0x3d8] sm:$0xff] }
  0x76   : > { %3710 = vmatpush1.bf16.msra.mxu0 %v3709_v34  ;;  %v1104_v34 = vld [vmem:[#allocation2 + $0x370] sm:$0xff] }
  0x77   : > { %3758 = vmatpush1.bf16.msra.mxu1 %v3757_v35  ;;  %3759 = vmatprep.subr.bf16.mxu0 %v4236_v0  ;;  %v1105_v35 = vld [vmem:[#allocation2 + $0x378] sm:$0xff] }
  0x78   : > { %3807 = vmatprep.subr.bf16.mxu1 %v4236_v0 }
  0x79   : > { %473 = vmatmul.mubr.f32.vlgmr.msra.gmra.mrb[0].mxu0 %v3176_v40 }
  0x7a   : > { %698 = vmatmul.mubr.f32.vlgmr.msra.gmra.mrb[0].mxu1 %v214_v44  ;;  %3761 = vmatpush1.bf16.msra.mxu0 %v3760_v43  ;;  %v3829_v43 = vpack.c.bf16 %v1008_v37, %v1007_v36  ;;  %v1106_v44 = vld [vmem:[#allocation2 + $0x380] sm:$0xff] }
  0x7b   : > { %3809 = vmatpush1.bf16.msra.mxu1 %v3808_v45  ;;  %477 = vmatprep.mubr.f32.mxu0 %v4405_v46  ;;  %v1107_v45 = vld [vmem:[#allocation2 + $0x388] sm:$0xff]  ;;  %v1118_v37 = vld [vmem:[#allocation2 + $0x3e0] sm:$0xff] }
  0x7c   : > { %702 = vmatprep.mubr.f32.mxu1 %v4408_v49  ;;  %3762 = vmatprep.subr.bf16.mxu0 %v4236_v0 }
  0x7d   : > { %478 = vmatmul.mubr.f32.gmra.mrb[2].mxu0 %v3177_v52  ;;  %3810 = vmatprep.subr.bf16.mxu1 %v4236_v0 }
  0x7e   : > { %703 = vmatmul.mubr.f32.gmra.mrb[2].mxu1 %v215_v53  ;;  %482 = vmatprep.mubr.f32.mxu0 %v4414_v54  ;;  %v3832_v53 = vpack.c.bf16 %v1010_v48, %v1009_v47 }
  0x7f   : > { %707 = vmatprep.mubr.f32.mxu1 %v4373_v41  ;;  %3764 = vmatpush1.bf16.msra.mxu0 %v3763_v55  ;;  %v1108_v55 = vld [vmem:[#allocation2 + $0x390] sm:$0xff] }
  0x80   : > { %3812 = vmatpush1.bf16.msra.mxu1 %v3811_v56  ;;  %3765 = vmatprep.subr.bf16.mxu0 %v4236_v0  ;;  %v1109_v56 = vld [vmem:[#allocation2 + $0x398] sm:$0xff] }
  0x81   : > { %483 = vmatmul.mubr.f32.gmra.mrb[4].mxu0 %v3178_v61  ;;  %3813 = vmatprep.subr.bf16.mxu1 %v4236_v0 }
  0x82   : > { %708 = vmatmul.mubr.f32.gmra.mrb[4].mxu1 %v3176_v40  ;;  %487 = vmatprep.mubr.f32.mxu0 %v4423_v62  ;;  %v3781_v40 = vpack.c.bf16 %v1105_v35, %v1104_v34  ;;  %v4511_v34 = vld [vmem:[%s4368_s30 + $0xc1] sm:$0xff]  ;;  %v3799_v35 = vpack.c.bf16 %v1117_v29, %v1116_v28  ;;  %v4603_v28 = vld [vmem:[%s4368_s30 + $0x169] sm:$0xff] }
  0x83   : > { %712 = vmatprep.mubr.f32.mxu1 %v4405_v46  ;;  %3767 = vmatpush1.bf16.msra.mxu0 %v3766_v63  ;;  %v3835_v63 = vpack.c.bf16 %v1012_v58, %v1011_v57  ;;  %v4527_v57 = vld [vmem:[%s4368_s30 + $0xd9] sm:$0xff]  ;;  %v3204_v29 = vld [vmem:[%s4368_s30 + $0x168] sm:$0xff] }
  0x84   : > { %3815 = vmatpush1.bf16.msra.mxu1 %v3814_v1  ;;  %3768 = vmatprep.subr.bf16.mxu0 %v4236_v0  ;;  %v1110_v1 = vld [vmem:[#allocation2 + $0x3a0] sm:$0xff] }
  0x85   : > { %488 = vmatmul.mubr.f32.gmra.mrb[6].mxu0 %v3179_v6  ;;  %3816 = vmatprep.subr.bf16.mxu1 %v4236_v0 }
  0x86   : > { %713 = vmatmul.mubr.f32.gmra.mrb[6].mxu1 %v3177_v52  ;;  %492 = vmatprep.mubr.f32.mxu0 %v4431_v7  ;;  %v3784_v52 = vpack.c.bf16 %v1107_v45, %v1106_v44  ;;  %v3190_v44 = vld [vmem:[%s4368_s30 + $0xc0] sm:$0xff]  ;;  %v4519_v45 = vld [vmem:[%s4368_s30 + $0xc9] sm:$0xff] }
  0x87   : > { %717 = vmatprep.mubr.f32.mxu1 %v4414_v54  ;;  %3770 = vmatpush1.bf16.msra.mxu0 %v3769_v8  ;;  %v3790_v8 = vpack.c.bf16 %v1111_v2, %v1110_v1  ;;  %v3193_v1 = vld [vmem:[%s4368_s30 + $0xe0] sm:$0xff]  ;;  %v4543_v2 = vld [vmem:[%s4368_s30 + $0xf1] sm:$0xff] }
  0x88   : > { %3818 = vmatpush1.bf16.msra.mxu1 %v3817_v9  ;;  %3771 = vmatprep.subr.bf16.mxu0 %v4236_v0  ;;  %v3838_v9 = vpack.c.bf16 %v1014_v4, %v1013_v3  ;;  %v3194_v3 = vld [vmem:[%s4368_s30 + $0xf0] sm:$0xff]  ;;  %v4549_v4 = vld [vmem:[%s4368_s30 + $0xf9] sm:$0xff] }
  0x89   : > { %493 = vmatmul.mubr.f32.gmra.mrb[8].mxu0 %v3180_v14  ;;  %3819 = vmatprep.subr.bf16.mxu1 %v4236_v0 }
  0x8a   : > { %718 = vmatmul.mubr.f32.gmra.mrb[8].mxu1 %v3178_v61  ;;  %497 = vmatprep.mubr.f32.mxu0 %v4439_v15  ;;  %v3787_v61 = vpack.c.bf16 %v1109_v56, %v1108_v55  ;;  %v1024_v55 = vld [vmem:[#allocation2 + $0x2f8] sm:$0xff]  ;;  %v3191_v56 = vld [vmem:[%s4368_s30 + $0xc8] sm:$0xff] }
  0x8b   : > { %722 = vmatprep.mubr.f32.mxu1 %v4423_v62  ;;  %3773 = vmatpush1.bf16.msra.mxu0 %v3772_v16  ;;  %v4495_v16 = vld [vmem:[%s4368_s30 + $0xa9] sm:$0xff] }
  0x8c   : > { %3821 = vmatpush1.bf16.msra.mxu1 %v3820_v17  ;;  %3774 = vmatprep.subr.bf16.mxu0 %v4236_v0  ;;  %v3793_v17 = vpack.c.bf16 %v1113_v11, %v1112_v10  ;;  %v4561_v10 = vld [vmem:[%s4368_s30 + $0x111] sm:$0xff] }
  0x8d   : > { %498 = vmatmul.mubr.f32.gmra.mrb[10].mxu0 %v3181_v22  ;;  %3822 = vmatprep.subr.bf16.mxu1 %v4236_v0  ;;  %v3197_v11 = vld [vmem:[%s4368_s30 + $0x110] sm:$0xff] }
  0x8e   : > { %723 = vmatmul.mubr.f32.gmra.mrb[10].mxu1 %v3179_v6  ;;  %502 = vmatprep.mubr.f32.mxu0 %v4447_v23  ;;  %v4487_v6 = vld [vmem:[%s4368_s30 + $0x99] sm:$0xff] }
  0x8f   : > { %727 = vmatprep.mubr.f32.mxu1 %v4431_v7  ;;  %3776 = vmatpush1.bf16.msra.mxu0 %v3775_v24  ;;  %v3188_v24 = vld [vmem:[%s4368_s30 + $0xa8] sm:$0xff] }
  0x90   : > { %3824 = vmatpush1.bf16.msra.mxu1 %v3823_v25  ;;  %3777 = vmatprep.subr.bf16.mxu0 %v4236_v0  ;;  %v4503_v25 = vld [vmem:[%s4368_s30 + $0xb1] sm:$0xff] }
  0x91   : > { %503 = vmatmul.mubr.f32.gmra.mrb[12].mxu0 %v3182_v30  ;;  %3825 = vmatprep.subr.bf16.mxu1 %v4236_v0 }
  0x92   : > { %728 = vmatmul.mubr.f32.gmra.mrb[12].mxu1 %v3180_v14  ;;  %507 = vmatprep.mubr.f32.mxu0 %v4455_v31  ;;  %v3187_v14 = vld [vmem:[%s4368_s30 + $0x98] sm:$0xff] }
  0x93   : > { %732 = vmatprep.mubr.f32.mxu1 %v4439_v15  ;;  %3779 = vmatpush1.bf16.msra.mxu0 %v3778_v32  ;;  %v1020_v32 = vld [vmem:[#allocation2 + $0x2d8] sm:$0xff] }
  0x94   : > { %3827 = vmatpush1.bf16.msra.mxu1 %v3826_v33  ;;  %3780 = vmatprep.subr.bf16.mxu0 %v4236_v0  ;;  %v3189_v33 = vld [vmem:[%s4368_s30 + $0xb0] sm:$0xff] }
  0x95   : > { %508 = vmatmul.mubr.f32.gmra.mrb[14].mxu0 %v3183_v38  ;;  %3828 = vmatprep.subr.bf16.mxu1 %v4236_v0 }
  0x96   : > { %733 = vmatmul.mubr.f32.gmra.mrb[14].mxu1 %v3181_v22  ;;  %512 = vmatprep.mubr.f32.mxu0 %v4463_v39  ;;  %v1018_v22 = vld [vmem:[#allocation2 + $0x2c8] sm:$0xff] }
  0x97   : > { %737 = vmatprep.mubr.f32.mxu1 %v4447_v23  ;;  %3782 = vmatpush1.bf16.msra.mxu0 %v3781_v40  ;;  %v3844_v27 = vpack.c.bf16 %v1018_v22, %v1017_v21  ;;  %v1021_v40 = vld [vmem:[#allocation2 + $0x2e0] sm:$0xff]  ;;  %v4591_v22 = vld [vmem:[%s4368_s30 + $0x151] sm:$0xff] }
  0x98   : > { %3830 = vmatpush1.bf16.msra.mxu1 %v3829_v43  ;;  %3783 = vmatprep.subr.bf16.mxu0 %v4236_v0  ;;  %v1022_v43 = vld [vmem:[#allocation2 + $0x2e8] sm:$0xff]  ;;  %v3201_v21 = vld [vmem:[%s4368_s30 + $0x140] sm:$0xff] }
  0x99   : > { %513 = vmatmul.mubr.f32.gmra.mrb[16].mxu0 %v3184_v50  ;;  %3831 = vmatprep.subr.bf16.mxu1 %v4236_v0  ;;  %v3850_v48 = vpack.c.bf16 %v1022_v43, %v1021_v40  ;;  %v1800_v40 = vld [vmem:[#allocation2 + $0x500] sm:$0xff]  ;;  %v1801_v43 = vld [vmem:[#allocation2 + $0x508] sm:$0xff] }
  0x9a   : > { %738 = vmatmul.mubr.f32.gmra.mrb[16].mxu1 %v3182_v30  ;;  %517 = vmatprep.mubr.f32.mxu0 %v4471_v51  ;;  %v1019_v30 = vld [vmem:[#allocation2 + $0x2d0] sm:$0xff] }
  0x9b   : > { %742 = vmatprep.mubr.f32.mxu1 %v4455_v31  ;;  %3785 = vmatpush1.bf16.msra.mxu0 %v3784_v52  ;;  %v3847_v36 = vpack.c.bf16 %v1020_v32, %v1019_v30  ;;  %v1121_v52 = vld [vmem:[#allocation2 + $0x3f8] sm:$0xff]  ;;  %v3205_v32 = vld [vmem:[%s4368_s30 + $0x170] sm:$0xff] }
  0x9c   : > { %3833 = vmatpush1.bf16.msra.mxu1 %v3832_v53  ;;  %3786 = vmatprep.subr.bf16.mxu0 %v4236_v0  ;;  %v1023_v53 = vld [vmem:[#allocation2 + $0x2f0] sm:$0xff] }
  0x9d   : > { %518 = vmatmul.mubr.f32.gmra.mrb[18].mxu0 %v3185_v59  ;;  %3834 = vmatprep.subr.bf16.mxu1 %v4236_v0  ;;  %v4609_v30 = vld [vmem:[%s4368_s30 + $0x171] sm:$0xff] }
  0x9e   : > { %743 = vmatmul.mubr.f32.gmra.mrb[18].mxu1 %v3183_v38  ;;  %522 = vmatprep.mubr.f32.mxu0 %v4479_v60  ;;  %v1119_v38 = vld [vmem:[#allocation2 + $0x3e8] sm:$0xff] }
  0x9f   : > { %747 = vmatprep.mubr.f32.mxu1 %v4463_v39  ;;  %3788 = vmatpush1.bf16.msra.mxu0 %v3787_v61  ;;  %v3802_v47 = vpack.c.bf16 %v1119_v38, %v1118_v37  ;;  %v3192_v61 = vld [vmem:[%s4368_s30 + $0xd8] sm:$0xff]  ;;  %v3207_v37 = vld [vmem:[%s4368_s30 + $0x188] sm:$0xff] }
  0xa0   : > { %3836 = vmatpush1.bf16.msra.mxu1 %v3835_v63  ;;  %3789 = vmatprep.subr.bf16.mxu0 %v4236_v0  ;;  %v4535_v63 = vld [vmem:[%s4368_s30 + $0xe1] sm:$0xff] }
  0xa1   : > { %523 = vmatmul.mubr.f32.gmra.mrb[20].mxu0 %v3186_v5  ;;  %3837 = vmatprep.subr.bf16.mxu1 %v4236_v0  ;;  %v3273_v38 = vld [vmem:[%s4368_s30 + $0x1a] sm:$0xff] }
  0xa2   : > { %748 = vmatmul.mubr.f32.gmra.mrb[20].mxu1 %v3184_v50  ;;  %527 = vmatprep.mubr.f32.mxu0 %v4487_v6  ;;  %v1120_v50 = vld [vmem:[#allocation2 + $0x3f0] sm:$0xff] }
  0xa3   : > { %752 = vmatprep.mubr.f32.mxu1 %v4471_v51  ;;  %3791 = vmatpush1.bf16.msra.mxu0 %v3790_v8  ;;  %v3805_v58 = vpack.c.bf16 %v1121_v52, %v1120_v50  ;;  %v4555_v8 = vld [vmem:[%s4368_s30 + $0x109] sm:$0xff]  ;;  %v3856_v50 = vpack.c.bf16 %v1801_v43, %v1800_v40  ;;  %v1710_v43 = vld [vmem:[#allocation2 + $0x440] sm:$0xff] }
  0xa4   : > { %3839 = vmatpush1.bf16.msra.mxu1 %v3838_v9  ;;  %3792 = vmatprep.subr.bf16.mxu0 %v4236_v0  ;;  %v3196_v9 = vld [vmem:[%s4368_s30 + $0x108] sm:$0xff] }
  0xa5   : > { %528 = vmatmul.mubr.f32.gmra.mrb[22].mxu0 %v3187_v14  ;;  %3840 = vmatprep.subr.bf16.mxu1 %v4236_v0  ;;  %v1809_v40 = vld [vmem:[#allocation2 + $0x548] sm:$0xff] }
  0xa6   : > { %753 = vmatmul.mubr.f32.gmra.mrb[22].mxu1 %v3185_v59  ;;  %532 = vmatprep.mubr.f32.mxu0 %v4495_v16  ;;  %v3853_v59 = vpack.c.bf16 %v1024_v55, %v1023_v53  ;;  %v3274_v53 = vld [vmem:[%s4368_s30 + $0x22] sm:$0xff]  ;;  %v1802_v55 = vld [vmem:[#allocation2 + $0x510] sm:$0xff] }
  0xa7   : > { %757 = vmatprep.mubr.f32.mxu1 %v4479_v60  ;;  %3794 = vmatpush1.bf16.msra.mxu0 %v3793_v17  ;;  %v3199_v17 = vld [vmem:[%s4368_s30 + $0x128] sm:$0xff] }
  0xa8   : > { %3842 = vmatpush1.bf16.msra.mxu1 %v3841_v18  ;;  %3795 = vmatprep.subr.bf16.mxu0 %v4236_v0  ;;  %v4579_v18 = vld [vmem:[%s4368_s30 + $0x139] sm:$0xff] }
  0xa9   : > { %533 = vmatmul.mubr.f32.gmra.mrb[24].mxu0 %v3188_v24  ;;  %3843 = vmatprep.subr.bf16.mxu1 %v4236_v0 }
  0xaa   : > { %758 = vmatmul.mubr.f32.gmra.mrb[24].mxu1 %v3186_v5  ;;  %537 = vmatprep.mubr.f32.mxu0 %v4503_v25  ;;  %v3195_v5 = vld [vmem:[%s4368_s30 + $0xf8] sm:$0xff] }
  0xab   : > { %762 = vmatprep.mubr.f32.mxu1 %v4487_v6  ;;  %3797 = vmatpush1.bf16.msra.mxu0 %v3796_v26  ;;  %v4597_v26 = vld [vmem:[%s4368_s30 + $0x159] sm:$0xff] }
  0xac   : > { %3845 = vmatpush1.bf16.msra.mxu1 %v3844_v27  ;;  %3798 = vmatprep.subr.bf16.mxu0 %v4236_v0  ;;  %v3203_v27 = vld [vmem:[%s4368_s30 + $0x158] sm:$0xff] }
  0xad   : > { %538 = vmatmul.mubr.f32.gmra.mrb[26].mxu0 %v3189_v33  ;;  %3846 = vmatprep.subr.bf16.mxu1 %v4236_v0 }
  0xae   : > { %763 = vmatmul.mubr.f32.gmra.mrb[26].mxu1 %v3187_v14  ;;  %542 = vmatprep.mubr.f32.mxu0 %v4511_v34  ;;  %v4573_v14 = vld [vmem:[%s4368_s30 + $0x129] sm:$0xff] }
  0xaf   : > { %767 = vmatprep.mubr.f32.mxu1 %v4495_v16  ;;  %3800 = vmatpush1.bf16.msra.mxu0 %v3799_v35  ;;  %v3206_v35 = vld [vmem:[%s4368_s30 + $0x180] sm:$0xff] }
  0xb0   : > { %3848 = vmatpush1.bf16.msra.mxu1 %v3847_v36  ;;  %3801 = vmatprep.subr.bf16.mxu0 %v4236_v0  ;;  %v4621_v36 = vld [vmem:[%s4368_s30 + $0x189] sm:$0xff] }
  0xb1   : > { %543 = vmatmul.mubr.f32.gmra.mrb[28].mxu0 %v3190_v44  ;;  %3849 = vmatprep.subr.bf16.mxu1 %v4236_v0 }
  0xb2   : > { %768 = vmatmul.mubr.f32.gmra.mrb[28].mxu1 %v3188_v24  ;;  %547 = vmatprep.mubr.f32.mxu0 %v4519_v45  ;;  %v3202_v24 = vld [vmem:[%s4368_s30 + $0x150] sm:$0xff] }
  0xb3   : > { %772 = vmatprep.mubr.f32.mxu1 %v4503_v25  ;;  %3803 = vmatpush1.bf16.msra.mxu0 %v3802_v47  ;;  %v1702_v47 = vld [vmem:[#allocation2 + $0x400] sm:$0xff] }
  0xb4   : > { %3851 = vmatpush1.bf16.msra.mxu1 %v3850_v48  ;;  %3804 = vmatprep.subr.bf16.mxu0 %v4236_v0  ;;  %v1703_v48 = vld [vmem:[#allocation2 + $0x408] sm:$0xff] }
  0xb5   : > { %548 = vmatmul.mubr.f32.gmra.mrb[30].mxu0 %v3191_v56  ;;  %3852 = vmatprep.subr.bf16.mxu1 %v4236_v0  ;;  %v3904_v52 = vpack.c.bf16 %v1703_v48, %v1702_v47 }
  0xb6   : > { %773 = vmatmul.mubr.f32.gmra.mrb[30].mxu1 %v3189_v33  ;;  %552 = vmatprep.mubr.f32.mxu0 %v4527_v57  ;;  %v4615_v33 = vld [vmem:[%s4368_s30 + $0x181] sm:$0xff] }
  0xb7   : > { %777 = vmatprep.mubr.f32.mxu1 %v4511_v34  ;;  %3806 = vmatpush1.bf16.msra.mxu0 %v3805_v58  ;;  %v961_v58 = vld [vmem:[%s4368_s30 + $0xa] sm:$0xff] }
  0xb8   : > { %3854 = vmatpush1.bf16.msra.mxu1 %v3853_v59  ;;  %3855 = vmatprep.subr.bf16.mxu0 %v4236_v0  ;;  %v1704_v59 = vld [vmem:[#allocation2 + $0x410] sm:$0xff] }
  0xb9   : > { %553 = vmatmul.mubr.f32.gmra.mrb[32].mxu0 %v3192_v61  ;;  %3903 = vmatprep.subr.bf16.mxu1 %v4236_v0 }
  0xba   : > { %778 = vmatmul.mubr.f32.gmra.mrb[32].mxu1 %v3190_v44  ;;  %557 = vmatprep.mubr.f32.mxu0 %v4535_v63  ;;  %v960_v44 = vld [vmem:[%s4368_s30 + $0x2] sm:$0xff] }
  0xbb   : > { %782 = vmatprep.mubr.f32.mxu1 %v4519_v45 }
  0xbd   : > { %558 = vmatmul.mubr.f32.gmra.mrb[34].mxu0 %v3193_v1 }
  0xbe   : > { %783 = vmatmul.mubr.f32.gmra.mrb[34].mxu1 %v3191_v56  ;;  %562 = vmatprep.mubr.f32.mxu0 %v4543_v2  ;;  %v1803_v56 = vld [vmem:[#allocation2 + $0x518] sm:$0xff] }
  0xbf   : > { %787 = vmatprep.mubr.f32.mxu1 %v4527_v57 }
  0xc1   : > { %563 = vmatmul.mubr.f32.gmra.mrb[36].mxu0 %v3194_v3 }
  0xc2   : > { %788 = vmatmul.mubr.f32.gmra.mrb[36].mxu1 %v3192_v61  ;;  %567 = vmatprep.mubr.f32.mxu0 %v4549_v4  ;;  %v1705_v61 = vld [vmem:[#allocation2 + $0x418] sm:$0xff] }
  0xc3   : > { %792 = vmatprep.mubr.f32.mxu1 %v4535_v63 }
  0xc5   : > { %568 = vmatmul.mubr.f32.gmra.mrb[38].mxu0 %v3195_v5 }
  0xc6   : > { %793 = vmatmul.mubr.f32.gmra.mrb[38].mxu1 %v3193_v1  ;;  %572 = vmatprep.mubr.f32.mxu0 %v4555_v8  ;;  %v3275_v1 = vld [vmem:[%s4368_s30 + $0x32] sm:$0xff] }
  0xc7   : > { %797 = vmatprep.mubr.f32.mxu1 %v4543_v2 }
  0xc9   : > { %573 = vmatmul.mubr.f32.gmra.mrb[40].mxu0 %v3196_v9 }
  0xca   : > { %798 = vmatmul.mubr.f32.gmra.mrb[40].mxu1 %v3194_v3  ;;  %577 = vmatprep.mubr.f32.mxu0 %v4561_v10  ;;  %v3859_v3 = vpack.c.bf16 %v1803_v56, %v1802_v55  ;;  %v1713_v55 = vld [vmem:[#allocation2 + $0x458] sm:$0xff] }
  0xcb   : > { %802 = vmatprep.mubr.f32.mxu1 %v4549_v4 }
  0xcd   : > { %578 = vmatmul.mubr.f32.gmra.mrb[42].mxu0 %v3197_v11 }
  0xce   : > { %803 = vmatmul.mubr.f32.gmra.mrb[42].mxu1 %v3195_v5  ;;  %582 = vmatprep.mubr.f32.mxu0 %v4567_v12  ;;  %v3907_v5 = vpack.c.bf16 %v1705_v61, %v1704_v59  ;;  %v1812_v59 = vld [vmem:[#allocation2 + $0x560] sm:$0xff]  ;;  %v1813_v61 = vld [vmem:[#allocation2 + $0x568] sm:$0xff] }
  0xcf   : > { %807 = vmatprep.mubr.f32.mxu1 %v4555_v8 }
  0xd1   : > { %583 = vmatmul.mubr.f32.gmra.mrb[44].mxu0 %v3198_v13 }
  0xd2   : > { %808 = vmatmul.mubr.f32.gmra.mrb[44].mxu1 %v3196_v9  ;;  %587 = vmatprep.mubr.f32.mxu0 %v4573_v14  ;;  %v1804_v9 = vld [vmem:[#allocation2 + $0x520] sm:$0xff] }
  0xd3   : > { %812 = vmatprep.mubr.f32.mxu1 %v4561_v10 }
  0xd5   : > { %588 = vmatmul.mubr.f32.gmra.mrb[46].mxu0 %v3199_v17 }
  0xd6   : > { %813 = vmatmul.mubr.f32.gmra.mrb[46].mxu1 %v3197_v11  ;;  %592 = vmatprep.mubr.f32.mxu0 %v4579_v18  ;;  %v1805_v11 = vld [vmem:[#allocation2 + $0x528] sm:$0xff] }
  0xd7   : > { %817 = vmatprep.mubr.f32.mxu1 %v4567_v12 }
  0xd9   : > { %593 = vmatmul.mubr.f32.gmra.mrb[48].mxu0 %v3200_v19 }
  0xda   : > { %818 = vmatmul.mubr.f32.gmra.mrb[48].mxu1 %v3198_v13  ;;  %597 = vmatprep.mubr.f32.mxu0 %v4585_v20  ;;  %v1706_v13 = vld [vmem:[#allocation2 + $0x420] sm:$0xff] }
  0xdb   : > { %822 = vmatprep.mubr.f32.mxu1 %v4573_v14 }
  0xdd   : > { %598 = vmatmul.mubr.f32.gmra.mrb[50].mxu0 %v3201_v21 }
  0xde   : > { %823 = vmatmul.mubr.f32.gmra.mrb[50].mxu1 %v3199_v17  ;;  %602 = vmatprep.mubr.f32.mxu0 %v4591_v22  ;;  %v1707_v17 = vld [vmem:[#allocation2 + $0x428] sm:$0xff] }
  0xdf   : > { %827 = vmatprep.mubr.f32.mxu1 %v4579_v18 }
  0xe1   : > { %603 = vmatmul.mubr.f32.gmra.mrb[52].mxu0 %v3202_v24 }
  0xe2   : > { %828 = vmatmul.mubr.f32.gmra.mrb[52].mxu1 %v3200_v19  ;;  %607 = vmatprep.mubr.f32.mxu0 %v4597_v26  ;;  %v3862_v19 = vpack.c.bf16 %v1805_v11, %v1804_v9  ;;  %v1814_v11 = vld [vmem:[#allocation2 + $0x570] sm:$0xff] }
  0xe3   : > { %832 = vmatprep.mubr.f32.mxu1 %v4585_v20 }
  0xe5   : > { %608 = vmatmul.mubr.f32.gmra.mrb[54].mxu0 %v3203_v27 }
  0xe6   : > { %833 = vmatmul.mubr.f32.gmra.mrb[54].mxu1 %v3201_v21  ;;  %612 = vmatprep.mubr.f32.mxu0 %v4603_v28  ;;  %v3910_v21 = vpack.c.bf16 %v1707_v17, %v1706_v13  ;;  %v1815_v13 = vld [vmem:[#allocation2 + $0x578] sm:$0xff]  ;;  %v1716_v17 = vld [vmem:[#allocation2 + $0x470] sm:$0xff] }
  0xe7   : > { %837 = vmatprep.mubr.f32.mxu1 %v4591_v22 }
  0xe9   : > { %613 = vmatmul.mubr.f32.gmra.mrb[56].mxu0 %v3204_v29 }
  0xea   : > { %838 = vmatmul.mubr.f32.gmra.mrb[56].mxu1 %v3202_v24  ;;  %617 = vmatprep.mubr.f32.mxu0 %v4609_v30  ;;  %v1806_v24 = vld [vmem:[#allocation2 + $0x530] sm:$0xff] }
  0xeb   : > { %842 = vmatprep.mubr.f32.mxu1 %v4597_v26 }
  0xed   : > { %618 = vmatmul.mubr.f32.gmra.mrb[58].mxu0 %v3205_v32 }
  0xee   : > { %843 = vmatmul.mubr.f32.gmra.mrb[58].mxu1 %v3203_v27  ;;  %622 = vmatprep.mubr.f32.mxu0 %v4615_v33  ;;  %v1807_v27 = vld [vmem:[#allocation2 + $0x538] sm:$0xff] }
  0xef   : > { %847 = vmatprep.mubr.f32.mxu1 %v4603_v28 }
  0xf1   : > { %623 = vmatmul.mubr.f32.gmra.mrb[60].mxu0 %v3206_v35  ;;  %v3865_v35 = vpack.c.bf16 %v1807_v27, %v1806_v24  ;;  %v1816_v24 = vld [vmem:[#allocation2 + $0x580] sm:$0xff]  ;;  %v1817_v27 = vld [vmem:[#allocation2 + $0x588] sm:$0xff] }
  0xf2   : > { %848 = vmatmul.mubr.f32.gmra.mrb[60].mxu1 %v3204_v29  ;;  %627 = vmatprep.mubr.f32.mxu0 %v4621_v36  ;;  %v1708_v29 = vld [vmem:[#allocation2 + $0x430] sm:$0xff] }
  0xf3   : > { %852 = vmatprep.mubr.f32.mxu1 %v4609_v30 }
  0xf5   : > { %628 = vmatmul.mubr.f32.gmra.mrb[62].mxu0 %v3207_v37 }
  0xf6   : > { %853 = vmatmul.mubr.f32.gmra.mrb[62].mxu1 %v3205_v32  ;;  %1186 = vmatprep.mubr.f32.mxu0 %v3273_v38  ;;  %v1709_v32 = vld [vmem:[#allocation2 + $0x438] sm:$0xff] }
  0xf7   : > { %1411 = vmatprep.mubr.f32.mxu1 %v960_v44  ;;  %v3913_v37 = vpack.c.bf16 %v1709_v32, %v1708_v29  ;;  %v1711_v44 = vld [vmem:[#allocation2 + $0x448] sm:$0xff]  ;;  %v1718_v29 = vld [vmem:[#allocation2 + $0x480] sm:$0xff] }
  0xf8   : > { %v3916_v48 = vpack.c.bf16 %v1711_v44, %v1710_v43  ;;  %v1719_v32 = vld [vmem:[#allocation2 + $0x488] sm:$0xff]  ;;  %v1721_v43 = vld [vmem:[#allocation2 + $0x498] sm:$0xff] }
  0xf9   : > { %1187 = vmatmul.mubr.f32.vlgmr.msra.gmra.mrb[64].mxu0 %v4373_v41 }
  0xfa   : > { %1412 = vmatmul.mubr.f32.vlgmr.msra.gmra.mrb[64].mxu1 %v4376_v42  ;;  %3857 = vmatpush1.bf16.msra.mxu0 %v3856_v50  ;;  %v3276_v42 = vld [vmem:[%s4368_s30 + $0x3a] sm:$0xff]  ;;  %v1810_v50 = vld [vmem:[#allocation2 + $0x550] sm:$0xff] }
  0xfb   : > { %3905 = vmatpush1.bf16.msra.mxu1 %v3904_v52  ;;  %1191 = vmatprep.mubr.f32.mxu0 %v3274_v53  ;;  %v1811_v52 = vld [vmem:[#allocation2 + $0x558] sm:$0xff] }
  0xfc   : > { %1416 = vmatprep.mubr.f32.mxu1 %v961_v58  ;;  %3858 = vmatprep.subr.bf16.mxu0 %v4236_v0  ;;  %v3871_v56 = vpack.c.bf16 %v1811_v52, %v1810_v50  ;;  %v1722_v50 = vld [vmem:[#allocation2 + $0x4a0] sm:$0xff]  ;;  %v1723_v52 = vld [vmem:[#allocation2 + $0x4a8] sm:$0xff] }
  0xfd   : > { %1192 = vmatmul.mubr.f32.gmra.mrb[66].mxu0 %v4405_v46  ;;  %3906 = vmatprep.subr.bf16.mxu1 %v4236_v0 }
  0xfe   : > { %1417 = vmatmul.mubr.f32.gmra.mrb[66].mxu1 %v4408_v49  ;;  %1196 = vmatprep.mubr.f32.mxu0 %v3275_v1  ;;  %v3277_v49 = vld [vmem:[%s4368_s30 + $0x4a] sm:$0xff] }
  0xff   : > { %1421 = vmatprep.mubr.f32.mxu1 %v3273_v38  ;;  %3860 = vmatpush1.bf16.msra.mxu0 %v3859_v3  ;;  %v1808_v38 = vld [vmem:[#allocation2 + $0x540] sm:$0xff]  ;;  %v1715_v3 = vld [vmem:[#allocation2 + $0x468] sm:$0xff] }
 0x100   : > { %3908 = vmatpush1.bf16.msra.mxu1 %v3907_v5  ;;  %3861 = vmatprep.subr.bf16.mxu0 %v4236_v0  ;;  %v3868_v47 = vpack.c.bf16 %v1809_v40, %v1808_v38  ;;  %v3874_v5 = vpack.c.bf16 %v1813_v61, %v1812_v59  ;;  %v1819_v38 = vld [vmem:[#allocation2 + $0x598] sm:$0xff]  ;;  %v1720_v40 = vld [vmem:[#allocation2 + $0x490] sm:$0xff] }
 0x101   : > { %1197 = vmatmul.mubr.f32.gmra.mrb[68].mxu0 %v4414_v54  ;;  %3909 = vmatprep.subr.bf16.mxu1 %v4236_v0  ;;  %v1725_v59 = vld [vmem:[#allocation2 + $0x4b8] sm:$0xff] }
 0x102   : > { %1422 = vmatmul.mubr.f32.gmra.mrb[68].mxu1 %v4373_v41  ;;  %1201 = vmatprep.mubr.f32.mxu0 %v3276_v42  ;;  %v3278_v41 = vld [vmem:[%s4368_s30 + $0x52] sm:$0xff] }
 0x103   : > { %1426 = vmatprep.mubr.f32.mxu1 %v3274_v53  ;;  %3863 = vmatpush1.bf16.msra.mxu0 %v3862_v19  ;;  %v1712_v53 = vld [vmem:[#allocation2 + $0x450] sm:$0xff]  ;;  %v3877_v19 = vpack.c.bf16 %v1815_v13, %v1814_v11 }
 0x104   : > { %3911 = vmatpush1.bf16.msra.mxu1 %v3910_v21  ;;  %3864 = vmatprep.subr.bf16.mxu0 %v4236_v0  ;;  %v3919_v58 = vpack.c.bf16 %v1713_v55, %v1712_v53  ;;  %v3934_v55 = vpack.c.bf16 %v1723_v52, %v1722_v50 }
 0x105   : > { %1202 = vmatmul.mubr.f32.gmra.mrb[70].mxu0 %v4423_v62  ;;  %3912 = vmatprep.subr.bf16.mxu1 %v4236_v0 }
 0x106   : > { %1427 = vmatmul.mubr.f32.gmra.mrb[70].mxu1 %v4405_v46  ;;  %1206 = vmatprep.mubr.f32.mxu0 %v3277_v49  ;;  %v3279_v46 = vld [vmem:[%s4368_s30 + $0x62] sm:$0xff] }
 0x107   : > { %1431 = vmatprep.mubr.f32.mxu1 %v3275_v1  ;;  %3866 = vmatpush1.bf16.msra.mxu0 %v3865_v35  ;;  %v1714_v1 = vld [vmem:[#allocation2 + $0x460] sm:$0xff]  ;;  %v3928_v35 = vpack.c.bf16 %v1719_v32, %v1718_v29  ;;  %v1829_v29 = vld [vmem:[#allocation2 + $0x5e8] sm:$0xff] }
 0x108   : > { %3914 = vmatpush1.bf16.msra.mxu1 %v3913_v37  ;;  %3867 = vmatprep.subr.bf16.mxu0 %v4236_v0  ;;  %v3922_v9 = vpack.c.bf16 %v1715_v3, %v1714_v1  ;;  %v1818_v37 = vld [vmem:[#allocation2 + $0x590] sm:$0xff]  ;;  %v1824_v3 = vld [vmem:[#allocation2 + $0x5c0] sm:$0xff] }
 0x109   : > { %1207 = vmatmul.mubr.f32.gmra.mrb[72].mxu0 %v4431_v7  ;;  %3915 = vmatprep.subr.bf16.mxu1 %v4236_v0  ;;  %v3883_v44 = vpack.c.bf16 %v1819_v38, %v1818_v37  ;;  %v1730_v32 = vld [vmem:[#allocation2 + $0x4e0] sm:$0xff]  ;;  %v1830_v37 = vld [vmem:[#allocation2 + $0x5f0] sm:$0xff]  ;;  %v1831_v38 = vld [vmem:[#allocation2 + $0x5f8] sm:$0xff] }
 0x10a   : > { %1432 = vmatmul.mubr.f32.gmra.mrb[72].mxu1 %v4414_v54  ;;  %1211 = vmatprep.mubr.f32.mxu0 %v3278_v41  ;;  %v3280_v54 = vld [vmem:[%s4368_s30 + $0x6a] sm:$0xff] }
 0x10b   : > { %1436 = vmatprep.mubr.f32.mxu1 %v3276_v42  ;;  %3869 = vmatpush1.bf16.msra.mxu0 %v3868_v47  ;;  %v1717_v42 = vld [vmem:[#allocation2 + $0x478] sm:$0xff]  ;;  %v1820_v47 = vld [vmem:[#allocation2 + $0x5a0] sm:$0xff] }
 0x10c   : > { %3917 = vmatpush1.bf16.msra.mxu1 %v3916_v48  ;;  %3870 = vmatprep.subr.bf16.mxu0 %v4236_v0  ;;  %v3925_v21 = vpack.c.bf16 %v1717_v42, %v1716_v17  ;;  %v1821_v48 = vld [vmem:[#allocation2 + $0x5a8] sm:$0xff]  ;;  %v1826_v17 = vld [vmem:[#allocation2 + $0x5d0] sm:$0xff]  ;;  %v1827_v42 = vld [vmem:[#allocation2 + $0x5d8] sm:$0xff] }
 0x10d   : > { %1212 = vmatmul.mubr.f32.gmra.mrb[74].mxu0 %v4439_v15  ;;  %3918 = vmatprep.subr.bf16.mxu1 %v4236_v0  ;;  %v3886_v53 = vpack.c.bf16 %v1821_v48, %v1820_v47  ;;  %v3294_v47 = vld [vmem:[%s4368_s30 + $0x112] sm:$0xff]  ;;  %v4731_v48 = vld [vmem:[%s5382_s2] ss:$0 sm:$0xff] }
 0x10e   : > { %1437 = vmatmul.mubr.f32.gmra.mrb[74].mxu1 %v4423_v62  ;;  %1216 = vmatprep.mubr.f32.mxu0 %v3279_v46  ;;  %v3281_v62 = vld [vmem:[%s4368_s30 + $0x7a] sm:$0xff] }
 0x10f   : > { %1441 = vmatprep.mubr.f32.mxu1 %v3277_v49  ;;  %3872 = vmatpush1.bf16.msra.mxu0 %v3871_v56  ;;  %v3880_v49 = vpack.c.bf16 %v1817_v27, %v1816_v24  ;;  %v1823_v56 = vld [vmem:[#allocation2 + $0x5b8] sm:$0xff]  ;;  %v1828_v27 = vld [vmem:[#allocation2 + $0x5e0] sm:$0xff] }
 0x110   : > { %3920 = vmatpush1.bf16.msra.mxu1 %v3919_v58  ;;  %3873 = vmatprep.subr.bf16.mxu0 %v4236_v0  ;;  %v1724_v58 = vld [vmem:[#allocation2 + $0x4b0] sm:$0xff] }
 0x111   : > { %1217 = vmatmul.mubr.f32.gmra.mrb[76].mxu0 %v4447_v23  ;;  %3921 = vmatprep.subr.bf16.mxu1 %v4236_v0  ;;  %v3937_v1 = vpack.c.bf16 %v1725_v59, %v1724_v58 }
 0x112   : > { %1442 = vmatmul.mubr.f32.gmra.mrb[76].mxu1 %v4431_v7  ;;  %1221 = vmatprep.mubr.f32.mxu0 %v3280_v54  ;;  %v3282_v7 = vld [vmem:[%s4368_s30 + $0x82] sm:$0xff] }
 0x113   : > { %1446 = vmatprep.mubr.f32.mxu1 %v3278_v41  ;;  %3875 = vmatpush1.bf16.msra.mxu0 %v3874_v5  ;;  %v3931_v41 = vpack.c.bf16 %v1721_v43, %v1720_v40  ;;  %v1726_v5 = vld [vmem:[#allocation2 + $0x4c0] sm:$0xff]  ;;  %v1732_v40 = vld [vmem:[#allocation2 + $0x4f0] sm:$0xff]  ;;  %v1733_v43 = vld [vmem:[#allocation2 + $0x4f8] sm:$0xff] }
 0x114   : > { %3923 = vmatpush1.bf16.msra.mxu1 %v3922_v9  ;;  %3876 = vmatprep.subr.bf16.mxu0 %v4236_v0  ;;  %v1727_v9 = vld [vmem:[#allocation2 + $0x4c8] sm:$0xff] }
 0x115   : > { %1222 = vmatmul.mubr.f32.gmra.mrb[78].mxu0 %v4455_v31  ;;  %3924 = vmatprep.subr.bf16.mxu1 %v4236_v0  ;;  %v3940_v13 = vpack.c.bf16 %v1727_v9, %v1726_v5 }
 0x116   : > { %1447 = vmatmul.mubr.f32.gmra.mrb[78].mxu1 %v4439_v15  ;;  %1226 = vmatprep.mubr.f32.mxu0 %v3281_v62  ;;  %v3283_v15 = vld [vmem:[%s4368_s30 + $0x92] sm:$0xff] }
 0x117   : > { %1451 = vmatprep.mubr.f32.mxu1 %v3279_v46  ;;  %3878 = vmatpush1.bf16.msra.mxu0 %v3877_v19  ;;  %v1822_v46 = vld [vmem:[#allocation2 + $0x5b0] sm:$0xff]  ;;  %v1729_v19 = vld [vmem:[#allocation2 + $0x4d8] sm:$0xff] }
 0x118   : > { %3926 = vmatpush1.bf16.msra.mxu1 %v3925_v21  ;;  %3879 = vmatprep.subr.bf16.mxu0 %v4236_v0  ;;  %v3889_v61 = vpack.c.bf16 %v1823_v56, %v1822_v46  ;;  %v3895_v21 = vpack.c.bf16 %v1827_v42, %v1826_v17 }
 0x119   : > { %1227 = vmatmul.mubr.f32.gmra.mrb[80].mxu0 %v4463_v39  ;;  %3927 = vmatprep.subr.bf16.mxu1 %v4236_v0 }
 0x11a   : > { %1452 = vmatmul.mubr.f32.gmra.mrb[80].mxu1 %v4447_v23  ;;  %1231 = vmatprep.mubr.f32.mxu0 %v3282_v7  ;;  %v3284_v23 = vld [vmem:[%s4368_s30 + $0x9a] sm:$0xff] }
 0x11b   : > { %1456 = vmatprep.mubr.f32.mxu1 %v3280_v54  ;;  %3881 = vmatpush1.bf16.msra.mxu0 %v3880_v49  ;;  %v1825_v54 = vld [vmem:[#allocation2 + $0x5c8] sm:$0xff]  ;;  %v3898_v49 = vpack.c.bf16 %v1829_v29, %v1828_v27 }
 0x11c   : > { %3929 = vmatpush1.bf16.msra.mxu1 %v3928_v35  ;;  %3882 = vmatprep.subr.bf16.mxu0 %v4236_v0  ;;  %v3892_v11 = vpack.c.bf16 %v1825_v54, %v1824_v3 }
 0x11d   : > { %1232 = vmatmul.mubr.f32.gmra.mrb[82].mxu0 %v4471_v51  ;;  %3930 = vmatprep.subr.bf16.mxu1 %v4236_v0 }
 0x11e   : > { %1457 = vmatmul.mubr.f32.gmra.mrb[82].mxu1 %v4455_v31  ;;  %1236 = vmatprep.mubr.f32.mxu0 %v3283_v15  ;;  %v3285_v31 = vld [vmem:[%s4368_s30 + $0xaa] sm:$0xff] }
 0x11f   : > { %1461 = vmatprep.mubr.f32.mxu1 %v3281_v62  ;;  %3884 = vmatpush1.bf16.msra.mxu0 %v3883_v44  ;;  %v1728_v62 = vld [vmem:[#allocation2 + $0x4d0] sm:$0xff]  ;;  %v3949_v44 = vpack.c.bf16 %v1733_v43, %v1732_v40 }
 0x120   : > { %3932 = vmatpush1.bf16.msra.mxu1 %v3931_v41  ;;  %3885 = vmatprep.subr.bf16.mxu0 %v4236_v0  ;;  %v3943_v24 = vpack.c.bf16 %v1729_v19, %v1728_v62  ;;  %v3291_v41 = vld [vmem:[%s4368_s30 + $0xf2] sm:$0xff] }
 0x121   : > { %1237 = vmatmul.mubr.f32.gmra.mrb[84].mxu0 %v4479_v60  ;;  %3933 = vmatprep.subr.bf16.mxu1 %v4236_v0 }
 0x122   : > { %1462 = vmatmul.mubr.f32.gmra.mrb[84].mxu1 %v4463_v39  ;;  %1241 = vmatprep.mubr.f32.mxu0 %v3284_v23  ;;  %v3286_v39 = vld [vmem:[%s4368_s30 + $0xb2] sm:$0xff] }
 0x123   : > { %1466 = vmatprep.mubr.f32.mxu1 %v3282_v7  ;;  %3887 = vmatpush1.bf16.msra.mxu0 %v3886_v53  ;;  %v1731_v7 = vld [vmem:[#allocation2 + $0x4e8] sm:$0xff] }
 0x124   : > { %3935 = vmatpush1.bf16.msra.mxu1 %v3934_v55  ;;  %3888 = vmatprep.subr.bf16.mxu0 %v4236_v0  ;;  %v3946_v35 = vpack.c.bf16 %v1731_v7, %v1730_v32 }
 0x125   : > { %1242 = vmatmul.mubr.f32.gmra.mrb[86].mxu0 %v4487_v6  ;;  %3936 = vmatprep.subr.bf16.mxu1 %v4236_v0 }
 0x126   : > { %1467 = vmatmul.mubr.f32.gmra.mrb[86].mxu1 %v4471_v51  ;;  %1246 = vmatprep.mubr.f32.mxu0 %v3285_v31  ;;  %v3287_v51 = vld [vmem:[%s4368_s30 + $0xc2] sm:$0xff] }
 0x127   : > { %1471 = vmatprep.mubr.f32.mxu1 %v3283_v15  ;;  %3890 = vmatpush1.bf16.msra.mxu0 %v3889_v61  ;;  %v3901_v15 = vpack.c.bf16 %v1831_v38, %v1830_v37 }
 0x128   : > { %3938 = vmatpush1.bf16.msra.mxu1 %v3937_v1  ;;  %3891 = vmatprep.subr.bf16.mxu0 %v4236_v0 }
 0x129   : > { %1247 = vmatmul.mubr.f32.gmra.mrb[88].mxu0 %v4495_v16  ;;  %3939 = vmatprep.subr.bf16.mxu1 %v4236_v0 }
 0x12a   : > { %1472 = vmatmul.mubr.f32.gmra.mrb[88].mxu1 %v4479_v60  ;;  %1251 = vmatprep.mubr.f32.mxu0 %v3286_v39  ;;  %v3288_v60 = vld [vmem:[%s4368_s30 + $0xca] sm:$0xff] }
 0x12b   : > { %1476 = vmatprep.mubr.f32.mxu1 %v3284_v23  ;;  %3893 = vmatpush1.bf16.msra.mxu0 %v3892_v11 }
 0x12c   : > { %3941 = vmatpush1.bf16.msra.mxu1 %v3940_v13  ;;  %3894 = vmatprep.subr.bf16.mxu0 %v4236_v0 }
 0x12d   : > { %1252 = vmatmul.mubr.f32.gmra.mrb[90].mxu0 %v4503_v25  ;;  %3942 = vmatprep.subr.bf16.mxu1 %v4236_v0 }
 0x12e   : > { %1477 = vmatmul.mubr.f32.gmra.mrb[90].mxu1 %v4487_v6  ;;  %1256 = vmatprep.mubr.f32.mxu0 %v3287_v51  ;;  %v3289_v6 = vld [vmem:[%s4368_s30 + $0xda] sm:$0xff] }
 0x12f   : > { %1481 = vmatprep.mubr.f32.mxu1 %v3285_v31  ;;  %3896 = vmatpush1.bf16.msra.mxu0 %v3895_v21 }
 0x130   : > { %3944 = vmatpush1.bf16.msra.mxu1 %v3943_v24  ;;  %3897 = vmatprep.subr.bf16.mxu0 %v4236_v0 }
 0x131   : > { %1257 = vmatmul.mubr.f32.gmra.mrb[92].mxu0 %v4511_v34  ;;  %3945 = vmatprep.subr.bf16.mxu1 %v4236_v0 }
 0x132   : > { %1482 = vmatmul.mubr.f32.gmra.mrb[92].mxu1 %v4495_v16  ;;  %1261 = vmatprep.mubr.f32.mxu0 %v3288_v60  ;;  %v3290_v16 = vld [vmem:[%s4368_s30 + $0xe2] sm:$0xff] }
 0x133   : > { %1486 = vmatprep.mubr.f32.mxu1 %v3286_v39  ;;  %3899 = vmatpush1.bf16.msra.mxu0 %v3898_v49 }
 0x134   : > { %3947 = vmatpush1.bf16.msra.mxu1 %v3946_v35  ;;  %3900 = vmatprep.subr.bf16.mxu0 %v4236_v0 }
 0x135   : > { %1262 = vmatmul.mubr.f32.gmra.mrb[94].mxu0 %v4519_v45  ;;  %3948 = vmatprep.subr.bf16.mxu1 %v4236_v0 }
 0x136   : > { %1487 = vmatmul.mubr.f32.gmra.mrb[94].mxu1 %v4503_v25  ;;  %1266 = vmatprep.mubr.f32.mxu0 %v3289_v6  ;;  %v3292_v25 = vld [vmem:[%s4368_s30 + $0xfa] sm:$0xff] }
 0x137   : > { %1491 = vmatprep.mubr.f32.mxu1 %v3287_v51  ;;  %3902 = vmatpush1.bf16.msra.mxu0 %v3901_v15 }
 0x138   : > { %3950 = vmatpush1.bf16.msra.mxu1 %v3949_v44  ;;  %3951 = vmatprep.subr.bf16.mxu0 %v4236_v0 }
 0x139   : > { %1267 = vmatmul.mubr.f32.gmra.mrb[96].mxu0 %v4527_v57  ;;  %3999 = vmatprep.subr.bf16.mxu1 %v4236_v0 }
 0x13a   : > { %1492 = vmatmul.mubr.f32.gmra.mrb[96].mxu1 %v4511_v34  ;;  %1271 = vmatprep.mubr.f32.mxu0 %v3290_v16  ;;  %v3293_v34 = vld [vmem:[%s4368_s30 + $0x10a] sm:$0xff] }
 0x13b   : > { %1496 = vmatprep.mubr.f32.mxu1 %v3288_v60 }
 0x13d   : > { %1272 = vmatmul.mubr.f32.gmra.mrb[98].mxu0 %v4535_v63 }
 0x13e   : > { %1497 = vmatmul.mubr.f32.gmra.mrb[98].mxu1 %v4519_v45  ;;  %1276 = vmatprep.mubr.f32.mxu0 %v3291_v41  ;;  %v3295_v45 = vld [vmem:[%s4368_s30 + $0x122] sm:$0xff] }
 0x13f   : > { %1501 = vmatprep.mubr.f32.mxu1 %v3289_v6 }
 0x141   : > { %1277 = vmatmul.mubr.f32.gmra.mrb[100].mxu0 %v4543_v2 }
 0x142   : > { %1502 = vmatmul.mubr.f32.gmra.mrb[100].mxu1 %v4527_v57  ;;  %1281 = vmatprep.mubr.f32.mxu0 %v3292_v25 }
 0x143   : > { %1506 = vmatprep.mubr.f32.mxu1 %v3290_v16 }
 0x145   : > { %1282 = vmatmul.mubr.f32.gmra.mrb[102].mxu0 %v4549_v4 }
 0x146   : > { %1507 = vmatmul.mubr.f32.gmra.mrb[102].mxu1 %v4535_v63  ;;  %1286 = vmatprep.mubr.f32.mxu0 %v3293_v34 }
 0x147   : > { %1511 = vmatprep.mubr.f32.mxu1 %v3291_v41 }
 0x149   : > { %1287 = vmatmul.mubr.f32.gmra.mrb[104].mxu0 %v4555_v8 }
 0x14a   : > { %1512 = vmatmul.mubr.f32.gmra.mrb[104].mxu1 %v4543_v2  ;;  %1291 = vmatprep.mubr.f32.mxu0 %v3294_v47  ;;  %v3296_v2 = vld [vmem:[%s4368_s30 + $0x12a] sm:$0xff] }
 0x14b   : > { %1516 = vmatprep.mubr.f32.mxu1 %v3292_v25 }
 0x14c   : > { %v474_v57 = vpop.f32.mrb[0].mxu0 }
 0x14d   : > { %v699_v63 = vpop.f32.mrb[0].mxu1  ;;  %v476_v50 = vpop.f32.mrb[1].mxu0  ;;  %1292 = vmatmul.mubr.f32.gmra.mrb[106].mxu0 %v4561_v10 }
 0x14e   : > { %v700_v52 = vadd.f32 %v699_v63, %v474_v57  ;;  %v701_v23 = vpop.f32.mrb[1].mxu1  ;;  %1517 = vmatmul.mubr.f32.gmra.mrb[106].mxu1 %v4549_v4  ;;  %1296 = vmatprep.mubr.f32.mxu0 %v3295_v45  ;;  %v3297_v4 = vld [vmem:[%s4368_s30 + $0x13a] sm:$0xff] }
 0x14f   : > { %1521 = vmatprep.mubr.f32.mxu1 %v3293_v34  ;;  %v3304_v23 = vld [vmem:[%s4368_s30 + $0x18a] sm:$0xff] }
 0x150   : > { %v864_v53 = vadd.f32 %v4731_v48, %v700_v52  ;;  %v479_v55 = vpop.f32.mrb[2].mxu0 }
 0x151   : > { %v704_v46 = vpop.f32.mrb[2].mxu1  ;;  %v481_v56 = vpop.f32.mrb[3].mxu0  ;;  %1297 = vmatmul.mubr.f32.gmra.mrb[108].mxu0 %v4567_v12 }
 0x152   : > { %896 = vst [vmem:[%s4738_s8] sm:$0xff] %v864_v53  ;;  %v705_v58 = vadd.f32 %v704_v46, %v479_v55  ;;  %v706_v59 = vpop.f32.mrb[3].mxu1  ;;  %1522 = vmatmul.mubr.f32.gmra.mrb[108].mxu1 %v4555_v8  ;;  %1301 = vmatprep.mubr.f32.mxu0 %v3296_v2  ;;  %v3298_v8 = vld [vmem:[%s4368_s30 + $0x142] sm:$0xff] }
 0x153   : > { %1526 = vmatprep.mubr.f32.mxu1 %v3294_v47  ;;  %v3303_v47 = vld [vmem:[%s4368_s30 + $0x182] sm:$0xff]  ;;  %v3433_v59 = vld [vmem:[%s4368_s30 + $0x31] sm:$0xff] }
 0x154   : > { %v865_v31 = vadd.f32 %v4731_v48, %v705_v58  ;;  %v484_v61 = vpop.f32.mrb[4].mxu0  ;;  %v959_v58 = vld [vmem:[%s4368_s30 + $0x171] sm:$0xff] }
 0x155   : > { %v709_v1 = vpop.f32.mrb[4].mxu1  ;;  %v486_v3 = vpop.f32.mrb[5].mxu0  ;;  %1302 = vmatmul.mubr.f32.gmra.mrb[110].mxu0 %v4573_v14 }
 0x156   : > { %897 = vst [vmem:[%s4738_s8 + $0x8] sm:$0xff] %v865_v31  ;;  %v710_v54 = vadd.f32 %v709_v1, %v484_v61  ;;  %v711_v5 = vpop.f32.mrb[5].mxu1  ;;  %1527 = vmatmul.mubr.f32.gmra.mrb[110].mxu1 %v4561_v10  ;;  %1306 = vmatprep.mubr.f32.mxu0 %v3297_v4  ;;  %v3299_v10 = vld [vmem:[%s4368_s30 + $0x152] sm:$0xff]  ;;  %v2510_v31 = vld [vmem:[#allocation2 + $0x708] sm:$0xff] }
 0x157   : > { %1531 = vmatprep.mubr.f32.mxu1 %v3295_v45  ;;  %v3369_v3 = vld [vmem:[%s4368_s30 + $0x19] sm:$0xff]  ;;  %v2413_v5 = vld [vmem:[#allocation2 + $0x608] sm:$0xff] }
 0x158   : > { %v866_v9 = vadd.f32 %v4731_v48, %v710_v54  ;;  %v489_v39 = vpop.f32.mrb[6].mxu0  ;;  %v2412_v54 = vld [vmem:[#allocation2 + $0x600] sm:$0xff] }
 0x159   : > { %v714_v11 = vpop.f32.mrb[6].mxu1  ;;  %v491_v13 = vpop.f32.mrb[7].mxu0  ;;  %1307 = vmatmul.mubr.f32.gmra.mrb[112].mxu0 %v4579_v18 }
 0x15a   : > { %898 = vst [vmem:[%s4738_s8 + $0x10] sm:$0xff] %v866_v9  ;;  %v715_v17 = vadd.f32 %v714_v11, %v489_v39  ;;  %v716_v42 = vpop.f32.mrb[7].mxu1  ;;  %1532 = vmatmul.mubr.f32.gmra.mrb[112].mxu1 %v4567_v12  ;;  %1311 = vmatprep.mubr.f32.mxu0 %v3298_v8  ;;  %v3300_v12 = vld [vmem:[%s4368_s30 + $0x15a] sm:$0xff]  ;;  %v4789_v11 = vld [vmem:[%s4368_s30 + $0x30] sm:$0xff] }
 0x15b   : > { %1536 = vmatprep.mubr.f32.mxu1 %v3296_v2  ;;  %v4000_v42 = vpack.c.bf16 %v2413_v5, %v2412_v54  ;;  %v2421_v54 = vld [vmem:[#allocation2 + $0x648] sm:$0xff] }
 0x15c   : > { %v867_v62 = vadd.f32 %v4731_v48, %v715_v17  ;;  %v494_v19 = vpop.f32.mrb[8].mxu0  ;;  %v3337_v17 = vld [vmem:[%s4368_s30 + $0x18] sm:$0xff] }
 0x15d   : > { %v719_v51 = vpop.f32.mrb[8].mxu1  ;;  %v496_v21 = vpop.f32.mrb[9].mxu0  ;;  %1312 = vmatmul.mubr.f32.gmra.mrb[114].mxu0 %v4585_v20 }
 0x15e   : > { %899 = vst [vmem:[%s4738_s8 + $0x18] sm:$0xff] %v867_v62  ;;  %v720_v24 = vadd.f32 %v719_v51, %v494_v19  ;;  %v721_v27 = vpop.f32.mrb[9].mxu1  ;;  %1537 = vmatmul.mubr.f32.gmra.mrb[114].mxu1 %v4573_v14  ;;  %1316 = vmatprep.mubr.f32.mxu0 %v3299_v10  ;;  %v3301_v14 = vld [vmem:[%s4368_s30 + $0x16a] sm:$0xff]  ;;  %v3434_v19 = vld [vmem:[%s4368_s30 + $0x39] sm:$0xff] }
 0x15f   : > { %1541 = vmatprep.mubr.f32.mxu1 %v3297_v4  ;;  %v2509_v4 = vld [vmem:[#allocation2 + $0x700] sm:$0xff]  ;;  %v2511_v51 = vld [vmem:[#allocation2 + $0x710] sm:$0xff] }
 0x160   : > { %v868_v29 = vadd.f32 %v4731_v48, %v720_v24  ;;  %v499_v32 = vpop.f32.mrb[10].mxu0  ;;  %v3952_v13 = vpack.c.bf16 %v2510_v31, %v2509_v4  ;;  %v3370_v27 = vld [vmem:[%s4368_s30 + $0x21] sm:$0xff] }
 0x161   : > { %v724_v7 = vpop.f32.mrb[10].mxu1  ;;  %v501_v60 = vpop.f32.mrb[11].mxu0  ;;  %1317 = vmatmul.mubr.f32.gmra.mrb[116].mxu0 %v4591_v22  ;;  %v2517_v4 = vld [vmem:[#allocation2 + $0x740] sm:$0xff]  ;;  %v2518_v31 = vld [vmem:[#allocation2 + $0x748] sm:$0xff] }
 0x162   : > { %900 = vst [vmem:[%s4738_s8 + $0x20] sm:$0xff] %v868_v29  ;;  %v725_v49 = vadd.f32 %v724_v7, %v499_v32  ;;  %v726_v35 = vpop.f32.mrb[11].mxu1  ;;  %1542 = vmatmul.mubr.f32.gmra.mrb[116].mxu1 %v4579_v18  ;;  %1321 = vmatprep.mubr.f32.mxu0 %v3300_v12  ;;  %v3302_v18 = vld [vmem:[%s4368_s30 + $0x172] sm:$0xff] }
 0x163   : > { %1546 = vmatprep.mubr.f32.mxu1 %v3298_v8  ;;  %v2415_v29 = vld [vmem:[#allocation2 + $0x618] sm:$0xff]  ;;  %v4802_v35 = vld [vmem:[%s4368_s30 + $0x49] sm:$0xff] }
 0x164   : > { %v869_v37 = vadd.f32 %v4731_v48, %v725_v49  ;;  %v504_v38 = vpop.f32.mrb[12].mxu0  ;;  %v4798_v60 = vld [vmem:[%s4368_s30 + $0x38] sm:$0xff]  ;;  %v3338_v49 = vld [vmem:[%s4368_s30 + $0x20] sm:$0xff] }
 0x165   : > { %v729_v40 = vpop.f32.mrb[12].mxu1  ;;  %v506_v43 = vpop.f32.mrb[13].mxu0  ;;  %1322 = vmatmul.mubr.f32.gmra.mrb[118].mxu0 %v4597_v26 }
 0x166   : > { %901 = vst [vmem:[%s4738_s8 + $0x28] sm:$0xff] %v869_v37  ;;  %v730_v6 = vadd.f32 %v729_v40, %v504_v38  ;;  %v731_v15 = vpop.f32.mrb[13].mxu1  ;;  %1547 = vmatmul.mubr.f32.gmra.mrb[118].mxu1 %v4585_v20  ;;  %1326 = vmatprep.mubr.f32.mxu0 %v3301_v14  ;;  %v957_v20 = vld [vmem:[%s4368_s30 + $0x159] sm:$0xff] }
 0x167   : > { %1551 = vmatprep.mubr.f32.mxu1 %v3299_v10  ;;  %v2513_v43 = vld [vmem:[#allocation2 + $0x720] sm:$0xff] }
 0x168   : > { %v870_v44 = vadd.f32 %v4731_v48, %v730_v6  ;;  %v509_v16 = vpop.f32.mrb[14].mxu0  ;;  %v2514_v6 = vld [vmem:[#allocation2 + $0x728] sm:$0xff] }
 0x169   : > { %v734_v41 = vpop.f32.mrb[14].mxu1  ;;  %v511_v25 = vpop.f32.mrb[15].mxu0  ;;  %1327 = vmatmul.mubr.f32.gmra.mrb[120].mxu0 %v4603_v28 }
 0x16a   : > { %902 = vst [vmem:[%s4738_s8 + $0x30] sm:$0xff] %v870_v44  ;;  %v735_v26 = vadd.f32 %v734_v41, %v509_v16  ;;  %v736_v34 = vpop.f32.mrb[15].mxu1  ;;  %1552 = vmatmul.mubr.f32.gmra.mrb[120].mxu1 %v4591_v22  ;;  %1331 = vmatprep.mubr.f32.mxu0 %v3302_v18  ;;  %v958_v22 = vld [vmem:[%s4368_s30 + $0x169] sm:$0xff]  ;;  %v2416_v44 = vld [vmem:[#allocation2 + $0x620] sm:$0xff] }
 0x16b   : > { %1556 = vmatprep.mubr.f32.mxu1 %v3300_v12  ;;  %v2414_v12 = vld [vmem:[#allocation2 + $0x610] sm:$0xff]  ;;  %v2417_v16 = vld [vmem:[#allocation2 + $0x628] sm:$0xff] }
 0x16c   : > { %v871_v45 = vadd.f32 %v4731_v48, %v735_v26  ;;  %v514_v57 = vpop.f32.mrb[16].mxu0  ;;  %v4003_v40 = vpack.c.bf16 %v2415_v29, %v2414_v12  ;;  %v4811_v26 = vld [vmem:[%s4368_s30 + $0x48] sm:$0xff]  ;;  %v4814_v34 = vld [vmem:[%s4368_s30 + $0x51] sm:$0xff]  ;;  %v4855_v12 = vld [vmem:[%s4368_s30 + $0x79] sm:$0xff] }
 0x16d   : > { %v739_v63 = vpop.f32.mrb[16].mxu1  ;;  %v516_v50 = vpop.f32.mrb[17].mxu0  ;;  %1332 = vmatmul.mubr.f32.gmra.mrb[122].mxu0 %v4609_v30 }
 0x16e   : > { %903 = vst [vmem:[%s4738_s8 + $0x38] sm:$0xff] %v871_v45  ;;  %v740_v28 = vadd.f32 %v739_v63, %v514_v57  ;;  %v741_v52 = vpop.f32.mrb[17].mxu1  ;;  %1557 = vmatmul.mubr.f32.gmra.mrb[122].mxu1 %v957_v20  ;;  %1336 = vmatprep.mubr.f32.mxu0 %v3303_v47  ;;  %v3958_v20 = vpack.c.bf16 %v2514_v6, %v2513_v43  ;;  %v2515_v63 = vld [vmem:[#allocation2 + $0x730] sm:$0xff]  ;;  %v2516_v50 = vld [vmem:[#allocation2 + $0x738] sm:$0xff] }
 0x16f   : > { %1561 = vmatprep.mubr.f32.mxu1 %v3301_v14  ;;  %v4006_v57 = vpack.c.bf16 %v2417_v16, %v2416_v44 }
 0x170   : > { %v872_v2 = vadd.f32 %v4731_v48, %v740_v28  ;;  %v519_v53 = vpop.f32.mrb[18].mxu0 }
 0x171   : > { %v744_v55 = vpop.f32.mrb[18].mxu1  ;;  %v521_v46 = vpop.f32.mrb[19].mxu0  ;;  %1337 = vmatmul.mubr.f32.gmra.mrb[124].mxu0 %v4615_v33 }
 0x172   : > { %904 = vst [vmem:[%s4738_s8 + $0x40] sm:$0xff] %v872_v2  ;;  %v745_v30 = vadd.f32 %v744_v55, %v519_v53  ;;  %v746_v56 = vpop.f32.mrb[19].mxu1  ;;  %1562 = vmatmul.mubr.f32.gmra.mrb[124].mxu1 %v958_v22  ;;  %1341 = vmatprep.mubr.f32.mxu0 %v3304_v23  ;;  %v2418_v22 = vld [vmem:[#allocation2 + $0x630] sm:$0xff]  ;;  %v2419_v23 = vld [vmem:[#allocation2 + $0x638] sm:$0xff]  ;;  %v4827_v46 = vld [vmem:[%s4368_s30 + $0x61] sm:$0xff] }
 0x173   : > { %1566 = vmatprep.mubr.f32.mxu1 %v3302_v18  ;;  %v4824_v55 = vld [vmem:[%s4368_s30 + $0x50] sm:$0xff] }
 0x174   : > { %v873_v61 = vadd.f32 %v4731_v48, %v745_v30  ;;  %v524_v1 = vpop.f32.mrb[20].mxu0  ;;  %v3961_v30 = vpack.c.bf16 %v2516_v50, %v2515_v63 }
 0x175   : > { %v749_v33 = vpop.f32.mrb[20].mxu1  ;;  %v526_v8 = vpop.f32.mrb[21].mxu0  ;;  %1342 = vmatmul.mubr.f32.gmra.mrb[126].mxu0 %v4621_v36  ;;  %v2512_v36 = vld [vmem:[#allocation2 + $0x718] sm:$0xff] }
 0x176   : > { %905 = vst [vmem:[%s4738_s8 + $0x48] sm:$0xff] %v873_v61  ;;  %v750_v9 = vadd.f32 %v749_v33, %v524_v1  ;;  %v751_v39 = vpop.f32.mrb[21].mxu1  ;;  %1567 = vmatmul.mubr.f32.gmra.mrb[126].mxu1 %v959_v58  ;;  %1896 = vmatprep.mubr.f32.mxu0 %v3433_v59  ;;  %v3955_v14 = vpack.c.bf16 %v2512_v36, %v2511_v51  ;;  %v4837_v8 = vld [vmem:[%s4368_s30 + $0x60] sm:$0xff]  ;;  %v2422_v51 = vld [vmem:[#allocation2 + $0x650] sm:$0xff]  ;;  %v2423_v36 = vld [vmem:[#allocation2 + $0x658] sm:$0xff] }
 0x177   : > { %2121 = vmatprep.mubr.f32.mxu1 %v3369_v3  ;;  %v2420_v3 = vld [vmem:[#allocation2 + $0x640] sm:$0xff]  ;;  %v3964_v39 = vpack.c.bf16 %v2518_v31, %v2517_v4 }
 0x178   : > { %v874_v10 = vadd.f32 %v4731_v48, %v750_v9  ;;  %v529_v62 = vpop.f32.mrb[22].mxu0  ;;  %v4841_v9 = vld [vmem:[%s4368_s30 + $0x69] sm:$0xff] }
 0x179   : > { %v754_v21 = vpop.f32.mrb[22].mxu1  ;;  %v531_v24 = vpop.f32.mrb[23].mxu0  ;;  %1897 = vmatmul.mubr.f32.vlgmr.msra.gmra.mrb[128].mxu0 %v4789_v11 }
 0x17a   : > { %906 = vst [vmem:[%s4738_s8 + $0x50] sm:$0xff] %v874_v10  ;;  %v755_v32 = vadd.f32 %v754_v21, %v529_v62  ;;  %v756_v7 = vpop.f32.mrb[23].mxu1  ;;  %2122 = vmatmul.mubr.f32.vlgmr.msra.gmra.mrb[128].mxu1 %v3337_v17  ;;  %3953 = vmatpush1.bf16.msra.mxu0 %v3952_v13  ;;  %v4012_v17 = vpack.c.bf16 %v2421_v54, %v2420_v3  ;;  %v2520_v10 = vld [vmem:[#allocation2 + $0x758] sm:$0xff] }
 0x17b   : > { %4001 = vmatpush1.bf16.msra.mxu1 %v4000_v42  ;;  %1901 = vmatprep.mubr.f32.mxu0 %v3434_v19  ;;  %v2519_v42 = vld [vmem:[#allocation2 + $0x750] sm:$0xff] }
 0x17c   : > { %v875_v37 = vadd.f32 %v4731_v48, %v755_v32  ;;  %v534_v38 = vpop.f32.mrb[24].mxu0  ;;  %2126 = vmatprep.mubr.f32.mxu1 %v3370_v27  ;;  %3954 = vmatprep.subr.bf16.mxu0 %v4236_v0  ;;  %v4851_v27 = vld [vmem:[%s4368_s30 + $0x68] sm:$0xff]  ;;  %v3967_v29 = vpack.c.bf16 %v2520_v10, %v2519_v42 }
 0x17d   : > { %v759_v15 = vpop.f32.mrb[24].mxu1  ;;  %v536_v18 = vpop.f32.mrb[25].mxu0  ;;  %1902 = vmatmul.mubr.f32.gmra.mrb[130].mxu0 %v4798_v60  ;;  %4002 = vmatprep.subr.bf16.mxu1 %v4236_v0 }
 0x17e   : > { %907 = vst [vmem:[%s4738_s8 + $0x58] sm:$0xff] %v875_v37  ;;  %v760_v41 = vadd.f32 %v759_v15, %v534_v38  ;;  %v761_v25 = vpop.f32.mrb[25].mxu1  ;;  %2127 = vmatmul.mubr.f32.gmra.mrb[130].mxu1 %v3338_v49  ;;  %1906 = vmatprep.mubr.f32.mxu0 %v4802_v35  ;;  %v2521_v49 = vld [vmem:[#allocation2 + $0x760] sm:$0xff]  ;;  %v4865_v15 = vld [vmem:[%s4368_s30 + $0x78] sm:$0xff] }
 0x17f   : > { %2131 = vmatprep.mubr.f32.mxu1 %v3433_v59  ;;  %3956 = vmatpush1.bf16.msra.mxu0 %v3955_v14  ;;  %v4009_v59 = vpack.c.bf16 %v2419_v23, %v2418_v22  ;;  %v2424_v38 = vld [vmem:[#allocation2 + $0x660] sm:$0xff] }
 0x180   : > { %v876_v47 = vadd.f32 %v4731_v48, %v760_v41  ;;  %v539_v45 = vpop.f32.mrb[26].mxu0  ;;  %4004 = vmatpush1.bf16.msra.mxu1 %v4003_v40  ;;  %3957 = vmatprep.subr.bf16.mxu0 %v4236_v0  ;;  %v2425_v40 = vld [vmem:[#allocation2 + $0x668] sm:$0xff] }
 0x181   : > { %v764_v28 = vpop.f32.mrb[26].mxu1  ;;  %v541_v52 = vpop.f32.mrb[27].mxu0  ;;  %1907 = vmatmul.mubr.f32.gmra.mrb[132].mxu0 %v4811_v26  ;;  %4005 = vmatprep.subr.bf16.mxu1 %v4236_v0  ;;  %v4869_v18 = vld [vmem:[%s4368_s30 + $0x81] sm:$0xff]  ;;  %v4018_v25 = vpack.c.bf16 %v2425_v40, %v2424_v38 }
 0x182   : > { %908 = vst [vmem:[%s4738_s8 + $0x60] sm:$0xff] %v876_v47  ;;  %v765_v2 = vadd.f32 %v764_v28, %v539_v45  ;;  %v766_v53 = vpop.f32.mrb[27].mxu1  ;;  %2132 = vmatmul.mubr.f32.gmra.mrb[132].mxu1 %v4789_v11  ;;  %1911 = vmatprep.mubr.f32.mxu0 %v4814_v34  ;;  %v2426_v45 = vld [vmem:[#allocation2 + $0x670] sm:$0xff]  ;;  %v4879_v28 = vld [vmem:[%s4368_s30 + $0x80] sm:$0xff] }
 0x183   : > { %2136 = vmatprep.mubr.f32.mxu1 %v3434_v19  ;;  %3959 = vmatpush1.bf16.msra.mxu0 %v3958_v20  ;;  %v4883_v52 = vld [vmem:[%s4368_s30 + $0x91] sm:$0xff] }
 0x184   : > { %v877_v56 = vadd.f32 %v4731_v48, %v765_v2  ;;  %v544_v58 = vpop.f32.mrb[28].mxu0  ;;  %4007 = vmatpush1.bf16.msra.mxu1 %v4006_v57  ;;  %3960 = vmatprep.subr.bf16.mxu0 %v4236_v0  ;;  %v2427_v57 = vld [vmem:[#allocation2 + $0x678] sm:$0xff] }
 0x185   : > { %v769_v61 = vpop.f32.mrb[28].mxu1  ;;  %v546_v1 = vpop.f32.mrb[29].mxu0  ;;  %1912 = vmatmul.mubr.f32.gmra.mrb[134].mxu0 %v4824_v55  ;;  %4008 = vmatprep.subr.bf16.mxu1 %v4236_v0  ;;  %v4021_v53 = vpack.c.bf16 %v2427_v57, %v2426_v45 }
 0x186   : > { %909 = vst [vmem:[%s4738_s8 + $0x68] sm:$0xff] %v877_v56  ;;  %v770_v5 = vadd.f32 %v769_v61, %v544_v58  ;;  %v771_v33 = vpop.f32.mrb[29].mxu1  ;;  %2137 = vmatmul.mubr.f32.gmra.mrb[134].mxu1 %v4798_v60  ;;  %1916 = vmatprep.mubr.f32.mxu0 %v4827_v46  ;;  %v4015_v60 = vpack.c.bf16 %v2423_v36, %v2422_v51  ;;  %v2428_v58 = vld [vmem:[#allocation2 + $0x680] sm:$0xff]  ;;  %v4893_v61 = vld [vmem:[%s4368_s30 + $0x90] sm:$0xff] }
 0x187   : > { %2141 = vmatprep.mubr.f32.mxu1 %v4802_v35  ;;  %3962 = vmatpush1.bf16.msra.mxu0 %v3961_v30  ;;  %v2522_v35 = vld [vmem:[#allocation2 + $0x768] sm:$0xff]  ;;  %v4897_v1 = vld [vmem:[%s4368_s30 + $0x99] sm:$0xff] }
 0x188   : > { %v878_v11 = vadd.f32 %v4731_v48, %v770_v5  ;;  %v549_v13 = vpop.f32.mrb[30].mxu0  ;;  %4010 = vmatpush1.bf16.msra.mxu1 %v4009_v59  ;;  %3963 = vmatprep.subr.bf16.mxu0 %v4236_v0  ;;  %v3970_v44 = vpack.c.bf16 %v2522_v35, %v2521_v49  ;;  %v2429_v59 = vld [vmem:[#allocation2 + $0x688] sm:$0xff] }
 0x189   : > { %v774_v62 = vpop.f32.mrb[30].mxu1  ;;  %v551_v19 = vpop.f32.mrb[31].mxu0  ;;  %1917 = vmatmul.mubr.f32.gmra.mrb[136].mxu0 %v4837_v8  ;;  %4011 = vmatprep.subr.bf16.mxu1 %v4236_v0  ;;  %v4024_v33 = vpack.c.bf16 %v2429_v59, %v2428_v58 }
 0x18a   : > { %910 = vst [vmem:[%s4738_s8 + $0x70] sm:$0xff] %v878_v11  ;;  %v775_v21 = vadd.f32 %v774_v62, %v549_v13  ;;  %v776_v24 = vpop.f32.mrb[31].mxu1  ;;  %2142 = vmatmul.mubr.f32.gmra.mrb[136].mxu1 %v4811_v26  ;;  %1921 = vmatprep.mubr.f32.mxu0 %v4841_v9  ;;  %v2523_v26 = vld [vmem:[#allocation2 + $0x770] sm:$0xff]  ;;  %v4907_v62 = vld [vmem:[%s4368_s30 + $0x98] sm:$0xff] }
 0x18b   : > { %2146 = vmatprep.mubr.f32.mxu1 %v4814_v34  ;;  %3965 = vmatpush1.bf16.msra.mxu0 %v3964_v39  ;;  %v2524_v34 = vld [vmem:[#allocation2 + $0x778] sm:$0xff]  ;;  %v2430_v13 = vld [vmem:[#allocation2 + $0x690] sm:$0xff] }
 0x18c   : > { %v879_v32 = vadd.f32 %v4731_v48, %v775_v21  ;;  %v554_v7 = vpop.f32.mrb[32].mxu0  ;;  %4013 = vmatpush1.bf16.msra.mxu1 %v4012_v17  ;;  %3966 = vmatprep.subr.bf16.mxu0 %v4236_v0  ;;  %v3973_v22 = vpack.c.bf16 %v2524_v34, %v2523_v26  ;;  %v2431_v17 = vld [vmem:[#allocation2 + $0x698] sm:$0xff]  ;;  %v4911_v19 = vld [vmem:[%s4368_s30 + $0xa9] sm:$0xff] }
 0x18d   : > { %v779_v14 = vpop.f32.mrb[32].mxu1  ;;  %v556_v37 = vpop.f32.mrb[33].mxu0  ;;  %1922 = vmatmul.mubr.f32.gmra.mrb[138].mxu0 %v4851_v27  ;;  %4014 = vmatprep.subr.bf16.mxu1 %v4236_v0  ;;  %v4027_v24 = vpack.c.bf16 %v2431_v17, %v2430_v13 }
 0x18e   : > { %911 = vst [vmem:[%s4738_s8 + $0x78] sm:$0xff] %v879_v32  ;;  %v780_v43 = vadd.f32 %v779_v14, %v554_v7  ;;  %v781_v6 = vpop.f32.mrb[33].mxu1  ;;  %2147 = vmatmul.mubr.f32.gmra.mrb[138].mxu1 %v4824_v55  ;;  %1926 = vmatprep.mubr.f32.mxu0 %v4855_v12  ;;  %v2525_v55 = vld [vmem:[#allocation2 + $0x780] sm:$0xff]  ;;  %v4921_v14 = vld [vmem:[%s4368_s30 + $0xa8] sm:$0xff]  ;;  %v4925_v37 = vld [vmem:[%s4368_s30 + $0xb1] sm:$0xff] }
 0x18f   : > { %2151 = vmatprep.mubr.f32.mxu1 %v4827_v46  ;;  %3968 = vmatpush1.bf16.msra.mxu0 %v3967_v29  ;;  %v2526_v46 = vld [vmem:[#allocation2 + $0x788] sm:$0xff]  ;;  %v2432_v7 = vld [vmem:[#allocation2 + $0x6a0] sm:$0xff] }
 0x190   : > { %v880_v16 = vadd.f32 %v4731_v48, %v780_v43  ;;  %v559_v41 = vpop.f32.mrb[34].mxu0  ;;  %4016 = vmatpush1.bf16.msra.mxu1 %v4015_v60  ;;  %3969 = vmatprep.subr.bf16.mxu0 %v4236_v0  ;;  %v3976_v3 = vpack.c.bf16 %v2526_v46, %v2525_v55  ;;  %v2433_v60 = vld [vmem:[#allocation2 + $0x6a8] sm:$0xff] }
 0x191   : > { %v784_v20 = vpop.f32.mrb[34].mxu1  ;;  %v561_v47 = vpop.f32.mrb[35].mxu0  ;;  %1927 = vmatmul.mubr.f32.gmra.mrb[140].mxu0 %v4865_v15  ;;  %4017 = vmatprep.subr.bf16.mxu1 %v4236_v0  ;;  %v4030_v6 = vpack.c.bf16 %v2433_v60, %v2432_v7 }
 0x192   : > { %912 = vst [vmem:[%s4738_s8 + $0x80] sm:$0xff] %v880_v16  ;;  %v785_v63 = vadd.f32 %v784_v20, %v559_v41  ;;  %v786_v50 = vpop.f32.mrb[35].mxu1  ;;  %2152 = vmatmul.mubr.f32.gmra.mrb[140].mxu1 %v4837_v8  ;;  %1931 = vmatprep.mubr.f32.mxu0 %v4869_v18  ;;  %v2527_v8 = vld [vmem:[#allocation2 + $0x790] sm:$0xff]  ;;  %v4939_v47 = vld [vmem:[%s4368_s30 + $0xc1] sm:$0xff] }
 0x193   : > { %2156 = vmatprep.mubr.f32.mxu1 %v4841_v9  ;;  %3971 = vmatpush1.bf16.msra.mxu0 %v3970_v44  ;;  %v2528_v9 = vld [vmem:[#allocation2 + $0x798] sm:$0xff]  ;;  %v2434_v41 = vld [vmem:[#allocation2 + $0x6b0] sm:$0xff] }
 0x194   : > { %v881_v23 = vadd.f32 %v4731_v48, %v785_v63  ;;  %v564_v2 = vpop.f32.mrb[36].mxu0  ;;  %4019 = vmatpush1.bf16.msra.mxu1 %v4018_v25  ;;  %3972 = vmatprep.subr.bf16.mxu0 %v4236_v0  ;;  %v3979_v51 = vpack.c.bf16 %v2528_v9, %v2527_v8  ;;  %v2435_v25 = vld [vmem:[#allocation2 + $0x6b8] sm:$0xff]  ;;  %v4935_v20 = vld [vmem:[%s4368_s30 + $0xb0] sm:$0xff] }
 0x195   : > { %v789_v30 = vpop.f32.mrb[36].mxu1  ;;  %v566_v56 = vpop.f32.mrb[37].mxu0  ;;  %1932 = vmatmul.mubr.f32.gmra.mrb[142].mxu0 %v4879_v28  ;;  %4020 = vmatprep.subr.bf16.mxu1 %v4236_v0  ;;  %v4033_v50 = vpack.c.bf16 %v2435_v25, %v2434_v41 }
 0x196   : > { %913 = vst [vmem:[%s4738_s8 + $0x88] sm:$0xff] %v881_v23  ;;  %v790_v4 = vadd.f32 %v789_v30, %v564_v2  ;;  %v791_v31 = vpop.f32.mrb[37].mxu1  ;;  %2157 = vmatmul.mubr.f32.gmra.mrb[142].mxu1 %v4851_v27  ;;  %1936 = vmatprep.mubr.f32.mxu0 %v4883_v52  ;;  %v2529_v27 = vld [vmem:[#allocation2 + $0x7a0] sm:$0xff]  ;;  %v4953_v56 = vld [vmem:[%s4368_s30 + $0xc9] sm:$0xff] }
 0x197   : > { %2161 = vmatprep.mubr.f32.mxu1 %v4855_v12  ;;  %3974 = vmatpush1.bf16.msra.mxu0 %v3973_v22  ;;  %v2530_v12 = vld [vmem:[#allocation2 + $0x7a8] sm:$0xff]  ;;  %v2436_v2 = vld [vmem:[#allocation2 + $0x6c0] sm:$0xff] }
 0x198   : > { %v882_v54 = vadd.f32 %v4731_v48, %v790_v4  ;;  %v569_v5 = vpop.f32.mrb[38].mxu0  ;;  %4022 = vmatpush1.bf16.msra.mxu1 %v4021_v53  ;;  %3975 = vmatprep.subr.bf16.mxu0 %v4236_v0  ;;  %v3982_v38 = vpack.c.bf16 %v2530_v12, %v2529_v27  ;;  %v2437_v53 = vld [vmem:[#allocation2 + $0x6c8] sm:$0xff]  ;;  %v4949_v30 = vld [vmem:[%s4368_s30 + $0xc0] sm:$0xff] }
 0x199   : > { %v794_v39 = vpop.f32.mrb[38].mxu1  ;;  %v571_v11 = vpop.f32.mrb[39].mxu0  ;;  %1937 = vmatmul.mubr.f32.gmra.mrb[144].mxu0 %v4893_v61  ;;  %4023 = vmatprep.subr.bf16.mxu1 %v4236_v0  ;;  %v4036_v31 = vpack.c.bf16 %v2437_v53, %v2436_v2  ;;  %v3418_v53 = vld [vmem:[%s4368_s30 + $0xf8] sm:$0xff] }
 0x19a   : > { %914 = vst [vmem:[%s4738_s8 + $0x90] sm:$0xff] %v882_v54  ;;  %v795_v42 = vadd.f32 %v794_v39, %v569_v5  ;;  %v796_v10 = vpop.f32.mrb[39].mxu1  ;;  %2162 = vmatmul.mubr.f32.gmra.mrb[144].mxu1 %v4865_v15  ;;  %1941 = vmatprep.mubr.f32.mxu0 %v4897_v1  ;;  %v2531_v15 = vld [vmem:[#allocation2 + $0x7b0] sm:$0xff]  ;;  %v3414_v39 = vld [vmem:[%s4368_s30 + $0xc8] sm:$0xff]  ;;  %v4965_v11 = vld [vmem:[%s4368_s30 + $0xd9] sm:$0xff] }
 0x19b   : > { %2166 = vmatprep.mubr.f32.mxu1 %v4869_v18  ;;  %3977 = vmatpush1.bf16.msra.mxu0 %v3976_v3  ;;  %v2532_v18 = vld [vmem:[#allocation2 + $0x7b8] sm:$0xff]  ;;  %v2438_v5 = vld [vmem:[#allocation2 + $0x6d0] sm:$0xff] }
 0x19c   : > { %v883_v36 = vadd.f32 %v4731_v48, %v795_v42  ;;  %v574_v21 = vpop.f32.mrb[40].mxu0  ;;  %4025 = vmatpush1.bf16.msra.mxu1 %v4024_v33  ;;  %3978 = vmatprep.subr.bf16.mxu0 %v4236_v0  ;;  %v3985_v45 = vpack.c.bf16 %v2532_v18, %v2531_v15  ;;  %v2439_v33 = vld [vmem:[#allocation2 + $0x6d8] sm:$0xff] }
 0x19d   : > { %v799_v29 = vpop.f32.mrb[40].mxu1  ;;  %v576_v32 = vpop.f32.mrb[41].mxu0  ;;  %1942 = vmatmul.mubr.f32.gmra.mrb[146].mxu0 %v4907_v62  ;;  %4026 = vmatprep.subr.bf16.mxu1 %v4236_v0  ;;  %v4039_v10 = vpack.c.bf16 %v2439_v33, %v2438_v5 }
 0x19e   : > { %915 = vst [vmem:[%s4738_s8 + $0x98] sm:$0xff] %v883_v36  ;;  %v800_v49 = vadd.f32 %v799_v29, %v574_v21  ;;  %v801_v35 = vpop.f32.mrb[41].mxu1  ;;  %2167 = vmatmul.mubr.f32.gmra.mrb[146].mxu1 %v4879_v28  ;;  %1946 = vmatprep.mubr.f32.mxu0 %v4911_v19  ;;  %v2533_v28 = vld [vmem:[#allocation2 + $0x7c0] sm:$0xff]  ;;  %v3415_v29 = vld [vmem:[%s4368_s30 + $0xd8] sm:$0xff] }
 0x19f   : > { %2171 = vmatprep.mubr.f32.mxu1 %v4883_v52  ;;  %3980 = vmatpush1.bf16.msra.mxu0 %v3979_v51  ;;  %v2534_v52 = vld [vmem:[#allocation2 + $0x7c8] sm:$0xff]  ;;  %v2440_v21 = vld [vmem:[#allocation2 + $0x6e0] sm:$0xff] }
 0x1a0   : > { %v884_v40 = vadd.f32 %v4731_v48, %v800_v49  ;;  %v579_v43 = vpop.f32.mrb[42].mxu0  ;;  %4028 = vmatpush1.bf16.msra.mxu1 %v4027_v24  ;;  %3981 = vmatprep.subr.bf16.mxu0 %v4236_v0  ;;  %v3988_v58 = vpack.c.bf16 %v2534_v52, %v2533_v28  ;;  %v2441_v24 = vld [vmem:[#allocation2 + $0x6e8] sm:$0xff] }
 0x1a1   : > { %v804_v44 = vpop.f32.mrb[42].mxu1  ;;  %v581_v16 = vpop.f32.mrb[43].mxu0  ;;  %1947 = vmatmul.mubr.f32.gmra.mrb[148].mxu0 %v4921_v14  ;;  %4029 = vmatprep.subr.bf16.mxu1 %v4236_v0  ;;  %v3448_v32 = vld [vmem:[%s4368_s30 + $0xe1] sm:$0xff]  ;;  %v4042_v35 = vpack.c.bf16 %v2441_v24, %v2440_v21 }
 0x1a2   : > { %916 = vst [vmem:[%s4738_s8 + $0xa0] sm:$0xff] %v884_v40  ;;  %v805_v26 = vadd.f32 %v804_v44, %v579_v43  ;;  %v806_v34 = vpop.f32.mrb[43].mxu1  ;;  %2172 = vmatmul.mubr.f32.gmra.mrb[148].mxu1 %v4893_v61  ;;  %1951 = vmatprep.mubr.f32.mxu0 %v4925_v37  ;;  %v2535_v61 = vld [vmem:[#allocation2 + $0x7d0] sm:$0xff]  ;;  %v3416_v44 = vld [vmem:[%s4368_s30 + $0xe0] sm:$0xff] }
 0x1a3   : > { %2176 = vmatprep.mubr.f32.mxu1 %v4897_v1  ;;  %3983 = vmatpush1.bf16.msra.mxu0 %v3982_v38  ;;  %v2536_v1 = vld [vmem:[#allocation2 + $0x7d8] sm:$0xff]  ;;  %v2442_v43 = vld [vmem:[#allocation2 + $0x6f0] sm:$0xff] }
 0x1a4   : > { %v885_v57 = vadd.f32 %v4731_v48, %v805_v26  ;;  %v584_v63 = vpop.f32.mrb[44].mxu0  ;;  %4031 = vmatpush1.bf16.msra.mxu1 %v4030_v6  ;;  %3984 = vmatprep.subr.bf16.mxu0 %v4236_v0  ;;  %v3991_v13 = vpack.c.bf16 %v2536_v1, %v2535_v61  ;;  %v2443_v6 = vld [vmem:[#allocation2 + $0x6f8] sm:$0xff] }
 0x1a5   : > { %v809_v22 = vpop.f32.mrb[44].mxu1  ;;  %v586_v23 = vpop.f32.mrb[45].mxu0  ;;  %1952 = vmatmul.mubr.f32.gmra.mrb[150].mxu0 %v4935_v20  ;;  %4032 = vmatprep.subr.bf16.mxu1 %v4236_v0  ;;  %v3449_v16 = vld [vmem:[%s4368_s30 + $0xf1] sm:$0xff]  ;;  %v4045_v34 = vpack.c.bf16 %v2443_v6, %v2442_v43  ;;  %v3456_v43 = vld [vmem:[%s4368_s30 + $0x141] sm:$0xff] }
 0x1a6   : > { %917 = vst [vmem:[%s4738_s8 + $0xa8] sm:$0xff] %v885_v57  ;;  %v810_v55 = vadd.f32 %v809_v22, %v584_v63  ;;  %v811_v46 = vpop.f32.mrb[45].mxu1  ;;  %2177 = vmatmul.mubr.f32.gmra.mrb[150].mxu1 %v4907_v62  ;;  %1956 = vmatprep.mubr.f32.mxu0 %v4939_v47  ;;  %v2537_v62 = vld [vmem:[#allocation2 + $0x7e0] sm:$0xff]  ;;  %v3417_v63 = vld [vmem:[%s4368_s30 + $0xf0] sm:$0xff] }
 0x1a7   : > { %2181 = vmatprep.mubr.f32.mxu1 %v4911_v19  ;;  %3986 = vmatpush1.bf16.msra.mxu0 %v3985_v45  ;;  %v2538_v19 = vld [vmem:[#allocation2 + $0x7e8] sm:$0xff]  ;;  %v3452_v61 = vld [vmem:[%s4368_s30 + $0x111] sm:$0xff] }
 0x1a8   : > { %v886_v59 = vadd.f32 %v4731_v48, %v810_v55  ;;  %v589_v4 = vpop.f32.mrb[46].mxu0  ;;  %4034 = vmatpush1.bf16.msra.mxu1 %v4033_v50  ;;  %3987 = vmatprep.subr.bf16.mxu0 %v4236_v0  ;;  %v3994_v7 = vpack.c.bf16 %v2538_v19, %v2537_v62  ;;  %v3450_v50 = vld [vmem:[%s4368_s30 + $0xf9] sm:$0xff]  ;;  %v3451_v55 = vld [vmem:[%s4368_s30 + $0x109] sm:$0xff] }
 0x1a9   : > { %v814_v3 = vpop.f32.mrb[46].mxu1  ;;  %v591_v54 = vpop.f32.mrb[47].mxu0  ;;  %1957 = vmatmul.mubr.f32.gmra.mrb[152].mxu0 %v4949_v30  ;;  %4035 = vmatprep.subr.bf16.mxu1 %v4236_v0  ;;  %v3421_v19 = vld [vmem:[%s4368_s30 + $0x120] sm:$0xff] }
 0x1aa   : > { %918 = vst [vmem:[%s4738_s8 + $0xb0] sm:$0xff] %v886_v59  ;;  %v815_v8 = vadd.f32 %v814_v3, %v589_v4  ;;  %v816_v9 = vpop.f32.mrb[47].mxu1  ;;  %2182 = vmatmul.mubr.f32.gmra.mrb[152].mxu1 %v4921_v14  ;;  %1961 = vmatprep.mubr.f32.mxu0 %v4953_v56  ;;  %v2539_v14 = vld [vmem:[#allocation2 + $0x7f0] sm:$0xff] }
 0x1ab   : > { %2186 = vmatprep.mubr.f32.mxu1 %v4925_v37  ;;  %3989 = vmatpush1.bf16.msra.mxu0 %v3988_v58  ;;  %v2540_v37 = vld [vmem:[#allocation2 + $0x7f8] sm:$0xff]  ;;  %v3420_v9 = vld [vmem:[%s4368_s30 + $0x110] sm:$0xff] }
 0x1ac   : > { %v887_v17 = vadd.f32 %v4731_v48, %v815_v8  ;;  %v594_v42 = vpop.f32.mrb[48].mxu0  ;;  %4037 = vmatpush1.bf16.msra.mxu1 %v4036_v31  ;;  %3990 = vmatprep.subr.bf16.mxu0 %v4236_v0  ;;  %v3997_v41 = vpack.c.bf16 %v2540_v37, %v2539_v14  ;;  %v3419_v31 = vld [vmem:[%s4368_s30 + $0x108] sm:$0xff] }
 0x1ad   : > { %v819_v51 = vpop.f32.mrb[48].mxu1  ;;  %v596_v36 = vpop.f32.mrb[49].mxu0  ;;  %1962 = vmatmul.mubr.f32.gmra.mrb[154].mxu0 %v3414_v39  ;;  %4038 = vmatprep.subr.bf16.mxu1 %v4236_v0 }
 0x1ae   : > { %919 = vst [vmem:[%s4738_s8 + $0xb8] sm:$0xff] %v887_v17  ;;  %v820_v27 = vadd.f32 %v819_v51, %v594_v42  ;;  %v821_v12 = vpop.f32.mrb[49].mxu1  ;;  %2187 = vmatmul.mubr.f32.gmra.mrb[154].mxu1 %v4935_v20  ;;  %1966 = vmatprep.mubr.f32.mxu0 %v4965_v11  ;;  %v3454_v51 = vld [vmem:[%s4368_s30 + $0x129] sm:$0xff] }
 0x1af   : > { %2191 = vmatprep.mubr.f32.mxu1 %v4939_v47  ;;  %3992 = vmatpush1.bf16.msra.mxu0 %v3991_v13 }
 0x1b0   : > { %v888_v60 = vadd.f32 %v4731_v48, %v820_v27  ;;  %v599_v49 = vpop.f32.mrb[50].mxu0  ;;  %4040 = vmatpush1.bf16.msra.mxu1 %v4039_v10  ;;  %3993 = vmatprep.subr.bf16.mxu0 %v4236_v0 }
 0x1b1   : > { %v824_v38 = vpop.f32.mrb[50].mxu1  ;;  %v601_v40 = vpop.f32.mrb[51].mxu0  ;;  %1967 = vmatmul.mubr.f32.gmra.mrb[156].mxu0 %v3415_v29  ;;  %4041 = vmatprep.subr.bf16.mxu1 %v4236_v0 }
 0x1b2   : > { %920 = vst [vmem:[%s4738_s8 + $0xc0] sm:$0xff] %v888_v60  ;;  %v825_v15 = vadd.f32 %v824_v38, %v599_v49  ;;  %v826_v18 = vpop.f32.mrb[51].mxu1  ;;  %2192 = vmatmul.mubr.f32.gmra.mrb[156].mxu1 %v4949_v30  ;;  %1971 = vmatprep.mubr.f32.mxu0 %v3448_v32  ;;  %v3423_v40 = vld [vmem:[%s4368_s30 + $0x138] sm:$0xff] }
 0x1b3   : > { %2196 = vmatprep.mubr.f32.mxu1 %v4953_v56  ;;  %3995 = vmatpush1.bf16.msra.mxu0 %v3994_v7  ;;  %v3455_v7 = vld [vmem:[%s4368_s30 + $0x139] sm:$0xff] }
 0x1b4   : > { %v889_v25 = vadd.f32 %v4731_v48, %v825_v15  ;;  %v604_v26 = vpop.f32.mrb[52].mxu0  ;;  %4043 = vmatpush1.bf16.msra.mxu1 %v4042_v35  ;;  %3996 = vmatprep.subr.bf16.mxu0 %v4236_v0 }
 0x1b5   : > { %v829_v20 = vpop.f32.mrb[52].mxu1  ;;  %v606_v47 = vpop.f32.mrb[53].mxu0  ;;  %1972 = vmatmul.mubr.f32.gmra.mrb[158].mxu0 %v3416_v44  ;;  %4044 = vmatprep.subr.bf16.mxu1 %v4236_v0 }
 0x1b6   : > { %921 = vst [vmem:[%s4738_s8 + $0xc8] sm:$0xff] %v889_v25  ;;  %v830_v45 = vadd.f32 %v829_v20, %v604_v26  ;;  %v831_v57 = vpop.f32.mrb[53].mxu1  ;;  %2197 = vmatmul.mubr.f32.gmra.mrb[158].mxu1 %v3414_v39  ;;  %1976 = vmatprep.mubr.f32.mxu0 %v3449_v16  ;;  %v3453_v39 = vld [vmem:[%s4368_s30 + $0x121] sm:$0xff]  ;;  %v3457_v26 = vld [vmem:[%s4368_s30 + $0x151] sm:$0xff] }
 0x1b7   : > { %2201 = vmatprep.mubr.f32.mxu1 %v4965_v11  ;;  %3998 = vmatpush1.bf16.msra.mxu0 %v3997_v41  ;;  %v3424_v25 = vld [vmem:[%s4368_s30 + $0x140] sm:$0xff] }
 0x1b8   : > { %v890_v28 = vadd.f32 %v4731_v48, %v830_v45  ;;  %v609_v52 = vpop.f32.mrb[54].mxu0  ;;  %4046 = vmatpush1.bf16.msra.mxu1 %v4045_v34  ;;  %v4998_v48 = vld [vmem:[%s5382_s2] ss:$0 sm:$0xff] }
 0x1b9   : > { %v834_v22 = vpop.f32.mrb[54].mxu1  ;;  %v611_v23 = vpop.f32.mrb[55].mxu0  ;;  %1977 = vmatmul.mubr.f32.gmra.mrb[160].mxu0 %v3417_v63 }
 0x1ba   : > { %922 = vst [vmem:[%s4738_s8 + $0xd0] sm:$0xff] %v890_v28  ;;  %v835_v0 = vadd.f32 %v834_v22, %v609_v52  ;;  %v836_v2 = vpop.f32.mrb[55].mxu1  ;;  %2202 = vmatmul.mubr.f32.gmra.mrb[160].mxu1 %v3415_v29  ;;  %1981 = vmatprep.mubr.f32.mxu0 %v3450_v50  ;;  %v3458_v28 = vld [vmem:[%s4368_s30 + $0x159] sm:$0xff] }
 0x1bb   : > { %2206 = vmatprep.mubr.f32.mxu1 %v3448_v32  ;;  %v3422_v32 = vld [vmem:[%s4368_s30 + $0x128] sm:$0xff] }
 0x1bc   : > { %v891_v46 = vadd.f32 %v4998_v48, %v835_v0  ;;  %v614_v30 = vpop.f32.mrb[56].mxu0 }
 0x1bd   : > { %v839_v56 = vpop.f32.mrb[56].mxu1  ;;  %v616_v58 = vpop.f32.mrb[57].mxu0  ;;  %1982 = vmatmul.mubr.f32.gmra.mrb[162].mxu0 %v3418_v53 }
 0x1be   : > { %923 = vst [vmem:[%s4738_s8 + $0xd8] sm:$0xff] %v891_v46  ;;  %v840_v59 = vadd.f32 %v839_v56, %v614_v30  ;;  %v841_v4 = vpop.f32.mrb[57].mxu1  ;;  %2207 = vmatmul.mubr.f32.gmra.mrb[162].mxu1 %v3416_v44  ;;  %1986 = vmatprep.mubr.f32.mxu0 %v3451_v55  ;;  %v3459_v46 = vld [vmem:[%s4368_s30 + $0x169] sm:$0xff] }
 0x1bf   : > { %2211 = vmatprep.mubr.f32.mxu1 %v3449_v16 }
 0x1c0   : > { %v892_v1 = vadd.f32 %v4998_v48, %v840_v59  ;;  %v619_v3 = vpop.f32.mrb[58].mxu0 }
 0x1c1   : > { %v844_v54 = vpop.f32.mrb[58].mxu1  ;;  %v621_v5 = vpop.f32.mrb[59].mxu0  ;;  %1987 = vmatmul.mubr.f32.gmra.mrb[164].mxu0 %v3419_v31 }
 0x1c2   : > { %924 = vst [vmem:[%s4738_s8 + $0xe0] sm:$0xff] %v892_v1  ;;  %v845_v33 = vadd.f32 %v844_v54, %v619_v3  ;;  %v846_v8 = vpop.f32.mrb[59].mxu1  ;;  %2212 = vmatmul.mubr.f32.gmra.mrb[164].mxu1 %v3417_v63  ;;  %1991 = vmatprep.mubr.f32.mxu0 %v3452_v61  ;;  %v5036_v1 = vld [vmem:[%s4368_s30 + $0x171] sm:$0xff] }
 0x1c3   : > { %2216 = vmatprep.mubr.f32.mxu1 %v3450_v50  ;;  %v3425_v50 = vld [vmem:[%s4368_s30 + $0x150] sm:$0xff] }
 0x1c4   : > { %v893_v11 = vadd.f32 %v4998_v48, %v845_v33  ;;  %v624_v13 = vpop.f32.mrb[60].mxu0 }
 0x1c5   : > { %v849_v17 = vpop.f32.mrb[60].mxu1  ;;  %v626_v42 = vpop.f32.mrb[61].mxu0  ;;  %1992 = vmatmul.mubr.f32.gmra.mrb[166].mxu0 %v3420_v9 }
 0x1c6   : > { %925 = vst [vmem:[%s4738_s8 + $0xe8] sm:$0xff] %v893_v11  ;;  %v850_v10 = vadd.f32 %v849_v17, %v624_v13  ;;  %v851_v62 = vpop.f32.mrb[61].mxu1  ;;  %2217 = vmatmul.mubr.f32.gmra.mrb[166].mxu1 %v3418_v53  ;;  %1996 = vmatprep.mubr.f32.mxu0 %v3453_v39  ;;  %v5043_v11 = vld [vmem:[%s4368_s30 + $0x181] sm:$0xff] }
 0x1c7   : > { %2221 = vmatprep.mubr.f32.mxu1 %v3451_v55  ;;  %v3426_v55 = vld [vmem:[%s4368_s30 + $0x158] sm:$0xff] }
 0x1c8   : > { %v894_v36 = vadd.f32 %v4998_v48, %v850_v10  ;;  %v629_v21 = vpop.f32.mrb[62].mxu0 }
 0x1c9   : > { %v854_v24 = vpop.f32.mrb[62].mxu1  ;;  %v631_v27 = vpop.f32.mrb[63].mxu0  ;;  %1997 = vmatmul.mubr.f32.gmra.mrb[168].mxu0 %v3421_v19 }
 0x1ca   : > { %926 = vst [vmem:[%s4738_s8 + $0xf0] sm:$0xff] %v894_v36  ;;  %v855_v12 = vadd.f32 %v854_v24, %v629_v21  ;;  %v856_v29 = vpop.f32.mrb[63].mxu1  ;;  %2222 = vmatmul.mubr.f32.gmra.mrb[168].mxu1 %v3419_v31  ;;  %2001 = vmatprep.mubr.f32.mxu0 %v3454_v51  ;;  %v5050_v36 = vld [vmem:[%s4368_s30 + $0x189] sm:$0xff] }
 0x1cb   : > { %2226 = vmatprep.mubr.f32.mxu1 %v3452_v61  ;;  %v3427_v61 = vld [vmem:[%s4368_s30 + $0x168] sm:$0xff] }
 0x1cc   : > { %v895_v60 = vadd.f32 %v4998_v48, %v855_v12  ;;  %v1188_v49 = vpop.f32.mrb[64].mxu0 }
 0x1cd   : > { %v1413_v35 = vpop.f32.mrb[64].mxu1  ;;  %v1190_v14 = vpop.f32.mrb[65].mxu0  ;;  %2002 = vmatmul.mubr.f32.gmra.mrb[170].mxu0 %v3422_v32 }
 0x1ce   : > { %927 = vst [vmem:[%s4738_s8 + $0xf8] sm:$0xff] %v895_v60  ;;  %v1414_v37 = vadd.f32 %v1413_v35, %v1188_v49  ;;  %v1415_v38 = vpop.f32.mrb[65].mxu1  ;;  %2227 = vmatmul.mubr.f32.gmra.mrb[170].mxu1 %v3420_v9  ;;  %2006 = vmatprep.mubr.f32.mxu0 %v3455_v7  ;;  %v5058_v60 = vld [vmem:[%s4368_s30 + $0x199] sm:$0xff] }
 0x1cf   : > { %2231 = vmatprep.mubr.f32.mxu1 %v3453_v39  ;;  %v3428_v39 = vld [vmem:[%s4368_s30 + $0x170] sm:$0xff] }
 0x1d0   : > { %v1572_v6 = vadd.f32 %v4998_v48, %v1414_v37  ;;  %v1193_v15 = vpop.f32.mrb[66].mxu0 }
 0x1d1   : > { %v1418_v18 = vpop.f32.mrb[66].mxu1  ;;  %v1195_v44 = vpop.f32.mrb[67].mxu0  ;;  %2007 = vmatmul.mubr.f32.gmra.mrb[172].mxu0 %v3423_v40 }
 0x1d2   : > { %3305 = vst [vmem:[%s4738_s8 + $0x100] sm:$0xff] %v1572_v6  ;;  %v1419_v16 = vadd.f32 %v1418_v18, %v1193_v15  ;;  %v1420_v41 = vpop.f32.mrb[67].mxu1  ;;  %2232 = vmatmul.mubr.f32.gmra.mrb[172].mxu1 %v3421_v19  ;;  %2011 = vmatprep.mubr.f32.mxu0 %v3456_v43  ;;  %v5066_v6 = vld [vmem:[%s4368_s30 + $0x1a1] sm:$0xff] }
 0x1d3   : > { %2236 = vmatprep.mubr.f32.mxu1 %v3454_v51  ;;  %v3429_v51 = vld [vmem:[%s4368_s30 + $0x180] sm:$0xff] }
 0x1d4   : > { %v1573_v34 = vadd.f32 %v4998_v48, %v1419_v16  ;;  %v1198_v20 = vpop.f32.mrb[68].mxu0 }
 0x1d5   : > { %v1423_v47 = vpop.f32.mrb[68].mxu1  ;;  %v1200_v45 = vpop.f32.mrb[69].mxu0  ;;  %2012 = vmatmul.mubr.f32.gmra.mrb[174].mxu0 %v3424_v25 }
 0x1d6   : > { %3306 = vst [vmem:[%s4738_s8 + $0x108] sm:$0xff] %v1573_v34  ;;  %v1424_v57 = vadd.f32 %v1423_v47, %v1198_v20  ;;  %v1425_v63 = vpop.f32.mrb[69].mxu1  ;;  %2237 = vmatmul.mubr.f32.gmra.mrb[174].mxu1 %v3422_v32  ;;  %2016 = vmatprep.mubr.f32.mxu0 %v3457_v26  ;;  %v3593_v34 = vld [vmem:[%s4368_s30 + $0x32] sm:$0xff]  ;;  %v3529_v45 = vld [vmem:[%s4368_s30 + $0x1a] sm:$0xff] }
 0x1d7   : > { %2241 = vmatprep.mubr.f32.mxu1 %v3455_v7  ;;  %v3430_v7 = vld [vmem:[%s4368_s30 + $0x188] sm:$0xff] }
 0x1d8   : > { %v1574_v52 = vadd.f32 %v4998_v48, %v1424_v57  ;;  %v1203_v22 = vpop.f32.mrb[70].mxu0 }
 0x1d9   : > { %v1428_v23 = vpop.f32.mrb[70].mxu1  ;;  %v1205_v0 = vpop.f32.mrb[71].mxu0  ;;  %2017 = vmatmul.mubr.f32.gmra.mrb[176].mxu0 %v3425_v50 }
 0x1da   : > { %3307 = vst [vmem:[%s4738_s8 + $0x110] sm:$0xff] %v1574_v52  ;;  %v1429_v2 = vadd.f32 %v1428_v23, %v1203_v22  ;;  %v1430_v53 = vpop.f32.mrb[71].mxu1  ;;  %2242 = vmatmul.mubr.f32.gmra.mrb[176].mxu1 %v3423_v40  ;;  %2021 = vmatprep.mubr.f32.mxu0 %v3458_v28  ;;  %v3561_v52 = vld [vmem:[%s4368_s30 + $0x31] sm:$0xff]  ;;  %v3497_v22 = vld [vmem:[%s4368_s30 + $0x19] sm:$0xff] }
 0x1db   : > { %2246 = vmatprep.mubr.f32.mxu1 %v3456_v43  ;;  %v3431_v43 = vld [vmem:[%s4368_s30 + $0x198] sm:$0xff]  ;;  %v3530_v53 = vld [vmem:[%s4368_s30 + $0x22] sm:$0xff] }
 0x1dc   : > { %v1575_v30 = vadd.f32 %v4998_v48, %v1429_v2  ;;  %v1208_v56 = vpop.f32.mrb[72].mxu0  ;;  %v3594_v23 = vld [vmem:[%s4368_s30 + $0x3a] sm:$0xff] }
 0x1dd   : > { %v1433_v58 = vpop.f32.mrb[72].mxu1  ;;  %v1210_v59 = vpop.f32.mrb[73].mxu0  ;;  %2022 = vmatmul.mubr.f32.gmra.mrb[178].mxu0 %v3426_v55 }
 0x1de   : > { %3308 = vst [vmem:[%s4738_s8 + $0x118] sm:$0xff] %v1575_v30  ;;  %v1434_v4 = vadd.f32 %v1433_v58, %v1208_v56  ;;  %v1435_v31 = vpop.f32.mrb[73].mxu1  ;;  %2247 = vmatmul.mubr.f32.gmra.mrb[178].mxu1 %v3424_v25  ;;  %2026 = vmatprep.mubr.f32.mxu0 %v3459_v46  ;;  %v3562_v58 = vld [vmem:[%s4368_s30 + $0x39] sm:$0xff]  ;;  %v3498_v59 = vld [vmem:[%s4368_s30 + $0x21] sm:$0xff] }
 0x1df   : > { %2251 = vmatprep.mubr.f32.mxu1 %v3457_v26  ;;  %v3432_v26 = vld [vmem:[%s4368_s30 + $0x1a0] sm:$0xff] }
 0x1e0   : > { %v1576_v3 = vadd.f32 %v4998_v48, %v1434_v4  ;;  %v1213_v54 = vpop.f32.mrb[74].mxu0  ;;  %v3595_v4 = vld [vmem:[%s4368_s30 + $0x4a] sm:$0xff] }
 0x1e1   : > { %v1438_v5 = vpop.f32.mrb[74].mxu1  ;;  %v1215_v33 = vpop.f32.mrb[75].mxu0  ;;  %2027 = vmatmul.mubr.f32.gmra.mrb[180].mxu0 %v3427_v61 }
 0x1e2   : > { %3309 = vst [vmem:[%s4738_s8 + $0x120] sm:$0xff] %v1576_v3  ;;  %v1439_v8 = vadd.f32 %v1438_v5, %v1213_v54  ;;  %v1440_v9 = vpop.f32.mrb[75].mxu1  ;;  %2252 = vmatmul.mubr.f32.gmra.mrb[180].mxu1 %v3425_v50  ;;  %2031 = vmatprep.mubr.f32.mxu0 %v5036_v1 }
 0x1e3   : > { %2256 = vmatprep.mubr.f32.mxu1 %v3458_v28  ;;  %v3596_v9 = vld [vmem:[%s4368_s30 + $0x52] sm:$0xff] }
 0x1e4   : > { %v1577_v13 = vadd.f32 %v4998_v48, %v1439_v8  ;;  %v1218_v17 = vpop.f32.mrb[76].mxu0  ;;  %v3563_v8 = vld [vmem:[%s4368_s30 + $0x49] sm:$0xff] }
 0x1e5   : > { %v1443_v42 = vpop.f32.mrb[76].mxu1  ;;  %v1220_v10 = vpop.f32.mrb[77].mxu0  ;;  %2032 = vmatmul.mubr.f32.gmra.mrb[182].mxu0 %v3428_v39 }
 0x1e6   : > { %3310 = vst [vmem:[%s4738_s8 + $0x128] sm:$0xff] %v1577_v13  ;;  %v1444_v62 = vadd.f32 %v1443_v42, %v1218_v17  ;;  %v1445_v19 = vpop.f32.mrb[77].mxu1  ;;  %2257 = vmatmul.mubr.f32.gmra.mrb[182].mxu1 %v3426_v55  ;;  %2036 = vmatprep.mubr.f32.mxu0 %v5043_v11 }
 0x1e7   : > { %2261 = vmatprep.mubr.f32.mxu1 %v3459_v46  ;;  %v3564_v19 = vld [vmem:[%s4368_s30 + $0x51] sm:$0xff] }
 0x1e8   : > { %v1578_v21 = vadd.f32 %v4998_v48, %v1444_v62  ;;  %v1223_v24 = vpop.f32.mrb[78].mxu0 }
 0x1e9   : > { %v1448_v27 = vpop.f32.mrb[78].mxu1  ;;  %v1225_v12 = vpop.f32.mrb[79].mxu0  ;;  %2037 = vmatmul.mubr.f32.gmra.mrb[184].mxu0 %v3429_v51 }
 0x1ea   : > { %3311 = vst [vmem:[%s4738_s8 + $0x130] sm:$0xff] %v1578_v21  ;;  %v1449_v29 = vadd.f32 %v1448_v27, %v1223_v24  ;;  %v1450_v32 = vpop.f32.mrb[79].mxu1  ;;  %2262 = vmatmul.mubr.f32.gmra.mrb[184].mxu1 %v3427_v61  ;;  %2041 = vmatprep.mubr.f32.mxu0 %v5050_v36 }
 0x1eb   : > { %2266 = vmatprep.mubr.f32.mxu1 %v5036_v1 }
 0x1ec   : > { %v1579_v49 = vadd.f32 %v4998_v48, %v1449_v29  ;;  %v1228_v35 = vpop.f32.mrb[80].mxu0 }
 0x1ed   : > { %v1453_v14 = vpop.f32.mrb[80].mxu1  ;;  %v1230_v37 = vpop.f32.mrb[81].mxu0  ;;  %2042 = vmatmul.mubr.f32.gmra.mrb[186].mxu0 %v3430_v7 }
 0x1ee   : > { %3312 = vst [vmem:[%s4738_s8 + $0x138] sm:$0xff] %v1579_v49  ;;  %v1454_v38 = vadd.f32 %v1453_v14, %v1228_v35  ;;  %v1455_v40 = vpop.f32.mrb[81].mxu1  ;;  %2267 = vmatmul.mubr.f32.gmra.mrb[186].mxu1 %v3428_v39  ;;  %2046 = vmatprep.mubr.f32.mxu0 %v5058_v60  ;;  %v3598_v49 = vld [vmem:[%s4368_s30 + $0x6a] sm:$0xff] }
 0x1ef   : > { %2271 = vmatprep.mubr.f32.mxu1 %v5043_v11 }
 0x1f0   : > { %v1580_v15 = vadd.f32 %v4998_v48, %v1454_v38  ;;  %v1233_v18 = vpop.f32.mrb[82].mxu0 }
 0x1f1   : > { %v1458_v44 = vpop.f32.mrb[82].mxu1  ;;  %v1235_v16 = vpop.f32.mrb[83].mxu0  ;;  %2047 = vmatmul.mubr.f32.gmra.mrb[188].mxu0 %v3431_v43 }
 0x1f2   : > { %3313 = vst [vmem:[%s4738_s8 + $0x140] sm:$0xff] %v1580_v15  ;;  %v1459_v41 = vadd.f32 %v1458_v44, %v1233_v18  ;;  %v1460_v25 = vpop.f32.mrb[83].mxu1  ;;  %2272 = vmatmul.mubr.f32.gmra.mrb[188].mxu1 %v3429_v51  ;;  %2051 = vmatprep.mubr.f32.mxu0 %v5066_v6  ;;  %v3597_v51 = vld [vmem:[%s4368_s30 + $0x62] sm:$0xff]  ;;  %v3599_v18 = vld [vmem:[%s4368_s30 + $0x7a] sm:$0xff] }
 0x1f3   : > { %2276 = vmatprep.mubr.f32.mxu1 %v5050_v36  ;;  %v3566_v15 = vld [vmem:[%s4368_s30 + $0x69] sm:$0xff] }
 0x1f4   : > { %v1581_v20 = vadd.f32 %v4998_v48, %v1459_v41  ;;  %v1238_v47 = vpop.f32.mrb[84].mxu0 }
 0x1f5   : > { %v1463_v57 = vpop.f32.mrb[84].mxu1  ;;  %v1240_v63 = vpop.f32.mrb[85].mxu0  ;;  %2052 = vmatmul.mubr.f32.gmra.mrb[190].mxu0 %v3432_v26 }
 0x1f6   : > { %3314 = vst [vmem:[%s4738_s8 + $0x148] sm:$0xff] %v1581_v20  ;;  %v1464_v50 = vadd.f32 %v1463_v57, %v1238_v47  ;;  %v1465_v28 = vpop.f32.mrb[85].mxu1  ;;  %2277 = vmatmul.mubr.f32.gmra.mrb[190].mxu1 %v3430_v7  ;;  %2605 = vmatprep.mubr.f32.mxu0 %v3593_v34  ;;  %v3565_v7 = vld [vmem:[%s4368_s30 + $0x61] sm:$0xff]  ;;  %v3567_v20 = vld [vmem:[%s4368_s30 + $0x79] sm:$0xff] }
 0x1f7   : > { %2830 = vmatprep.mubr.f32.mxu1 %v3529_v45  ;;  %v3600_v47 = vld [vmem:[%s4368_s30 + $0x82] sm:$0xff] }
 0x1f8   : > { %v1582_v0 = vadd.f32 %v4998_v48, %v1464_v50  ;;  %v1243_v2 = vpop.f32.mrb[86].mxu0 }
 0x1f9   : > { %v1468_v55 = vpop.f32.mrb[86].mxu1  ;;  %v1245_v46 = vpop.f32.mrb[87].mxu0  ;;  %2606 = vmatmul.mubr.f32.vlgmr.msra.gmra.mrb[192].mxu0 %v3561_v52 }
 0x1fa   : > { %3315 = vst [vmem:[%s4738_s8 + $0x150] sm:$0xff] %v1582_v0  ;;  %v1469_v30 = vadd.f32 %v1468_v55, %v1243_v2  ;;  %v1470_v56 = vpop.f32.mrb[87].mxu1  ;;  %2831 = vmatmul.mubr.f32.vlgmr.msra.gmra.mrb[192].mxu1 %v3497_v22  ;;  %2610 = vmatprep.mubr.f32.mxu0 %v3594_v23  ;;  %v3568_v22 = vld [vmem:[%s4368_s30 + $0x81] sm:$0xff] }
 0x1fb   : > { %2835 = vmatprep.mubr.f32.mxu1 %v3530_v53  ;;  %v3569_v56 = vld [vmem:[%s4368_s30 + $0x91] sm:$0xff] }
 0x1fc   : > { %v1583_v31 = vadd.f32 %v4998_v48, %v1469_v30  ;;  %v1248_v61 = vpop.f32.mrb[88].mxu0 }
 0x1fd   : > { %v1473_v3 = vpop.f32.mrb[88].mxu1  ;;  %v1250_v54 = vpop.f32.mrb[89].mxu0  ;;  %2611 = vmatmul.mubr.f32.gmra.mrb[194].mxu0 %v3562_v58 }
 0x1fe   : > { %3316 = vst [vmem:[%s4738_s8 + $0x158] sm:$0xff] %v1583_v31  ;;  %v1474_v5 = vadd.f32 %v1473_v3, %v1248_v61  ;;  %v1475_v33 = vpop.f32.mrb[89].mxu1  ;;  %2836 = vmatmul.mubr.f32.gmra.mrb[194].mxu1 %v3498_v59  ;;  %2615 = vmatprep.mubr.f32.mxu0 %v3595_v4 }
 0x1ff   : > { %2840 = vmatprep.mubr.f32.mxu1 %v3593_v34  ;;  %v3603_v33 = vld [vmem:[%s4368_s30 + $0xaa] sm:$0xff] }
 0x200   : > { %v1584_v39 = vadd.f32 %v4998_v48, %v1474_v5  ;;  %v1253_v13 = vpop.f32.mrb[90].mxu0  ;;  %v3570_v5 = vld [vmem:[%s4368_s30 + $0x99] sm:$0xff] }
 0x201   : > { %v1478_v17 = vpop.f32.mrb[90].mxu1  ;;  %v1255_v42 = vpop.f32.mrb[91].mxu0  ;;  %2616 = vmatmul.mubr.f32.gmra.mrb[196].mxu0 %v3563_v8 }
 0x202   : > { %3317 = vst [vmem:[%s4738_s8 + $0x160] sm:$0xff] %v1584_v39  ;;  %v1479_v10 = vadd.f32 %v1478_v17, %v1253_v13  ;;  %v1480_v62 = vpop.f32.mrb[91].mxu1  ;;  %2841 = vmatmul.mubr.f32.gmra.mrb[196].mxu1 %v3561_v52  ;;  %2620 = vmatprep.mubr.f32.mxu0 %v3596_v9 }
 0x203   : > { %2845 = vmatprep.mubr.f32.mxu1 %v3594_v23  ;;  %v3601_v23 = vld [vmem:[%s4368_s30 + $0x92] sm:$0xff] }
 0x204   : > { %v1585_v21 = vadd.f32 %v4998_v48, %v1479_v10  ;;  %v1258_v24 = vpop.f32.mrb[92].mxu0  ;;  %v3571_v10 = vld [vmem:[%s4368_s30 + $0xa9] sm:$0xff]  ;;  %v3604_v62 = vld [vmem:[%s4368_s30 + $0xb2] sm:$0xff] }
 0x205   : > { %v1483_v27 = vpop.f32.mrb[92].mxu1  ;;  %v1260_v12 = vpop.f32.mrb[93].mxu0  ;;  %2621 = vmatmul.mubr.f32.gmra.mrb[198].mxu0 %v3564_v19 }
 0x206   : > { %3318 = vst [vmem:[%s4738_s8 + $0x168] sm:$0xff] %v1585_v21  ;;  %v1484_v29 = vadd.f32 %v1483_v27, %v1258_v24  ;;  %v1485_v32 = vpop.f32.mrb[93].mxu1  ;;  %2846 = vmatmul.mubr.f32.gmra.mrb[198].mxu1 %v3562_v58  ;;  %2625 = vmatprep.mubr.f32.mxu0 %v3597_v51  ;;  %v3602_v58 = vld [vmem:[%s4368_s30 + $0x9a] sm:$0xff] }
 0x207   : > { %2850 = vmatprep.mubr.f32.mxu1 %v3595_v4  ;;  %v3605_v32 = vld [vmem:[%s4368_s30 + $0xc2] sm:$0xff] }
 0x208   : > { %v1586_v35 = vadd.f32 %v4998_v48, %v1484_v29  ;;  %v1263_v14 = vpop.f32.mrb[94].mxu0  ;;  %v3572_v29 = vld [vmem:[%s4368_s30 + $0xb1] sm:$0xff] }
 0x209   : > { %v1488_v37 = vpop.f32.mrb[94].mxu1  ;;  %v1265_v38 = vpop.f32.mrb[95].mxu0  ;;  %2626 = vmatmul.mubr.f32.gmra.mrb[200].mxu0 %v3565_v7 }
 0x20a   : > { %3319 = vst [vmem:[%s4738_s8 + $0x170] sm:$0xff] %v1586_v35  ;;  %v1489_v40 = vadd.f32 %v1488_v37, %v1263_v14  ;;  %v1490_v43 = vpop.f32.mrb[95].mxu1  ;;  %2851 = vmatmul.mubr.f32.gmra.mrb[200].mxu1 %v3563_v8  ;;  %2630 = vmatprep.mubr.f32.mxu0 %v3598_v49 }
 0x20b   : > { %2855 = vmatprep.mubr.f32.mxu1 %v3596_v9  ;;  %v3606_v43 = vld [vmem:[%s4368_s30 + $0xca] sm:$0xff] }
 0x20c   : > { %v1587_v44 = vadd.f32 %v4998_v48, %v1489_v40  ;;  %v1268_v16 = vpop.f32.mrb[96].mxu0  ;;  %v3573_v40 = vld [vmem:[%s4368_s30 + $0xc1] sm:$0xff] }
 0x20d   : > { %v1493_v41 = vpop.f32.mrb[96].mxu1  ;;  %v1270_v25 = vpop.f32.mrb[97].mxu0  ;;  %2631 = vmatmul.mubr.f32.gmra.mrb[202].mxu0 %v3566_v15 }
 0x20e   : > { %3320 = vst [vmem:[%s4738_s8 + $0x178] sm:$0xff] %v1587_v44  ;;  %v1494_v26 = vadd.f32 %v1493_v41, %v1268_v16  ;;  %v1495_v34 = vpop.f32.mrb[97].mxu1  ;;  %2856 = vmatmul.mubr.f32.gmra.mrb[202].mxu1 %v3564_v19  ;;  %2635 = vmatprep.mubr.f32.mxu0 %v3599_v18 }
 0x20f   : > { %2860 = vmatprep.mubr.f32.mxu1 %v3597_v51  ;;  %v3607_v34 = vld [vmem:[%s4368_s30 + $0xda] sm:$0xff] }
 0x210   : > { %v1588_v45 = vadd.f32 %v4998_v48, %v1494_v26  ;;  %v1273_v57 = vpop.f32.mrb[98].mxu0  ;;  %v3574_v26 = vld [vmem:[%s4368_s30 + $0xc9] sm:$0xff] }
 0x211   : > { %v1498_v63 = vpop.f32.mrb[98].mxu1  ;;  %v1275_v50 = vpop.f32.mrb[99].mxu0  ;;  %2636 = vmatmul.mubr.f32.gmra.mrb[204].mxu0 %v3567_v20 }
 0x212   : > { %3321 = vst [vmem:[%s4738_s8 + $0x180] sm:$0xff] %v1588_v45  ;;  %v1499_v28 = vadd.f32 %v1498_v63, %v1273_v57  ;;  %v1500_v52 = vpop.f32.mrb[99].mxu1  ;;  %2861 = vmatmul.mubr.f32.gmra.mrb[204].mxu1 %v3565_v7  ;;  %2640 = vmatprep.mubr.f32.mxu0 %v3600_v47 }
 0x213   : > { %2865 = vmatprep.mubr.f32.mxu1 %v3598_v49  ;;  %v3608_v52 = vld [vmem:[%s4368_s30 + $0xe2] sm:$0xff] }
 0x214   : > { %v1589_v0 = vadd.f32 %v4998_v48, %v1499_v28  ;;  %v1278_v2 = vpop.f32.mrb[100].mxu0  ;;  %v3575_v28 = vld [vmem:[%s4368_s30 + $0xd9] sm:$0xff] }
 0x215   : > { %v1503_v53 = vpop.f32.mrb[100].mxu1  ;;  %v1280_v55 = vpop.f32.mrb[101].mxu0  ;;  %2641 = vmatmul.mubr.f32.gmra.mrb[206].mxu0 %v3568_v22 }
 0x216   : > { %3322 = vst [vmem:[%s4738_s8 + $0x188] sm:$0xff] %v1589_v0  ;;  %v1504_v46 = vadd.f32 %v1503_v53, %v1278_v2  ;;  %v1505_v30 = vpop.f32.mrb[101].mxu1  ;;  %2866 = vmatmul.mubr.f32.gmra.mrb[206].mxu1 %v3566_v15  ;;  %2645 = vmatprep.mubr.f32.mxu0 %v3601_v23 }
 0x217   : > { %2870 = vmatprep.mubr.f32.mxu1 %v3599_v18  ;;  %v3609_v30 = vld [vmem:[%s4368_s30 + $0xf2] sm:$0xff] }
 0x218   : > { %v1590_v59 = vadd.f32 %v4998_v48, %v1504_v46  ;;  %v1283_v4 = vpop.f32.mrb[102].mxu0  ;;  %v3576_v46 = vld [vmem:[%s4368_s30 + $0xe1] sm:$0xff] }
 0x219   : > { %v1508_v31 = vpop.f32.mrb[102].mxu1  ;;  %v1285_v61 = vpop.f32.mrb[103].mxu0  ;;  %2646 = vmatmul.mubr.f32.gmra.mrb[208].mxu0 %v3569_v56 }
 0x21a   : > { %3323 = vst [vmem:[%s4738_s8 + $0x190] sm:$0xff] %v1590_v59  ;;  %v1509_v3 = vadd.f32 %v1508_v31, %v1283_v4  ;;  %v1510_v54 = vpop.f32.mrb[103].mxu1  ;;  %2871 = vmatmul.mubr.f32.gmra.mrb[208].mxu1 %v3567_v20  ;;  %2650 = vmatprep.mubr.f32.mxu0 %v3602_v58 }
 0x21b   : > { %2875 = vmatprep.mubr.f32.mxu1 %v3600_v47  ;;  %v3610_v54 = vld [vmem:[%s4368_s30 + $0xfa] sm:$0xff] }
 0x21c   : > { %v1591_v8 = vadd.f32 %v4998_v48, %v1509_v3  ;;  %v1288_v9 = vpop.f32.mrb[104].mxu0  ;;  %v3577_v3 = vld [vmem:[%s4368_s30 + $0xf1] sm:$0xff] }
 0x21d   : > { %v1513_v39 = vpop.f32.mrb[104].mxu1  ;;  %v1290_v13 = vpop.f32.mrb[105].mxu0  ;;  %2651 = vmatmul.mubr.f32.gmra.mrb[210].mxu0 %v3570_v5 }
 0x21e   : > { %3324 = vst [vmem:[%s4738_s8 + $0x198] sm:$0xff] %v1591_v8  ;;  %v1514_v17 = vadd.f32 %v1513_v39, %v1288_v9  ;;  %v1515_v42 = vpop.f32.mrb[105].mxu1  ;;  %2876 = vmatmul.mubr.f32.gmra.mrb[210].mxu1 %v3568_v22  ;;  %2655 = vmatprep.mubr.f32.mxu0 %v3603_v33 }
 0x21f   : > { %2880 = vmatprep.mubr.f32.mxu1 %v3601_v23  ;;  %v3611_v42 = vld [vmem:[%s4368_s30 + $0x10a] sm:$0xff] }
 0x220   : > { %v1592_v19 = vadd.f32 %v4998_v48, %v1514_v17  ;;  %v1293_v51 = vpop.f32.mrb[106].mxu0  ;;  %v3578_v17 = vld [vmem:[%s4368_s30 + $0xf9] sm:$0xff] }
 0x221   : > { %v1518_v21 = vpop.f32.mrb[106].mxu1  ;;  %v1295_v24 = vpop.f32.mrb[107].mxu0  ;;  %2656 = vmatmul.mubr.f32.gmra.mrb[212].mxu0 %v3571_v10 }
 0x222   : > { %3325 = vst [vmem:[%s4738_s8 + $0x1a0] sm:$0xff] %v1592_v19  ;;  %v1519_v27 = vadd.f32 %v1518_v21, %v1293_v51  ;;  %v1520_v12 = vpop.f32.mrb[107].mxu1  ;;  %2881 = vmatmul.mubr.f32.gmra.mrb[212].mxu1 %v3569_v56  ;;  %2660 = vmatprep.mubr.f32.mxu0 %v3604_v62 }
 0x223   : > { %2885 = vmatprep.mubr.f32.mxu1 %v3602_v58  ;;  %v3612_v12 = vld [vmem:[%s4368_s30 + $0x112] sm:$0xff] }
 0x224   : > { %v1593_v7 = vadd.f32 %v4998_v48, %v1519_v27  ;;  %v1298_v49 = vpop.f32.mrb[108].mxu0  ;;  %v3579_v27 = vld [vmem:[%s4368_s30 + $0x109] sm:$0xff] }
 0x225   : > { %v1523_v35 = vpop.f32.mrb[108].mxu1  ;;  %v1300_v14 = vpop.f32.mrb[109].mxu0  ;;  %2661 = vmatmul.mubr.f32.gmra.mrb[214].mxu0 %v3572_v29 }
 0x226   : > { %3326 = vst [vmem:[%s4738_s8 + $0x1a8] sm:$0xff] %v1593_v7  ;;  %v1524_v37 = vadd.f32 %v1523_v35, %v1298_v49  ;;  %v1525_v38 = vpop.f32.mrb[109].mxu1  ;;  %2886 = vmatmul.mubr.f32.gmra.mrb[214].mxu1 %v3570_v5  ;;  %2665 = vmatprep.mubr.f32.mxu0 %v3605_v32 }
 0x227   : > { %2890 = vmatprep.mubr.f32.mxu1 %v3603_v33  ;;  %v3613_v38 = vld [vmem:[%s4368_s30 + $0x122] sm:$0xff] }
 0x228   : > { %v1594_v15 = vadd.f32 %v4998_v48, %v1524_v37  ;;  %v1303_v18 = vpop.f32.mrb[110].mxu0  ;;  %v3580_v37 = vld [vmem:[%s4368_s30 + $0x111] sm:$0xff] }
 0x229   : > { %v1528_v44 = vpop.f32.mrb[110].mxu1  ;;  %v1305_v16 = vpop.f32.mrb[111].mxu0  ;;  %2666 = vmatmul.mubr.f32.gmra.mrb[216].mxu0 %v3573_v40 }
 0x22a   : > { %3327 = vst [vmem:[%s4738_s8 + $0x1b0] sm:$0xff] %v1594_v15  ;;  %v1529_v41 = vadd.f32 %v1528_v44, %v1303_v18  ;;  %v1530_v25 = vpop.f32.mrb[111].mxu1  ;;  %2891 = vmatmul.mubr.f32.gmra.mrb[216].mxu1 %v3571_v10  ;;  %2670 = vmatprep.mubr.f32.mxu0 %v3606_v43 }
 0x22b   : > { %2895 = vmatprep.mubr.f32.mxu1 %v3604_v62  ;;  %v3614_v25 = vld [vmem:[%s4368_s30 + $0x12a] sm:$0xff] }
 0x22c   : > { %v1595_v20 = vadd.f32 %v4998_v48, %v1529_v41  ;;  %v1308_v47 = vpop.f32.mrb[112].mxu0  ;;  %v3581_v41 = vld [vmem:[%s4368_s30 + $0x121] sm:$0xff] }
 0x22d   : > { %v1533_v45 = vpop.f32.mrb[112].mxu1  ;;  %v1310_v57 = vpop.f32.mrb[113].mxu0  ;;  %2671 = vmatmul.mubr.f32.gmra.mrb[218].mxu0 %v3574_v26 }
 0x22e   : > { %3328 = vst [vmem:[%s4738_s8 + $0x1b8] sm:$0xff] %v1595_v20  ;;  %v1534_v63 = vadd.f32 %v1533_v45, %v1308_v47  ;;  %v1535_v50 = vpop.f32.mrb[113].mxu1  ;;  %2896 = vmatmul.mubr.f32.gmra.mrb[218].mxu1 %v3572_v29  ;;  %2675 = vmatprep.mubr.f32.mxu0 %v3607_v34 }
 0x22f   : > { %2900 = vmatprep.mubr.f32.mxu1 %v3605_v32  ;;  %v3615_v50 = vld [vmem:[%s4368_s30 + $0x13a] sm:$0xff] }
 0x230   : > { %v1596_v22 = vadd.f32 %v4998_v48, %v1534_v63  ;;  %v1313_v23 = vpop.f32.mrb[114].mxu0  ;;  %v3582_v63 = vld [vmem:[%s4368_s30 + $0x129] sm:$0xff] }
 0x231   : > { %v1538_v0 = vpop.f32.mrb[114].mxu1  ;;  %v1315_v2 = vpop.f32.mrb[115].mxu0  ;;  %2676 = vmatmul.mubr.f32.gmra.mrb[220].mxu0 %v3575_v28 }
 0x232   : > { %3329 = vst [vmem:[%s4738_s8 + $0x1c0] sm:$0xff] %v1596_v22  ;;  %v1539_v53 = vadd.f32 %v1538_v0, %v1313_v23  ;;  %v1540_v55 = vpop.f32.mrb[115].mxu1  ;;  %2901 = vmatmul.mubr.f32.gmra.mrb[220].mxu1 %v3573_v40  ;;  %2680 = vmatprep.mubr.f32.mxu0 %v3608_v52 }
 0x233   : > { %2905 = vmatprep.mubr.f32.mxu1 %v3606_v43  ;;  %v3616_v55 = vld [vmem:[%s4368_s30 + $0x142] sm:$0xff] }
 0x234   : > { %v1597_v56 = vadd.f32 %v4998_v48, %v1539_v53  ;;  %v1318_v58 = vpop.f32.mrb[116].mxu0  ;;  %v3583_v53 = vld [vmem:[%s4368_s30 + $0x139] sm:$0xff] }
 0x235   : > { %v1543_v59 = vpop.f32.mrb[116].mxu1  ;;  %v1320_v4 = vpop.f32.mrb[117].mxu0  ;;  %2681 = vmatmul.mubr.f32.gmra.mrb[222].mxu0 %v3576_v46 }
 0x236   : > { %3330 = vst [vmem:[%s4738_s8 + $0x1c8] sm:$0xff] %v1597_v56  ;;  %v1544_v31 = vadd.f32 %v1543_v59, %v1318_v58  ;;  %v1545_v61 = vpop.f32.mrb[117].mxu1  ;;  %2906 = vmatmul.mubr.f32.gmra.mrb[222].mxu1 %v3574_v26  ;;  %2685 = vmatprep.mubr.f32.mxu0 %v3609_v30 }
 0x237   : > { %2910 = vmatprep.mubr.f32.mxu1 %v3607_v34  ;;  %v3617_v61 = vld [vmem:[%s4368_s30 + $0x152] sm:$0xff] }
 0x238   : > { %v1598_v5 = vadd.f32 %v4998_v48, %v1544_v31  ;;  %v1323_v33 = vpop.f32.mrb[118].mxu0  ;;  %v3584_v31 = vld [vmem:[%s4368_s30 + $0x141] sm:$0xff] }
 0x239   : > { %v1548_v8 = vpop.f32.mrb[118].mxu1  ;;  %v1325_v9 = vpop.f32.mrb[119].mxu0  ;;  %2686 = vmatmul.mubr.f32.gmra.mrb[224].mxu0 %v3577_v3 }
 0x23a   : > { %3331 = vst [vmem:[%s4738_s8 + $0x1d0] sm:$0xff] %v1598_v5  ;;  %v1549_v39 = vadd.f32 %v1548_v8, %v1323_v33  ;;  %v1550_v13 = vpop.f32.mrb[119].mxu1  ;;  %2911 = vmatmul.mubr.f32.gmra.mrb[224].mxu1 %v3575_v28  ;;  %2690 = vmatprep.mubr.f32.mxu0 %v3610_v54 }
 0x23b   : > { %2915 = vmatprep.mubr.f32.mxu1 %v3608_v52  ;;  %v3618_v13 = vld [vmem:[%s4368_s30 + $0x15a] sm:$0xff] }
 0x23c   : > { %v1599_v10 = vadd.f32 %v4998_v48, %v1549_v39  ;;  %v1328_v62 = vpop.f32.mrb[120].mxu0  ;;  %v3585_v39 = vld [vmem:[%s4368_s30 + $0x151] sm:$0xff] }
 0x23d   : > { %v1553_v19 = vpop.f32.mrb[120].mxu1  ;;  %v1330_v51 = vpop.f32.mrb[121].mxu0  ;;  %2691 = vmatmul.mubr.f32.gmra.mrb[226].mxu0 %v3578_v17 }
 0x23e   : > { %3332 = vst [vmem:[%s4738_s8 + $0x1d8] sm:$0xff] %v1599_v10  ;;  %v1554_v21 = vadd.f32 %v1553_v19, %v1328_v62  ;;  %v1555_v24 = vpop.f32.mrb[121].mxu1  ;;  %2916 = vmatmul.mubr.f32.gmra.mrb[226].mxu1 %v3576_v46  ;;  %2695 = vmatprep.mubr.f32.mxu0 %v3611_v42 }
 0x23f   : > { %2920 = vmatprep.mubr.f32.mxu1 %v3609_v30  ;;  %v3619_v24 = vld [vmem:[%s4368_s30 + $0x16a] sm:$0xff] }
 0x240   : > { %v1600_v29 = vadd.f32 %v4998_v48, %v1554_v21  ;;  %v1333_v32 = vpop.f32.mrb[122].mxu0  ;;  %v3586_v21 = vld [vmem:[%s4368_s30 + $0x159] sm:$0xff] }
 0x241   : > { %v1558_v7 = vpop.f32.mrb[122].mxu1  ;;  %v1335_v49 = vpop.f32.mrb[123].mxu0  ;;  %2696 = vmatmul.mubr.f32.gmra.mrb[228].mxu0 %v3579_v27 }
 0x242   : > { %3333 = vst [vmem:[%s4738_s8 + $0x1e0] sm:$0xff] %v1600_v29  ;;  %v1559_v35 = vadd.f32 %v1558_v7, %v1333_v32  ;;  %v1560_v14 = vpop.f32.mrb[123].mxu1  ;;  %2921 = vmatmul.mubr.f32.gmra.mrb[228].mxu1 %v3577_v3  ;;  %2700 = vmatprep.mubr.f32.mxu0 %v3612_v12 }
 0x243   : > { %2925 = vmatprep.mubr.f32.mxu1 %v3610_v54  ;;  %v3620_v14 = vld [vmem:[%s4368_s30 + $0x172] sm:$0xff] }
 0x244   : > { %v1601_v40 = vadd.f32 %v4998_v48, %v1559_v35  ;;  %v1338_v43 = vpop.f32.mrb[124].mxu0  ;;  %v3587_v35 = vld [vmem:[%s4368_s30 + $0x169] sm:$0xff] }
 0x245   : > { %v1563_v15 = vpop.f32.mrb[124].mxu1  ;;  %v1340_v18 = vpop.f32.mrb[125].mxu0  ;;  %2701 = vmatmul.mubr.f32.gmra.mrb[230].mxu0 %v3580_v37 }
 0x246   : > { %3334 = vst [vmem:[%s4738_s8 + $0x1e8] sm:$0xff] %v1601_v40  ;;  %v1564_v44 = vadd.f32 %v1563_v15, %v1338_v43  ;;  %v1565_v16 = vpop.f32.mrb[125].mxu1  ;;  %2926 = vmatmul.mubr.f32.gmra.mrb[230].mxu1 %v3578_v17  ;;  %2705 = vmatprep.mubr.f32.mxu0 %v3613_v38 }
 0x247   : > { %2930 = vmatprep.mubr.f32.mxu1 %v3611_v42 }
 0x248   : > { %v1602_v26 = vadd.f32 %v4998_v48, %v1564_v44  ;;  %v1343_v34 = vpop.f32.mrb[126].mxu0  ;;  %v3621_v44 = vld [vmem:[%s4368_s30 + $0x182] sm:$0xff] }
 0x249   : > { %v1568_v20 = vpop.f32.mrb[126].mxu1  ;;  %v1345_v47 = vpop.f32.mrb[127].mxu0  ;;  %2706 = vmatmul.mubr.f32.gmra.mrb[232].mxu0 %v3581_v41 }
 0x24a   : > { %3335 = vst [vmem:[%s4738_s8 + $0x1f0] sm:$0xff] %v1602_v26  ;;  %v1569_v45 = vadd.f32 %v1568_v20, %v1343_v34  ;;  %v1570_v57 = vpop.f32.mrb[127].mxu1  ;;  %2931 = vmatmul.mubr.f32.gmra.mrb[232].mxu1 %v3579_v27  ;;  %2710 = vmatprep.mubr.f32.mxu0 %v3614_v25  ;;  %v5185_v27 = vld [vmem:[%s5382_s2] ss:$0 sm:$0xff]  ;;  %v3622_v47 = vld [vmem:[%s4368_s30 + $0x18a] sm:$0xff] }
 0x24b   : > { %2935 = vmatprep.mubr.f32.mxu1 %v3612_v12 }
 0x24c   : > { %v1603_v28 = vadd.f32 %v4998_v48, %v1569_v45  ;;  %v1898_v52 = vpop.f32.mrb[128].mxu0 }
 0x24d   : > { %v2123_v22 = vpop.f32.mrb[128].mxu1  ;;  %v1900_v23 = vpop.f32.mrb[129].mxu0  ;;  %2711 = vmatmul.mubr.f32.gmra.mrb[234].mxu0 %v3582_v63 }
 0x24e   : > { %3336 = vst [vmem:[%s4738_s8 + $0x1f8] sm:$0xff] %v1603_v28  ;;  %v2124_v0 = vadd.f32 %v2123_v22, %v1898_v52  ;;  %v2125_v2 = vpop.f32.mrb[129].mxu1  ;;  %2936 = vmatmul.mubr.f32.gmra.mrb[234].mxu1 %v3580_v37  ;;  %2715 = vmatprep.mubr.f32.mxu0 %v3615_v50  ;;  %v3526_v52 = vld [vmem:[%s4368_s30 + $0x171] sm:$0xff]  ;;  %v3623_v22 = vld [vmem:[%s4368_s30 + $0x19a] sm:$0xff] }
 0x24f   : > { %2940 = vmatprep.mubr.f32.mxu1 %v3613_v38 }
 0x250   : > { %v2282_v46 = vadd.f32 %v4998_v48, %v2124_v0  ;;  %v1903_v30 = vpop.f32.mrb[130].mxu0 }
 0x251   : > { %v2128_v56 = vpop.f32.mrb[130].mxu1  ;;  %v1905_v58 = vpop.f32.mrb[131].mxu0  ;;  %2716 = vmatmul.mubr.f32.gmra.mrb[236].mxu0 %v3583_v53 }
 0x252   : > { %3465 = vst [vmem:[%s4738_s8 + $0x200] sm:$0xff] %v2282_v46  ;;  %v2129_v59 = vadd.f32 %v2128_v56, %v1903_v30  ;;  %v2130_v4 = vpop.f32.mrb[131].mxu1  ;;  %2941 = vmatmul.mubr.f32.gmra.mrb[236].mxu1 %v3581_v41  ;;  %2720 = vmatprep.mubr.f32.mxu0 %v3616_v55  ;;  %v3527_v46 = vld [vmem:[%s4368_s30 + $0x181] sm:$0xff] }
 0x253   : > { %2945 = vmatprep.mubr.f32.mxu1 %v3614_v25  ;;  %v3624_v30 = vld [vmem:[%s4368_s30 + $0x1a2] sm:$0xff] }
 0x254   : > { %v2283_v3 = vadd.f32 %v4998_v48, %v2129_v59  ;;  %v1908_v54 = vpop.f32.mrb[132].mxu0 }
 0x255   : > { %v2133_v5 = vpop.f32.mrb[132].mxu1  ;;  %v1910_v33 = vpop.f32.mrb[133].mxu0  ;;  %2721 = vmatmul.mubr.f32.gmra.mrb[238].mxu0 %v3584_v31 }
 0x256   : > { %3466 = vst [vmem:[%s4738_s8 + $0x208] sm:$0xff] %v2283_v3  ;;  %v2134_v8 = vadd.f32 %v2133_v5, %v1908_v54  ;;  %v2135_v9 = vpop.f32.mrb[133].mxu1  ;;  %2946 = vmatmul.mubr.f32.gmra.mrb[238].mxu1 %v3582_v63  ;;  %2725 = vmatprep.mubr.f32.mxu0 %v3617_v61 }
 0x257   : > { %2950 = vmatprep.mubr.f32.mxu1 %v3615_v50 }
 0x258   : > { %v2284_v17 = vadd.f32 %v4998_v48, %v2134_v8  ;;  %v1913_v42 = vpop.f32.mrb[134].mxu0 }
 0x259   : > { %v2138_v10 = vpop.f32.mrb[134].mxu1  ;;  %v1915_v62 = vpop.f32.mrb[135].mxu0  ;;  %2726 = vmatmul.mubr.f32.gmra.mrb[240].mxu0 %v3585_v39 }
 0x25a   : > { %3467 = vst [vmem:[%s4738_s8 + $0x210] sm:$0xff] %v2284_v17  ;;  %v2139_v19 = vadd.f32 %v2138_v10, %v1913_v42  ;;  %v2140_v51 = vpop.f32.mrb[135].mxu1  ;;  %2951 = vmatmul.mubr.f32.gmra.mrb[240].mxu1 %v3583_v53  ;;  %2730 = vmatprep.mubr.f32.mxu0 %v3618_v13 }
 0x25b   : > { %2955 = vmatprep.mubr.f32.mxu1 %v3616_v55 }
 0x25c   : > { %v2285_v48 = vadd.f32 %v5185_v27, %v2139_v19  ;;  %v1918_v12 = vpop.f32.mrb[136].mxu0 }
 0x25d   : > { %v2143_v29 = vpop.f32.mrb[136].mxu1  ;;  %v1920_v32 = vpop.f32.mrb[137].mxu0  ;;  %2731 = vmatmul.mubr.f32.gmra.mrb[242].mxu0 %v3586_v21 }
 0x25e   : > { %3468 = vst [vmem:[%s4738_s8 + $0x218] sm:$0xff] %v2285_v48  ;;  %v2144_v7 = vadd.f32 %v2143_v29, %v1918_v12  ;;  %v2145_v49 = vpop.f32.mrb[137].mxu1  ;;  %2956 = vmatmul.mubr.f32.gmra.mrb[242].mxu1 %v3584_v31  ;;  %2735 = vmatprep.mubr.f32.mxu0 %v3619_v24 }
 0x25f   : > { %2960 = vmatprep.mubr.f32.mxu1 %v3617_v61  ;;  %v3528_v61 = vld [vmem:[%s4368_s30 + $0x189] sm:$0xff]  ;;  %s4153_s30 = sshll.u32 %s4237_s29, 4  ;;  %s4154_s30 = int_to_ptr.vmem [resolvable:$false] %s4153_s30 }
 0x260   : > { %v2286_v37 = vadd.f32 %v5185_v27, %v2144_v7  ;;  %v1923_v38 = vpop.f32.mrb[138].mxu0  ;;  %s4155_s5 = scalar_lea.vmem %s4154_s30, 32768  ;;  %p4156_p1 = scmp.lt.s32.totalorder %s5328_s21, %s4154_s30 }
 0x261   : > { %v2148_v40 = vpop.f32.mrb[138].mxu1  ;;  %v1925_v43 = vpop.f32.mrb[139].mxu0  ;;  %2736 = vmatmul.mubr.f32.gmra.mrb[244].mxu0 %v3587_v35  ;;  %p4157_p3 = scmp.lt.s32.totalorder %s4155_s5, %s4149_s28 }
 0x262   : > { %3469 = vst [vmem:[%s4738_s8 + $0x220] sm:$0xff] %v2286_v37  ;;  %v2149_v15 = vadd.f32 %v2148_v40, %v1923_v38  ;;  %v2150_v18 = vpop.f32.mrb[139].mxu1  ;;  %2961 = vmatmul.mubr.f32.gmra.mrb[244].mxu1 %v3585_v39  ;;  %2740 = vmatprep.mubr.f32.mxu0 %v3620_v14 }
 0x263   : > { %2965 = vmatprep.mubr.f32.mxu1 %v3618_v13  ;;  %p4158_p5 = por %p4157_p3, %p4156_p1 }
 0x264   : > { %v2287_v16 = vadd.f32 %v5185_v27, %v2149_v15  ;;  %v1928_v41 = vpop.f32.mrb[140].mxu0 }
 0x265   : > { %v2153_v25 = vpop.f32.mrb[140].mxu1  ;;  %v1930_v26 = vpop.f32.mrb[141].mxu0  ;;  %2741 = vmatmul.mubr.f32.gmra.mrb[246].mxu0 %v5036_v1  ;;  %p4159_p6 = pnand %p4158_p5, %p4152_p13 }
 0x266   : > { %3470 = vst [vmem:[%s4738_s8 + $0x228] sm:$0xff] %v2287_v16  ;;  %v2154_v34 = vadd.f32 %v2153_v25, %v1928_v41  ;;  %v2155_v20 = vpop.f32.mrb[141].mxu1  ;;  %2966 = vmatmul.mubr.f32.gmra.mrb[246].mxu1 %v3586_v21  ;;  %2745 = vmatprep.mubr.f32.mxu0 %v3621_v44 }
 0x267   : > { %2970 = vmatprep.mubr.f32.mxu1 %v3619_v24 }
 0x268   : > { %v2288_v45 = vadd.f32 %v5185_v27, %v2154_v34  ;;  %v1933_v57 = vpop.f32.mrb[142].mxu0 }
 0x269   : > { %v2158_v63 = vpop.f32.mrb[142].mxu1  ;;  %v1935_v50 = vpop.f32.mrb[143].mxu0  ;;  %2746 = vmatmul.mubr.f32.gmra.mrb[248].mxu0 %v5043_v11 }
 0x26a   : > { %3471 = vst [vmem:[%s4738_s8 + $0x230] sm:$0xff] %v2288_v45  ;;  %v2159_v28 = vadd.f32 %v2158_v63, %v1933_v57  ;;  %v2160_v1 = vpop.f32.mrb[143].mxu1  ;;  %2971 = vmatmul.mubr.f32.gmra.mrb[248].mxu1 %v3587_v35  ;;  %2750 = vmatprep.mubr.f32.mxu0 %v3622_v47 }
 0x26b   : > { %2975 = vmatprep.mubr.f32.mxu1 %v3620_v14 }
 0x26c   : > { %v2289_v23 = vadd.f32 %v5185_v27, %v2159_v28  ;;  %v1938_v0 = vpop.f32.mrb[144].mxu0 }
 0x26d   : > { %v2163_v2 = vpop.f32.mrb[144].mxu1  ;;  %v1940_v53 = vpop.f32.mrb[145].mxu0  ;;  %2751 = vmatmul.mubr.f32.gmra.mrb[250].mxu0 %v5050_v36 }
 0x26e   : > { %3472 = vst [vmem:[%s4738_s8 + $0x238] sm:$0xff] %v2289_v23  ;;  %v2164_v11 = vadd.f32 %v2163_v2, %v1938_v0  ;;  %v2165_v55 = vpop.f32.mrb[145].mxu1  ;;  %2976 = vmatmul.mubr.f32.gmra.mrb[250].mxu1 %v3526_v52  ;;  %2755 = vmatprep.mubr.f32.mxu0 %v3623_v22 }
 0x26f   : > { %2980 = vmatprep.mubr.f32.mxu1 %v3621_v44 }
 0x270   : > { %v2290_v56 = vadd.f32 %v5185_v27, %v2164_v11  ;;  %v1943_v58 = vpop.f32.mrb[146].mxu0 }
 0x271   : > { %v2168_v59 = vpop.f32.mrb[146].mxu1  ;;  %v1945_v4 = vpop.f32.mrb[147].mxu0  ;;  %2756 = vmatmul.mubr.f32.gmra.mrb[252].mxu0 %v5058_v60 }
 0x272   : > { %3473 = vst [vmem:[%s4738_s8 + $0x240] sm:$0xff] %v2290_v56  ;;  %v2169_v31 = vadd.f32 %v2168_v59, %v1943_v58  ;;  %v2170_v36 = vpop.f32.mrb[147].mxu1  ;;  %2981 = vmatmul.mubr.f32.gmra.mrb[252].mxu1 %v3527_v46  ;;  %2760 = vmatprep.mubr.f32.mxu0 %v3624_v30 }
 0x273   : > { %2985 = vmatprep.mubr.f32.mxu1 %v3622_v47 }
 0x274   : > { %v2291_v3 = vadd.f32 %v5185_v27, %v2169_v31  ;;  %v1948_v54 = vpop.f32.mrb[148].mxu0 }
 0x275   : > { %v2173_v5 = vpop.f32.mrb[148].mxu1  ;;  %v1950_v33 = vpop.f32.mrb[149].mxu0  ;;  %2761 = vmatmul.mubr.f32.gmra.mrb[254].mxu0 %v5066_v6 }
 0x276   : > { %3474 = vst [vmem:[%s4738_s8 + $0x248] sm:$0xff] %v2291_v3  ;;  %v2174_v8 = vadd.f32 %v2173_v5, %v1948_v54  ;;  %v2175_v9 = vpop.f32.mrb[149].mxu1  ;;  %2986 = vmatmul.mubr.f32.gmra.mrb[254].mxu1 %v3528_v61 }
 0x278   : > { %v2292_v60 = vadd.f32 %v5185_v27, %v2174_v8  ;;  %v1953_v39 = vpop.f32.mrb[150].mxu0 }
 0x279   : > { %v2178_v13 = vpop.f32.mrb[150].mxu1  ;;  %v1955_v17 = vpop.f32.mrb[151].mxu0 }
 0x27a   : > { %3475 = vst [vmem:[%s4738_s8 + $0x250] sm:$0xff] %v2292_v60  ;;  %v2179_v42 = vadd.f32 %v2178_v13, %v1953_v39  ;;  %v2180_v10 = vpop.f32.mrb[151].mxu1 }
 0x27c   : > { %v2293_v62 = vadd.f32 %v5185_v27, %v2179_v42  ;;  %v1958_v19 = vpop.f32.mrb[152].mxu0 }
 0x27d   : > { %v2183_v51 = vpop.f32.mrb[152].mxu1  ;;  %v1960_v6 = vpop.f32.mrb[153].mxu0 }
 0x27e   : > { %3476 = vst [vmem:[%s4738_s8 + $0x258] sm:$0xff] %v2293_v62  ;;  %v2184_v21 = vadd.f32 %v2183_v51, %v1958_v19  ;;  %v2185_v24 = vpop.f32.mrb[153].mxu1 }
 0x280   : > { %v2294_v48 = vadd.f32 %v5185_v27, %v2184_v21  ;;  %v1963_v12 = vpop.f32.mrb[154].mxu0 }
 0x281   : > { %v2188_v29 = vpop.f32.mrb[154].mxu1  ;;  %v1965_v32 = vpop.f32.mrb[155].mxu0 }
 0x282   : > { %3477 = vst [vmem:[%s4738_s8 + $0x260] sm:$0xff] %v2294_v48  ;;  %v2189_v7 = vadd.f32 %v2188_v29, %v1963_v12  ;;  %v2190_v49 = vpop.f32.mrb[155].mxu1 }
 0x284   : > { %v2295_v35 = vadd.f32 %v5185_v27, %v2189_v7  ;;  %v1968_v14 = vpop.f32.mrb[156].mxu0 }
 0x285   : > { %v2193_v37 = vpop.f32.mrb[156].mxu1  ;;  %v1970_v38 = vpop.f32.mrb[157].mxu0 }
 0x286   : > { %3478 = vst [vmem:[%s4738_s8 + $0x268] sm:$0xff] %v2295_v35  ;;  %v2194_v40 = vadd.f32 %v2193_v37, %v1968_v14  ;;  %v2195_v43 = vpop.f32.mrb[157].mxu1 }
 0x288   : > { %v2296_v15 = vadd.f32 %v5185_v27, %v2194_v40  ;;  %v1973_v18 = vpop.f32.mrb[158].mxu0 }
 0x289   : > { %v2198_v44 = vpop.f32.mrb[158].mxu1  ;;  %v1975_v16 = vpop.f32.mrb[159].mxu0 }
 0x28a   : > { %3479 = vst [vmem:[%s4738_s8 + $0x270] sm:$0xff] %v2296_v15  ;;  %v2199_v41 = vadd.f32 %v2198_v44, %v1973_v18  ;;  %v2200_v25 = vpop.f32.mrb[159].mxu1 }
 0x28c   : > { %v2297_v26 = vadd.f32 %v5185_v27, %v2199_v41  ;;  %v1978_v34 = vpop.f32.mrb[160].mxu0 }
 0x28d   : > { %v2203_v20 = vpop.f32.mrb[160].mxu1  ;;  %v1980_v47 = vpop.f32.mrb[161].mxu0 }
 0x28e   : > { %3480 = vst [vmem:[%s4738_s8 + $0x278] sm:$0xff] %v2297_v26  ;;  %v2204_v45 = vadd.f32 %v2203_v20, %v1978_v34  ;;  %v2205_v57 = vpop.f32.mrb[161].mxu1 }
 0x290   : > { %v2298_v63 = vadd.f32 %v5185_v27, %v2204_v45  ;;  %v1983_v50 = vpop.f32.mrb[162].mxu0 }
 0x291   : > { %v2208_v28 = vpop.f32.mrb[162].mxu1  ;;  %v1985_v1 = vpop.f32.mrb[163].mxu0 }
 0x292   : > { %3481 = vst [vmem:[%s4738_s8 + $0x280] sm:$0xff] %v2298_v63  ;;  %v2209_v52 = vadd.f32 %v2208_v28, %v1983_v50  ;;  %v2210_v22 = vpop.f32.mrb[163].mxu1 }
 0x294   : > { %v2299_v23 = vadd.f32 %v5185_v27, %v2209_v52  ;;  %v1988_v0 = vpop.f32.mrb[164].mxu0 }
 0x295   : > { %v2213_v2 = vpop.f32.mrb[164].mxu1  ;;  %v1990_v53 = vpop.f32.mrb[165].mxu0 }
 0x296   : > { %3482 = vst [vmem:[%s4738_s8 + $0x288] sm:$0xff] %v2299_v23  ;;  %v2214_v11 = vadd.f32 %v2213_v2, %v1988_v0  ;;  %v2215_v55 = vpop.f32.mrb[165].mxu1 }
 0x298   : > { %v2300_v46 = vadd.f32 %v5185_v27, %v2214_v11  ;;  %v1993_v30 = vpop.f32.mrb[166].mxu0 }
 0x299   : > { %v2218_v56 = vpop.f32.mrb[166].mxu1  ;;  %v1995_v58 = vpop.f32.mrb[167].mxu0 }
 0x29a   : > { %3483 = vst [vmem:[%s4738_s8 + $0x290] sm:$0xff] %v2300_v46  ;;  %v2219_v59 = vadd.f32 %v2218_v56, %v1993_v30  ;;  %v2220_v4 = vpop.f32.mrb[167].mxu1 }
 0x29c   : > { %v2301_v31 = vadd.f32 %v5185_v27, %v2219_v59  ;;  %v1998_v36 = vpop.f32.mrb[168].mxu0 }
 0x29d   : > { %v2223_v61 = vpop.f32.mrb[168].mxu1  ;;  %v2000_v3 = vpop.f32.mrb[169].mxu0 }
 0x29e   : > { %3484 = vst [vmem:[%s4738_s8 + $0x298] sm:$0xff] %v2301_v31  ;;  %v2224_v54 = vadd.f32 %v2223_v61, %v1998_v36  ;;  %v2225_v5 = vpop.f32.mrb[169].mxu1 }
 0x2a0   : > { %v2302_v33 = vadd.f32 %v5185_v27, %v2224_v54  ;;  %v2003_v8 = vpop.f32.mrb[170].mxu0 }
 0x2a1   : > { %v2228_v9 = vpop.f32.mrb[170].mxu1  ;;  %v2005_v60 = vpop.f32.mrb[171].mxu0 }
 0x2a2   : > { %3485 = vst [vmem:[%s4738_s8 + $0x2a0] sm:$0xff] %v2302_v33  ;;  %v2229_v39 = vadd.f32 %v2228_v9, %v2003_v8  ;;  %v2230_v13 = vpop.f32.mrb[171].mxu1 }
 0x2a4   : > { %v2303_v17 = vadd.f32 %v5185_v27, %v2229_v39  ;;  %v2008_v42 = vpop.f32.mrb[172].mxu0 }
 0x2a5   : > { %v2233_v10 = vpop.f32.mrb[172].mxu1  ;;  %v2010_v62 = vpop.f32.mrb[173].mxu0 }
 0x2a6   : > { %3486 = vst [vmem:[%s4738_s8 + $0x2a8] sm:$0xff] %v2303_v17  ;;  %v2234_v19 = vadd.f32 %v2233_v10, %v2008_v42  ;;  %v2235_v51 = vpop.f32.mrb[173].mxu1 }
 0x2a8   : > { %v2304_v6 = vadd.f32 %v5185_v27, %v2234_v19  ;;  %v2013_v21 = vpop.f32.mrb[174].mxu0 }
 0x2a9   : > { %v2238_v24 = vpop.f32.mrb[174].mxu1  ;;  %v2015_v48 = vpop.f32.mrb[175].mxu0 }
 0x2aa   : > { %3487 = vst [vmem:[%s4738_s8 + $0x2b0] sm:$0xff] %v2304_v6  ;;  %v2239_v12 = vadd.f32 %v2238_v24, %v2013_v21  ;;  %v2240_v29 = vpop.f32.mrb[175].mxu1 }
 0x2ac   : > { %v2305_v32 = vadd.f32 %v5185_v27, %v2239_v12  ;;  %v2018_v7 = vpop.f32.mrb[176].mxu0 }
 0x2ad   : > { %v2243_v49 = vpop.f32.mrb[176].mxu1  ;;  %v2020_v35 = vpop.f32.mrb[177].mxu0 }
 0x2ae   : > { %3488 = vst [vmem:[%s4738_s8 + $0x2b8] sm:$0xff] %v2305_v32  ;;  %v2244_v14 = vadd.f32 %v2243_v49, %v2018_v7  ;;  %v2245_v37 = vpop.f32.mrb[177].mxu1 }
 0x2b0   : > { %v2306_v38 = vadd.f32 %v5185_v27, %v2244_v14  ;;  %v2023_v40 = vpop.f32.mrb[178].mxu0 }
 0x2b1   : > { %v2248_v43 = vpop.f32.mrb[178].mxu1  ;;  %v2025_v15 = vpop.f32.mrb[179].mxu0 }
 0x2b2   : > { %3489 = vst [vmem:[%s4738_s8 + $0x2c0] sm:$0xff] %v2306_v38  ;;  %v2249_v18 = vadd.f32 %v2248_v43, %v2023_v40  ;;  %v2250_v44 = vpop.f32.mrb[179].mxu1 }
 0x2b4   : > { %v2307_v16 = vadd.f32 %v5185_v27, %v2249_v18  ;;  %v2028_v41 = vpop.f32.mrb[180].mxu0 }
 0x2b5   : > { %v2253_v25 = vpop.f32.mrb[180].mxu1  ;;  %v2030_v26 = vpop.f32.mrb[181].mxu0 }
 0x2b6   : > { %3490 = vst [vmem:[%s4738_s8 + $0x2c8] sm:$0xff] %v2307_v16  ;;  %v2254_v34 = vadd.f32 %v2253_v25, %v2028_v41  ;;  %v2255_v20 = vpop.f32.mrb[181].mxu1 }
 0x2b8   : > { %v2308_v47 = vadd.f32 %v5185_v27, %v2254_v34  ;;  %v2033_v45 = vpop.f32.mrb[182].mxu0 }
 0x2b9   : > { %v2258_v57 = vpop.f32.mrb[182].mxu1  ;;  %v2035_v63 = vpop.f32.mrb[183].mxu0 }
 0x2ba   : > { %3491 = vst [vmem:[%s4738_s8 + $0x2d0] sm:$0xff] %v2308_v47  ;;  %v2259_v50 = vadd.f32 %v2258_v57, %v2033_v45  ;;  %v2260_v28 = vpop.f32.mrb[183].mxu1 }
 0x2bc   : > { %v2309_v1 = vadd.f32 %v5185_v27, %v2259_v50  ;;  %v2038_v52 = vpop.f32.mrb[184].mxu0 }
 0x2bd   : > { %v2263_v22 = vpop.f32.mrb[184].mxu1  ;;  %v2040_v23 = vpop.f32.mrb[185].mxu0 }
 0x2be   : > { %3492 = vst [vmem:[%s4738_s8 + $0x2d8] sm:$0xff] %v2309_v1  ;;  %v2264_v0 = vadd.f32 %v2263_v22, %v2038_v52  ;;  %v2265_v2 = vpop.f32.mrb[185].mxu1 }
 0x2c0   : > { %v2310_v53 = vadd.f32 %v5185_v27, %v2264_v0  ;;  %v2043_v11 = vpop.f32.mrb[186].mxu0 }
 0x2c1   : > { %v2268_v55 = vpop.f32.mrb[186].mxu1  ;;  %v2045_v46 = vpop.f32.mrb[187].mxu0 }
 0x2c2   : > { %3493 = vst [vmem:[%s4738_s8 + $0x2e0] sm:$0xff] %v2310_v53  ;;  %v2269_v30 = vadd.f32 %v2268_v55, %v2043_v11  ;;  %v2270_v56 = vpop.f32.mrb[187].mxu1 }
 0x2c4   : > { %v2311_v58 = vadd.f32 %v5185_v27, %v2269_v30  ;;  %v2048_v59 = vpop.f32.mrb[188].mxu0 }
 0x2c5   : > { %v2273_v4 = vpop.f32.mrb[188].mxu1  ;;  %v2050_v31 = vpop.f32.mrb[189].mxu0 }
 0x2c6   : > { %3494 = vst [vmem:[%s4738_s8 + $0x2e8] sm:$0xff] %v2311_v58  ;;  %v2274_v36 = vadd.f32 %v2273_v4, %v2048_v59  ;;  %v2275_v61 = vpop.f32.mrb[189].mxu1 }
 0x2c8   : > { %v2312_v3 = vadd.f32 %v5185_v27, %v2274_v36  ;;  %v2053_v54 = vpop.f32.mrb[190].mxu0 }
 0x2c9   : > { %v2278_v5 = vpop.f32.mrb[190].mxu1  ;;  %v2055_v33 = vpop.f32.mrb[191].mxu0 }
 0x2ca   : > { %3495 = vst [vmem:[%s4738_s8 + $0x2f0] sm:$0xff] %v2312_v3  ;;  %v2279_v8 = vadd.f32 %v2278_v5, %v2053_v54  ;;  %v2280_v9 = vpop.f32.mrb[191].mxu1 }
 0x2cc   : > { %v2313_v60 = vadd.f32 %v5185_v27, %v2279_v8  ;;  %v2607_v39 = vpop.f32.mrb[192].mxu0 }
 0x2cd   : > { %v2832_v13 = vpop.f32.mrb[192].mxu1  ;;  %v2609_v17 = vpop.f32.mrb[193].mxu0 }
 0x2ce   : > { %3496 = vst [vmem:[%s4738_s8 + $0x2f8] sm:$0xff] %v2313_v60  ;;  %v2833_v42 = vadd.f32 %v2832_v13, %v2607_v39  ;;  %v2834_v10 = vpop.f32.mrb[193].mxu1 }
 0x2d0   : > { %v2991_v62 = vadd.f32 %v5185_v27, %v2833_v42  ;;  %v2612_v19 = vpop.f32.mrb[194].mxu0 }
 0x2d1   : > { %v2837_v51 = vpop.f32.mrb[194].mxu1  ;;  %v2614_v6 = vpop.f32.mrb[195].mxu0 }
 0x2d2   : > { %3625 = vst [vmem:[%s4738_s8 + $0x300] sm:$0xff] %v2991_v62  ;;  %v2838_v21 = vadd.f32 %v2837_v51, %v2612_v19  ;;  %v2839_v24 = vpop.f32.mrb[195].mxu1 }
 0x2d4   : > { %v2992_v48 = vadd.f32 %v5185_v27, %v2838_v21  ;;  %v2617_v12 = vpop.f32.mrb[196].mxu0 }
 0x2d5   : > { %v2842_v29 = vpop.f32.mrb[196].mxu1  ;;  %v2619_v32 = vpop.f32.mrb[197].mxu0 }
 0x2d6   : > { %3626 = vst [vmem:[%s4738_s8 + $0x308] sm:$0xff] %v2992_v48  ;;  %v2843_v7 = vadd.f32 %v2842_v29, %v2617_v12  ;;  %v2844_v49 = vpop.f32.mrb[197].mxu1 }
 0x2d8   : > { %v2993_v35 = vadd.f32 %v5185_v27, %v2843_v7  ;;  %v2622_v14 = vpop.f32.mrb[198].mxu0 }
 0x2d9   : > { %v2847_v37 = vpop.f32.mrb[198].mxu1  ;;  %v2624_v38 = vpop.f32.mrb[199].mxu0 }
 0x2da   : > { %3627 = vst [vmem:[%s4738_s8 + $0x310] sm:$0xff] %v2993_v35  ;;  %v2848_v40 = vadd.f32 %v2847_v37, %v2622_v14  ;;  %v2849_v43 = vpop.f32.mrb[199].mxu1 }
 0x2dc   : > { %v2994_v15 = vadd.f32 %v5185_v27, %v2848_v40  ;;  %v2627_v18 = vpop.f32.mrb[200].mxu0 }
 0x2dd   : > { %v2852_v44 = vpop.f32.mrb[200].mxu1  ;;  %v2629_v16 = vpop.f32.mrb[201].mxu0 }
 0x2de   : > { %3628 = vst [vmem:[%s4738_s8 + $0x318] sm:$0xff] %v2994_v15  ;;  %v2853_v41 = vadd.f32 %v2852_v44, %v2627_v18  ;;  %v2854_v25 = vpop.f32.mrb[201].mxu1 }
 0x2e0   : > { %v2995_v26 = vadd.f32 %v5185_v27, %v2853_v41  ;;  %v2632_v34 = vpop.f32.mrb[202].mxu0 }
 0x2e1   : > { %v2857_v20 = vpop.f32.mrb[202].mxu1  ;;  %v2634_v47 = vpop.f32.mrb[203].mxu0 }
 0x2e2   : > { %3629 = vst [vmem:[%s4738_s8 + $0x320] sm:$0xff] %v2995_v26  ;;  %v2858_v45 = vadd.f32 %v2857_v20, %v2632_v34  ;;  %v2859_v57 = vpop.f32.mrb[203].mxu1 }
 0x2e4   : > { %v2996_v63 = vadd.f32 %v5185_v27, %v2858_v45  ;;  %v2637_v50 = vpop.f32.mrb[204].mxu0 }
 0x2e5   : > { %v2862_v28 = vpop.f32.mrb[204].mxu1  ;;  %v2639_v1 = vpop.f32.mrb[205].mxu0 }
 0x2e6   : > { %3630 = vst [vmem:[%s4738_s8 + $0x328] sm:$0xff] %v2996_v63  ;;  %v2863_v52 = vadd.f32 %v2862_v28, %v2637_v50  ;;  %v2864_v22 = vpop.f32.mrb[205].mxu1 }
 0x2e8   : > { %v2997_v23 = vadd.f32 %v5185_v27, %v2863_v52  ;;  %v2642_v0 = vpop.f32.mrb[206].mxu0 }
 0x2e9   : > { %v2867_v2 = vpop.f32.mrb[206].mxu1  ;;  %v2644_v53 = vpop.f32.mrb[207].mxu0 }
 0x2ea   : > { %3631 = vst [vmem:[%s4738_s8 + $0x330] sm:$0xff] %v2997_v23  ;;  %v2868_v11 = vadd.f32 %v2867_v2, %v2642_v0  ;;  %v2869_v55 = vpop.f32.mrb[207].mxu1 }
 0x2ec   : > { %v2998_v46 = vadd.f32 %v5185_v27, %v2868_v11  ;;  %v2647_v30 = vpop.f32.mrb[208].mxu0 }
 0x2ed   : > { %v2872_v56 = vpop.f32.mrb[208].mxu1  ;;  %v2649_v58 = vpop.f32.mrb[209].mxu0 }
 0x2ee   : > { %3632 = vst [vmem:[%s4738_s8 + $0x338] sm:$0xff] %v2998_v46  ;;  %v2873_v59 = vadd.f32 %v2872_v56, %v2647_v30  ;;  %v2874_v4 = vpop.f32.mrb[209].mxu1 }
 0x2f0   : > { %v2999_v31 = vadd.f32 %v5185_v27, %v2873_v59  ;;  %v2652_v36 = vpop.f32.mrb[210].mxu0 }
 0x2f1   : > { %v2877_v61 = vpop.f32.mrb[210].mxu1  ;;  %v2654_v3 = vpop.f32.mrb[211].mxu0 }
 0x2f2   : > { %3633 = vst [vmem:[%s4738_s8 + $0x340] sm:$0xff] %v2999_v31  ;;  %v2878_v54 = vadd.f32 %v2877_v61, %v2652_v36  ;;  %v2879_v5 = vpop.f32.mrb[211].mxu1 }
 0x2f4   : > { %v3000_v33 = vadd.f32 %v5185_v27, %v2878_v54  ;;  %v2657_v8 = vpop.f32.mrb[212].mxu0 }
 0x2f5   : > { %v2882_v9 = vpop.f32.mrb[212].mxu1  ;;  %v2659_v60 = vpop.f32.mrb[213].mxu0 }
 0x2f6   : > { %3634 = vst [vmem:[%s4738_s8 + $0x348] sm:$0xff] %v3000_v33  ;;  %v2883_v39 = vadd.f32 %v2882_v9, %v2657_v8  ;;  %v2884_v13 = vpop.f32.mrb[213].mxu1 }
 0x2f8   : > { %v3001_v17 = vadd.f32 %v5185_v27, %v2883_v39  ;;  %v2662_v42 = vpop.f32.mrb[214].mxu0 }
 0x2f9   : > { %v2887_v10 = vpop.f32.mrb[214].mxu1  ;;  %v2664_v62 = vpop.f32.mrb[215].mxu0 }
 0x2fa   : > { %3635 = vst [vmem:[%s4738_s8 + $0x350] sm:$0xff] %v3001_v17  ;;  %v2888_v19 = vadd.f32 %v2887_v10, %v2662_v42  ;;  %v2889_v51 = vpop.f32.mrb[215].mxu1 }
 0x2fc   : > { %v3002_v6 = vadd.f32 %v5185_v27, %v2888_v19  ;;  %v2667_v21 = vpop.f32.mrb[216].mxu0 }
 0x2fd   : > { %v2892_v24 = vpop.f32.mrb[216].mxu1  ;;  %v2669_v48 = vpop.f32.mrb[217].mxu0 }
 0x2fe   : > { %3636 = vst [vmem:[%s4738_s8 + $0x358] sm:$0xff] %v3002_v6  ;;  %v2893_v12 = vadd.f32 %v2892_v24, %v2667_v21  ;;  %v2894_v29 = vpop.f32.mrb[217].mxu1 }
 0x300   : > { %v3003_v32 = vadd.f32 %v5185_v27, %v2893_v12  ;;  %v2672_v7 = vpop.f32.mrb[218].mxu0 }
 0x301   : > { %v2897_v49 = vpop.f32.mrb[218].mxu1  ;;  %v2674_v35 = vpop.f32.mrb[219].mxu0 }
 0x302   : > { %3637 = vst [vmem:[%s4738_s8 + $0x360] sm:$0xff] %v3003_v32  ;;  %v2898_v14 = vadd.f32 %v2897_v49, %v2672_v7  ;;  %v2899_v37 = vpop.f32.mrb[219].mxu1 }
 0x304   : > { %v3004_v38 = vadd.f32 %v5185_v27, %v2898_v14  ;;  %v2677_v40 = vpop.f32.mrb[220].mxu0 }
 0x305   : > { %v2902_v43 = vpop.f32.mrb[220].mxu1  ;;  %v2679_v15 = vpop.f32.mrb[221].mxu0 }
 0x306   : > { %3638 = vst [vmem:[%s4738_s8 + $0x368] sm:$0xff] %v3004_v38  ;;  %v2903_v18 = vadd.f32 %v2902_v43, %v2677_v40  ;;  %v2904_v44 = vpop.f32.mrb[221].mxu1 }
 0x308   : > { %v3005_v16 = vadd.f32 %v5185_v27, %v2903_v18  ;;  %v2682_v41 = vpop.f32.mrb[222].mxu0 }
 0x309   : > { %v2907_v25 = vpop.f32.mrb[222].mxu1  ;;  %v2684_v26 = vpop.f32.mrb[223].mxu0 }
 0x30a   : > { %3639 = vst [vmem:[%s4738_s8 + $0x370] sm:$0xff] %v3005_v16  ;;  %v2908_v34 = vadd.f32 %v2907_v25, %v2682_v41  ;;  %v2909_v20 = vpop.f32.mrb[223].mxu1 }
 0x30c   : > { %v3006_v47 = vadd.f32 %v5185_v27, %v2908_v34  ;;  %v2687_v45 = vpop.f32.mrb[224].mxu0 }
 0x30d   : > { %v2912_v57 = vpop.f32.mrb[224].mxu1  ;;  %v2689_v63 = vpop.f32.mrb[225].mxu0 }
 0x30e   : > { %3640 = vst [vmem:[%s4738_s8 + $0x378] sm:$0xff] %v3006_v47  ;;  %v2913_v50 = vadd.f32 %v2912_v57, %v2687_v45  ;;  %v2914_v28 = vpop.f32.mrb[225].mxu1 }
 0x310   : > { %v3007_v1 = vadd.f32 %v5185_v27, %v2913_v50  ;;  %v2692_v52 = vpop.f32.mrb[226].mxu0 }
 0x311   : > { %v2917_v22 = vpop.f32.mrb[226].mxu1  ;;  %v2694_v23 = vpop.f32.mrb[227].mxu0 }
 0x312   : > { %3641 = vst [vmem:[%s4738_s8 + $0x380] sm:$0xff] %v3007_v1  ;;  %v2918_v0 = vadd.f32 %v2917_v22, %v2692_v52  ;;  %v2919_v2 = vpop.f32.mrb[227].mxu1 }
 0x314   : > { %v3008_v53 = vadd.f32 %v5185_v27, %v2918_v0  ;;  %v2697_v11 = vpop.f32.mrb[228].mxu0 }
 0x315   : > { %v2922_v55 = vpop.f32.mrb[228].mxu1  ;;  %v2699_v46 = vpop.f32.mrb[229].mxu0 }
 0x316   : > { %3642 = vst [vmem:[%s4738_s8 + $0x388] sm:$0xff] %v3008_v53  ;;  %v2923_v30 = vadd.f32 %v2922_v55, %v2697_v11  ;;  %v2924_v56 = vpop.f32.mrb[229].mxu1 }
 0x318   : > { %v3009_v58 = vadd.f32 %v5185_v27, %v2923_v30  ;;  %v2702_v59 = vpop.f32.mrb[230].mxu0 }
 0x319   : > { %v2927_v4 = vpop.f32.mrb[230].mxu1  ;;  %v2704_v31 = vpop.f32.mrb[231].mxu0 }
 0x31a   : > { %3643 = vst [vmem:[%s4738_s8 + $0x390] sm:$0xff] %v3009_v58  ;;  %v2928_v36 = vadd.f32 %v2927_v4, %v2702_v59  ;;  %v2929_v61 = vpop.f32.mrb[231].mxu1 }
 0x31c   : > { %v3010_v3 = vadd.f32 %v5185_v27, %v2928_v36  ;;  %v2707_v54 = vpop.f32.mrb[232].mxu0 }
 0x31d   : > { %v2932_v5 = vpop.f32.mrb[232].mxu1  ;;  %v2709_v33 = vpop.f32.mrb[233].mxu0 }
 0x31e   : > { %3644 = vst [vmem:[%s4738_s8 + $0x398] sm:$0xff] %v3010_v3  ;;  %v2933_v8 = vadd.f32 %v2932_v5, %v2707_v54  ;;  %v2934_v9 = vpop.f32.mrb[233].mxu1 }
 0x320   : > { %v3011_v60 = vadd.f32 %v5185_v27, %v2933_v8  ;;  %v2712_v39 = vpop.f32.mrb[234].mxu0 }
 0x321   : > { %v2937_v13 = vpop.f32.mrb[234].mxu1  ;;  %v2714_v17 = vpop.f32.mrb[235].mxu0 }
 0x322   : > { %3645 = vst [vmem:[%s4738_s8 + $0x3a0] sm:$0xff] %v3011_v60  ;;  %v2938_v42 = vadd.f32 %v2937_v13, %v2712_v39  ;;  %v2939_v10 = vpop.f32.mrb[235].mxu1 }
 0x324   : > { %v3012_v62 = vadd.f32 %v5185_v27, %v2938_v42  ;;  %v2717_v19 = vpop.f32.mrb[236].mxu0 }
 0x325   : > { %v2942_v51 = vpop.f32.mrb[236].mxu1  ;;  %v2719_v6 = vpop.f32.mrb[237].mxu0 }
 0x326   : > { %3646 = vst [vmem:[%s4738_s8 + $0x3a8] sm:$0xff] %v3012_v62  ;;  %v2943_v21 = vadd.f32 %v2942_v51, %v2717_v19  ;;  %v2944_v24 = vpop.f32.mrb[237].mxu1 }
 0x328   : > { %v3013_v48 = vadd.f32 %v5185_v27, %v2943_v21  ;;  %v2722_v12 = vpop.f32.mrb[238].mxu0 }
 0x329   : > { %v2947_v29 = vpop.f32.mrb[238].mxu1  ;;  %v2724_v32 = vpop.f32.mrb[239].mxu0 }
 0x32a   : > { %3647 = vst [vmem:[%s4738_s8 + $0x3b0] sm:$0xff] %v3013_v48  ;;  %v2948_v7 = vadd.f32 %v2947_v29, %v2722_v12  ;;  %v2949_v49 = vpop.f32.mrb[239].mxu1 }
 0x32c   : > { %v3014_v35 = vadd.f32 %v5185_v27, %v2948_v7  ;;  %v2727_v14 = vpop.f32.mrb[240].mxu0 }
 0x32d   : > { %v2952_v37 = vpop.f32.mrb[240].mxu1  ;;  %v2729_v38 = vpop.f32.mrb[241].mxu0 }
 0x32e   : > { %3648 = vst [vmem:[%s4738_s8 + $0x3b8] sm:$0xff] %v3014_v35  ;;  %v2953_v40 = vadd.f32 %v2952_v37, %v2727_v14  ;;  %v2954_v43 = vpop.f32.mrb[241].mxu1 }
 0x330   : > { %v3015_v15 = vadd.f32 %v5185_v27, %v2953_v40  ;;  %v2732_v18 = vpop.f32.mrb[242].mxu0 }
 0x331   : > { %v2957_v44 = vpop.f32.mrb[242].mxu1  ;;  %v2734_v16 = vpop.f32.mrb[243].mxu0 }
 0x332   : > { %3649 = vst [vmem:[%s4738_s8 + $0x3c0] sm:$0xff] %v3015_v15  ;;  %v2958_v41 = vadd.f32 %v2957_v44, %v2732_v18  ;;  %v2959_v25 = vpop.f32.mrb[243].mxu1 }
 0x334   : > { %v3016_v26 = vadd.f32 %v5185_v27, %v2958_v41  ;;  %v2737_v34 = vpop.f32.mrb[244].mxu0 }
 0x335   : > { %v2962_v20 = vpop.f32.mrb[244].mxu1  ;;  %v2739_v47 = vpop.f32.mrb[245].mxu0 }
 0x336   : > { %3650 = vst [vmem:[%s4738_s8 + $0x3c8] sm:$0xff] %v3016_v26  ;;  %v2963_v45 = vadd.f32 %v2962_v20, %v2737_v34  ;;  %v2964_v57 = vpop.f32.mrb[245].mxu1 }
 0x338   : > { %v3017_v63 = vadd.f32 %v5185_v27, %v2963_v45  ;;  %v2742_v50 = vpop.f32.mrb[246].mxu0 }
 0x339   : > { %v2967_v28 = vpop.f32.mrb[246].mxu1  ;;  %v2744_v1 = vpop.f32.mrb[247].mxu0 }
 0x33a   : > { %3651 = vst [vmem:[%s4738_s8 + $0x3d0] sm:$0xff] %v3017_v63  ;;  %v2968_v52 = vadd.f32 %v2967_v28, %v2742_v50  ;;  %v2969_v22 = vpop.f32.mrb[247].mxu1 }
 0x33c   : > { %v3018_v23 = vadd.f32 %v5185_v27, %v2968_v52  ;;  %v2747_v0 = vpop.f32.mrb[248].mxu0 }
 0x33d   : > { %v2972_v2 = vpop.f32.mrb[248].mxu1  ;;  %v2749_v53 = vpop.f32.mrb[249].mxu0 }
 0x33e   : > { %3652 = vst [vmem:[%s4738_s8 + $0x3d8] sm:$0xff] %v3018_v23  ;;  %v2973_v11 = vadd.f32 %v2972_v2, %v2747_v0  ;;  %v2974_v55 = vpop.f32.mrb[249].mxu1 }
 0x340   : > { %v3019_v46 = vadd.f32 %v5185_v27, %v2973_v11  ;;  %v2752_v30 = vpop.f32.mrb[250].mxu0 }
 0x341   : > { %v2977_v56 = vpop.f32.mrb[250].mxu1  ;;  %v2754_v58 = vpop.f32.mrb[251].mxu0 }
 0x342   : > { %3653 = vst [vmem:[%s4738_s8 + $0x3e0] sm:$0xff] %v3019_v46  ;;  %v2978_v59 = vadd.f32 %v2977_v56, %v2752_v30  ;;  %v2979_v4 = vpop.f32.mrb[251].mxu1 }
 0x344   : > { %v3020_v31 = vadd.f32 %v5185_v27, %v2978_v59  ;;  %v2757_v36 = vpop.f32.mrb[252].mxu0 }
 0x345   : > { %v2982_v61 = vpop.f32.mrb[252].mxu1  ;;  %v2759_v3 = vpop.f32.mrb[253].mxu0 }
 0x346   : > { %3654 = vst [vmem:[%s4738_s8 + $0x3e8] sm:$0xff] %v3020_v31  ;;  %v2983_v54 = vadd.f32 %v2982_v61, %v2757_v36  ;;  %v2984_v5 = vpop.f32.mrb[253].mxu1 }
 0x348   : > { %v3021_v33 = vadd.f32 %v5185_v27, %v2983_v54  ;;  %v2762_v8 = vpop.f32.mrb[254].mxu0 }
 0x349   : > { %v2987_v9 = vpop.f32.mrb[254].mxu1  ;;  %v2764_v60 = vpop.f32.mrb[255].mxu0 }
 0x34a   : > { %3655 = vst [vmem:[%s4738_s8 + $0x3f0] sm:$0xff] %v3021_v33  ;;  %v2988_v39 = vadd.f32 %v2987_v9, %v2762_v8  ;;  %v2989_v13 = vpop.f32.mrb[255].mxu1 }
 0x34c   : > { %v3022_v17 = vadd.f32 %v5185_v27, %v2988_v39 }
 0x34e   : > { %3656 = vst [vmem:[%s4738_s8 + $0x3f8] sm:$0xff] %v3022_v17 }
 0x34f   : > { %4162 = shalt.err (!%p4159_p6)
}
 0x350   : > { %s4163_s4 = scalar_lea.hbm %s5326_s27, 16384  ;;  %s4167_s8 = scalar_lea.hbm %s5383_s3, 32768 }
 0x351   : > { %p4164_p7 = scmp.ne.s32.totalorder %s5326_s27, %s4163_s4  ;;  %p4168_p0 = scmp.lt.u32.totalorder %s5326_s27, %s5383_s3 }
 0x352   : > { %p4169_p2 = scmp.lt.u32.totalorder %s4167_s8, %s4163_s4  ;;  %p4171_p8 = scmp.lt.u32.totalorder %s4163_s4, %s5326_s27 }
 0x353   : > { %p4165_p9 = pnand %p4164_p7, %p5395_p10 }
 0x354   : > { %p4170_p4 = por %p4169_p2, %p4168_p0 }
 0x355   : > { %p4166_p12 = pneg %p4165_p9 }
 0x356   : > { %p4172_p11 = por %p4171_p8, %p4170_p4 }
 0x358   : > { %p4173_p13 = pnand %p4172_p11, %p4166_p12 }
 0x35a   : > { %4176 = shalt.err (!%p4173_p13)
}
 0x35b   : > { %s4238_s11 = smov 128   ;;  %s4239_s18 = smov 8  }
 0x35c   : > { %4052 = dma.vmem_to_hbm [thread:$0]  (%p5395_p10), %s5328_s21, 16384, %s5326_s27, %s5334_s15, %s4238_s11, %s4238_s11, %s4239_s18  }
 0x35d PF: > { %p4064_p1 = scmp.ge.s32.totalorder %s4231_s17, 2  ;;  %s3088_s19 = sand.u32 1, %s4211_s12  }
 0x35e   : > { %p5396_p3 = scmp.ne.s32.totalorder %s5389_s24, 0  ;;  %s3089_s23 = scalar_lea.sflag [#allocation4], %s3088_s19 }
 0x360   : > { %p4059_p5 = pnand %p4064_p1, %p5396_p3 }
 0x362   : > { %4206 = dma.done.wait (!%p4059_p5), %s3089_s23, 16384  }
 0x363   : > { %4208 = vsyncadd (!%p4059_p5), %s3089_s23, 4294950912  ;;  %s17_s17 = sadd.s32 1, %s4231_s17   ;;  %s5397_s12 = smov %s4215_s13 }
 0x364   : > { %p14_p6 = scmp.ge.s32.totalorder %s17_s17, 4   ;;  %s5398_s13 = smov %s4219_s14 }
 0x365   : > { %s5399_s14 = smov %s4313_s25  ;;  %s5400_s15 = smov %s4227_s16 }
 0x366   : > { %s5401_s16 = smov %s5403_s20  ;;  %16 = sbr.rel (!%p14_p6) target bundleno = 5 (0x5), region = 84 }
 0x36d   :  { %3094 = vsyncpa [#allocation3], 1 }
 0x36e   :  { %3096 = vsyncpa [#allocation3 + $0x1], 1 }
 0x36f   :  { %3097 = vsyncpa [#allocation4], 1 }
 0x370   :  { %3099 = vsyncpa [#allocation4 + $0x1], 1 }

</bundles_post_ra>
